<compile_context>
chip_gen: v6e
topology: v6e:2x2x1
jax: 0.10.0
libtpu: 0.0.40
codegen_flags: <defaults>
</compile_context>

<pallas_src>
import jax
import jax.numpy as jnp
from jax import lax
from jax.experimental import pallas as pl
from jax.experimental.pallas import tpu as pltpu

LRELU_SLOPE = 0.1  # modules.LRELU_SLOPE


def _round_up(n, m):
    return ((n + m - 1) // m) * m


# -----------------------------------------------------------------------------
# Pallas kernel: whole conv stack for one batch element.  All activations are
# channels-last ([rows, C] -> C on lanes); each layer's output slab (with zero
# halo rows for the next layer's padding) IS the fmap output.
# -----------------------------------------------------------------------------
def _make_discp_kernel(cfg, P, colh, Ho8_0, slope):
    """cfg: static per-layer dicts (K, S, pad, next_pad, C_in, C_out, H_in,
    H_out); last entry is conv_post.  colh[l] = 8-rounded per-column slab
    height of layer l's output (H_out + 2*next_pad)."""
    n_layers = len(cfg)       # 6
    n_conv = n_layers - 1     # 5 stacked convs; cfg[-1] is conv_post

    def kernel(*refs):
        x0_ref = refs[0]                              # [P*Ho8_0, K0p] host im2col (f32)
        w_refs = refs[1:1 + n_conv]                   # bf16 [K*Cin, Cout]
        wp_ref = refs[1 + n_conv]                     # f32 [Kp, Cin_post]
        b_ref = refs[2 + n_conv]                      # f32 [8, Cmax] packed biases
        out_refs = refs[3 + n_conv:3 + n_conv + n_layers]

        def store_column(l, m, y_rows):
            """Write one period column's valid rows; zero only its halo rows."""
            c = cfg[l]
            Hout, Cout, npad = c["H_out"], c["C_out"], c["next_pad"]
            dst = m * colh[l]
            if npad > 0:
                zeros = jnp.zeros((npad, Cout), jnp.float32)
                out_refs[l][dst:dst + npad, :] = zeros
                out_refs[l][dst + npad + Hout:dst + 2 * npad + Hout, :] = zeros
            out_refs[l][dst + npad:dst + npad + Hout, :] = y_rows

        # ---- layer 0: one matmul on the host-built im2col -------------------
        c0 = cfg[0]
        Hout0, Cout0 = c0["H_out"], c0["C_out"]
        y0 = jnp.dot(x0_ref[...].astype(jnp.bfloat16), w_refs[0][...],
                     preferred_element_type=jnp.float32)
        y0 = y0 + b_ref[0:1, :Cout0]
        y0 = jnp.where(y0 >= 0.0, y0, slope * y0)          # leaky_relu (f32)
        for m in range(P):
            store_column(0, m, y0[m * Ho8_0:m * Ho8_0 + Hout0, :])

        # ---- layers 1..4: K accumulating matmuls per period column ----------
        for l in range(1, n_conv):
            c = cfg[l]
            K, S = c["K"], c["S"]
            Cin, Cout, Hout = c["C_in"], c["C_out"], c["H_out"]
            src = out_refs[l - 1]                     # previous layer's halo'd slab
            ch_in = colh[l - 1]
            w = w_refs[l]
            for m in range(P):
                base = m * ch_in
                acc = jnp.zeros((Hout, Cout), jnp.float32)
                for k in range(K):
                    if S > 1 and Hout > 1:
                        sl = pl.ds(base + k, Hout, stride=S)
                    else:
                        sl = pl.ds(base + k, Hout)
                    lhs = src[sl, :].astype(jnp.bfloat16)
                    acc = acc + jnp.dot(lhs, w[k * Cin:(k + 1) * Cin, :],
                                        preferred_element_type=jnp.float32)
                y = acc + b_ref[l:l + 1, :Cout]
                y = jnp.where(y >= 0.0, y, slope * y)
                store_column(l, m, y)

        # ---- conv_post (C_out == 1): VPU multiply + lane reduce --------------
        cp = cfg[-1]
        Kp, Cin_p, Hout_p = cp["K"], cp["C_in"], cp["H_out"]
        src = out_refs[n_conv - 1]
        ch_in = colh[n_conv - 1]
        for m in range(P):
            base = m * ch_in
            acc = jnp.zeros((Hout_p, 1), jnp.float32)
            for k in range(Kp):
                rows = src[pl.ds(base + k, Hout_p), :]
                acc = acc + jnp.sum(rows * wp_ref[k:k + 1, :], axis=-1,
                                    keepdims=True)
            y = acc + b_ref[n_conv:n_conv + 1, 0:1]
            store_column(n_layers - 1, m, y)

    return kernel


# -----------------------------------------------------------------------------
# Wrapper: PyTorch DiscriminatorP.forward semantics.
# -----------------------------------------------------------------------------
def discriminator_p_pallas(x, weights, biases, post_w, post_b, *, period,
                           kernel_size=5, stride=3, lrelu_slope=LRELU_SLOPE):
    """x: [B, 1, T] f32 (PyTorch layout).  weights[i]: [C_out, C_in, K, 1],
    post_w: [1, C5, 3, 1].  Returns (score [B, N], fmap list in PyTorch
    [B, C, H, P] layout) matching DiscriminatorP.forward."""
    B, Cx, T = x.shape
    assert Cx == 1
    P = period
    if T % P != 0:                                   # reflect-pad T to multiple of period
        n_pad = P - (T % P)
        x = jnp.pad(x, ((0, 0), (0, 0), (0, n_pad)), mode="reflect")
        T = T + n_pad
    H0 = T // P

    K, S = kernel_size, stride
    pad = (K - 1) // 2                               # get_padding(kernel_size, 1)
    strides = [S, S, S, S, 1]

    # Static per-layer configuration.
    cfg = []
    C_prev, H_prev = 1, H0
    for i, w in enumerate(weights):
        s_i = strides[i]
        C_out = w.shape[0]
        H_out = (H_prev + 2 * pad - K) // s_i + 1
        cfg.append(dict(K=K, S=s_i, pad=pad, C_in=C_prev, C_out=C_out,
                        H_in=H_prev, H_out=H_out))
        C_prev, H_prev = C_out, H_out
    Kp = post_w.shape[2]
    padp = (Kp - 1) // 2
    H_post = H_prev + 2 * padp - Kp + 1
    cfg.append(dict(K=Kp, S=1, pad=padp, C_in=C_prev, C_out=1,
                    H_in=H_prev, H_out=H_post))
    for l, c in enumerate(cfg):
        c["next_pad"] = cfg[l + 1]["pad"] if l + 1 < len(cfg) else 0
    colh = [_round_up(c["H_out"] + 2 * c["next_pad"], 8) for c in cfg]

    # Layer-0 im2col built host-side (C_in == 1): [B, P*Ho8_0, K0p].
    Hout0 = cfg[0]["H_out"]
    Ho8_0 = _round_up(Hout0, 8)
    K0p = _round_up(K * 1, 8)                        # pad tiny contraction dim
    xc = jnp.transpose(x.reshape(B, H0, P), (0, 2, 1))          # [B, P, H0]
    xp = jnp.pad(xc, ((0, 0), (0, 0), (pad, pad)))
    taps = jnp.arange(Hout0)[:, None] * S + jnp.arange(K)[None, :]
    col0 = xp[:, :, taps]                                       # [B, P, Hout0, K]
    col0 = jnp.pad(col0, ((0, 0), (0, 0), (0, Ho8_0 - Hout0), (0, K0p - K)))
    col0 = col0.reshape(B, P * Ho8_0, K0p).astype(jnp.float32)

    # Flattened conv weights [K*Cin, C_out] (row index = k*Cin + c_in), bf16.
    w_flat = [jnp.transpose(w[:, :, :, 0], (2, 1, 0))
              .reshape(c["K"] * c["C_in"], c["C_out"]).astype(jnp.bfloat16)
              for w, c in zip(weights, cfg[:-1])]
    w_flat[0] = jnp.pad(w_flat[0], ((0, K0p - w_flat[0].shape[0]), (0, 0)))
    wp = jnp.transpose(post_w[0, :, :, 0], (1, 0)).astype(jnp.float32)  # [Kp, Cin]

    # Pack all biases into one [8, Cmax] block (one sublane tile, one DMA).
    Cmax = max(c["C_out"] for c in cfg)
    bias_pack = jnp.zeros((8, Cmax), jnp.float32)
    for i, b in enumerate(biases):
        bias_pack = bias_pack.at[i, :b.shape[0]].set(b)
    bias_pack = bias_pack.at[len(biases), 0].set(post_b[0])

    out_shapes = tuple(jax.ShapeDtypeStruct((B, P * colh[l], c["C_out"]),
                                            jnp.float32)
                       for l, c in enumerate(cfg))
    out_specs = tuple(pl.BlockSpec((None, P * colh[l], c["C_out"]),
                                   lambda b: (b, 0, 0))
                      for l, c in enumerate(cfg))

    in_specs = [pl.BlockSpec((None, P * Ho8_0, K0p), lambda b: (b, 0, 0))]
    for w in w_flat + [wp]:
        # Constant index map -> single-buffer the resident weights.
        in_specs.append(pl.BlockSpec(w.shape, lambda b: (0, 0),
                                     pipeline_mode=pl.Buffered(1)))
    in_specs.append(pl.BlockSpec(bias_pack.shape, lambda b: (0, 0)))

    kernel = _make_discp_kernel(cfg, P, colh, Ho8_0, lrelu_slope)

    outs = pl.pallas_call(
        kernel,
        out_shape=out_shapes,
        grid=(B,),
        in_specs=in_specs,
        out_specs=out_specs,
        compiler_params=pltpu.CompilerParams(
            dimension_semantics=("parallel",),       # independent batch steps
            vmem_limit_bytes=48 * 1024 * 1024,        # explicit budget (v7x: 64 MiB phys)
        ),
    )(col0, *w_flat, wp, bias_pack)

    # Strip halos / slack rows and go back to PyTorch layouts: fmap [B, C, H, P].
    fmap = []
    for l, (o, c) in enumerate(zip(outs, cfg)):
        o = o.reshape(B, P, colh[l], c["C_out"])
        o = o[:, :, c["next_pad"]:c["next_pad"] + c["H_out"], :]
        fmap.append(jnp.transpose(o, (0, 3, 2, 1)))
    score = fmap[-1].reshape(B, -1)                  # torch.flatten(x, 1, -1)
    return score, fmap


# -----------------------------------------------------------------------------
# Pure-JAX reference with PyTorch Conv2d semantics (ground truth).
# -----------------------------------------------------------------------------
def _discriminator_p_ref(x, weights, biases, post_w, post_b, *, period,
                         kernel_size=5, stride=3, lrelu_slope=LRELU_SLOPE):
    B, C, T = x.shape
    if T % period != 0:
        n_pad = period - (T % period)
        x = jnp.pad(x, ((0, 0), (0, 0), (0, n_pad)), mode="reflect")
        T += n_pad
    h = x.reshape(B, C, T // period, period)
    pad = (kernel_size - 1) // 2
    strides = [stride, stride, stride, stride, 1]
    fmap = []
    for i, (w, b) in enumerate(zip(weights, biases)):
        h = lax.conv_general_dilated(h, w, window_strides=(strides[i], 1),
                                     padding=[(pad, pad), (0, 0)],
                                     dimension_numbers=("NCHW", "OIHW", "NCHW"),
                                     precision=lax.Precision.HIGHEST)
        h = h + b[None, :, None, None]
        h = jnp.where(h >= 0.0, h, lrelu_slope * h)
        fmap.append(h)
    padp = (post_w.shape[2] - 1) // 2
    h = lax.conv_general_dilated(h, post_w, window_strides=(1, 1),
                                 padding=[(padp, padp), (0, 0)],
                                 dimension_numbers=("NCHW", "OIHW", "NCHW"),
                                 precision=lax.Precision.HIGHEST)
    h = h + post_b[None, :, None, None]
    fmap.append(h)
    return h.reshape(B, -1), fmap


# -----------------------------------------------------------------------------
# Main
# -----------------------------------------------------------------------------
if __name__ == "__main__":
    key = jax.random.PRNGKey(0)
    B, T = 2, 94
    period = 3
    kernel_size, stride = 5, 3
    # Scaled-down channel widths for the smoke test
    # (module defaults are 32, 128, 512, 1024, 1024).
    channels = (8, 16, 32, 32, 32)

    keys = jax.random.split(key, 16)
    weights, biases = [], []
    C_prev = 1
    for i, C_out in enumerate(channels):
        fan_in = C_prev * kernel_size
        w = jax.random.normal(keys[2 * i], (C_out, C_prev, kernel_size, 1),
                              jnp.float32) / jnp.sqrt(fan_in)
        b = jax.random.normal(keys[2 * i + 1], (C_out,), jnp.float32) * 0.1
        weights.append(w)
        biases.append(b)
        C_prev = C_out
    post_w = jax.random.normal(keys[10], (1, C_prev, 3, 1),
                               jnp.float32) / jnp.sqrt(3 * C_prev)
    post_b = jax.random.normal(keys[11], (1,), jnp.float32) * 0.1

    x = jax.random.normal(keys[12], (B, 1, T), jnp.float32)

    score, fmap = discriminator_p_pallas(x, weights, biases, post_w, post_b,
                                         period=period, kernel_size=kernel_size,
                                         stride=stride)
    score = jax.block_until_ready(score)

    score_ref, fmap_ref = _discriminator_p_ref(x, weights, biases, post_w, post_b,
                                               period=period,
                                               kernel_size=kernel_size,
                                               stride=stride)

    assert score.shape == score_ref.shape, (score.shape, score_ref.shape)
    assert len(fmap) == len(fmap_ref)
    err = float(jnp.max(jnp.abs(score - score_ref)))
    for a, b in zip(fmap, fmap_ref):
        assert a.shape == b.shape, (a.shape, b.shape)
        err = max(err, float(jnp.max(jnp.abs(a - b))))
    # Tolerance covers bf16 MXU-pass rounding accumulated over 6 layers vs the
    # HIGHEST-precision XLA reference; a layout/semantics bug produces O(1) errors.
    assert err < 5e-2, err
    print("KERNEL_OK")
</pallas_src>

<mosaic_0001>
module attributes {stable_mosaic.version = 11 : i64} {
  func.func @kernel(%arg0: i32, %arg1: memref<1x48x8xf32, #tpu.memory_space<vmem>>, %arg2: memref<8x8xbf16, #tpu.memory_space<vmem>>, %arg3: memref<40x16xbf16, #tpu.memory_space<vmem>>, %arg4: memref<80x32xbf16, #tpu.memory_space<vmem>>, %arg5: memref<160x32xbf16, #tpu.memory_space<vmem>>, %arg6: memref<160x32xbf16, #tpu.memory_space<vmem>>, %arg7: memref<3x32xf32, #tpu.memory_space<vmem>>, %arg8: memref<8x32xf32, #tpu.memory_space<vmem>>, %arg9: memref<1x48x8xf32, #tpu.memory_space<vmem>>, %arg10: memref<1x24x16xf32, #tpu.memory_space<vmem>>, %arg11: memref<1x24x32xf32, #tpu.memory_space<vmem>>, %arg12: memref<1x24x32xf32, #tpu.memory_space<vmem>>, %arg13: memref<1x24x32xf32, #tpu.memory_space<vmem>>, %arg14: memref<1x24x1xf32, #tpu.memory_space<vmem>>) attributes {dimension_semantics = [#tpu.dimension_semantics<parallel>], iteration_bounds = array<i64: 2>, scalar_prefetch = 0 : i64, scratch_operands = 0 : i64, tpu.core_type = #tpu.core_type<tc>, window_params = [{transform_indices = @transform_0, window_bounds = array<i64: 1, 48, 8>}, {pipeline_mode = #tpu.pipeline_mode<synchronous>, transform_indices = @transform_1, window_bounds = array<i64: 8, 8>}, {pipeline_mode = #tpu.pipeline_mode<synchronous>, transform_indices = @transform_2, window_bounds = array<i64: 40, 16>}, {pipeline_mode = #tpu.pipeline_mode<synchronous>, transform_indices = @transform_3, window_bounds = array<i64: 80, 32>}, {pipeline_mode = #tpu.pipeline_mode<synchronous>, transform_indices = @transform_4, window_bounds = array<i64: 160, 32>}, {pipeline_mode = #tpu.pipeline_mode<synchronous>, transform_indices = @transform_5, window_bounds = array<i64: 160, 32>}, {pipeline_mode = #tpu.pipeline_mode<synchronous>, transform_indices = @transform_6, window_bounds = array<i64: 3, 32>}, {pipeline_mode = #tpu.pipeline_mode<synchronous>, transform_indices = @transform_7, window_bounds = array<i64: 8, 32>}, {transform_indices = @transform_8, window_bounds = array<i64: 1, 48, 8>}, {transform_indices = @transform_9, window_bounds = array<i64: 1, 24, 16>}, {transform_indices = @transform_10, window_bounds = array<i64: 1, 24, 32>}, {transform_indices = @transform_11, window_bounds = array<i64: 1, 24, 32>}, {transform_indices = @transform_12, window_bounds = array<i64: 1, 24, 32>}, {transform_indices = @transform_13, window_bounds = array<i64: 1, 24, 1>}]} {
    %c0 = arith.constant 0 : index
    %c0_0 = arith.constant 0 : index
    %c0_1 = arith.constant 0 : index
    %0 = vector.load %arg1[%c0, %c0_0, %c0_1] : memref<1x48x8xf32, #tpu.memory_space<vmem>>, vector<1x48x8xf32>
    %1 = vector.shape_cast %0 : vector<1x48x8xf32> to vector<48x8xf32>
    %2 = arith.truncf %1 : vector<48x8xf32> to vector<48x8xbf16>
    %c0_2 = arith.constant 0 : index
    %c0_3 = arith.constant 0 : index
    %3 = vector.load %arg2[%c0_2, %c0_3] : memref<8x8xbf16, #tpu.memory_space<vmem>>, vector<8x8xbf16>
    %cst = arith.constant dense<0.000000e+00> : vector<48x8xf32>
    %4 = tpu.matmul %2, %3, %cst {dimension_numbers = #tpu.dot_dimension_numbers<[1], [0], [0], [1], [0, 0, 1, 1], [], []>} : vector<48x8xbf16>, vector<8x8xbf16>, vector<48x8xf32> -> vector<48x8xf32>
    %c0_4 = arith.constant 0 : index
    %c0_5 = arith.constant 0 : index
    %5 = vector.load %arg8[%c0_4, %c0_5] : memref<8x32xf32, #tpu.memory_space<vmem>>, vector<1x8xf32>
    %6 = vector.broadcast %5 : vector<1x8xf32> to vector<48x8xf32>
    %7 = arith.addf %4, %6 : vector<48x8xf32>
    %cst_6 = arith.constant 0.000000e+00 : f32
    %8 = vector.broadcast %cst_6 : f32 to vector<48x8xf32>
    %9 = arith.cmpf oge, %7, %8 : vector<48x8xf32>
    %cst_7 = arith.constant 1.000000e-01 : f32
    %10 = vector.broadcast %cst_7 : f32 to vector<48x8xf32>
    %11 = arith.mulf %10, %7 : vector<48x8xf32>
    %12 = arith.select %9, %7, %11 : vector<48x8xi1>, vector<48x8xf32>
    %13 = vector.extract_strided_slice %12 {offsets = [0, 0], sizes = [11, 8], strides = [1, 1]} : vector<48x8xf32> to vector<11x8xf32>
    %cst_8 = arith.constant 0.000000e+00 : f32
    %14 = vector.broadcast %cst_8 : f32 to vector<2x8xf32>
    %c0_9 = arith.constant 0 : index
    %c0_10 = arith.constant 0 : index
    %c0_11 = arith.constant 0 : index
    %15 = vector.load %arg9[%c0_9, %c0_10, %c0_11] : memref<1x48x8xf32, #tpu.memory_space<vmem>>, vector<1x2x8xf32>
    %16 = vector.shape_cast %15 : vector<1x2x8xf32> to vector<2x8xf32>
    %17 = vector.shape_cast %14 : vector<2x8xf32> to vector<1x2x8xf32>
    tpu.vector_store %arg9[%c0_9, %c0_10, %c0_11], %17 {strides = array<i32>} : memref<1x48x8xf32, #tpu.memory_space<vmem>>, vector<1x2x8xf32>,
    %c0_12 = arith.constant 0 : index
    %c13 = arith.constant 13 : index
    %c0_13 = arith.constant 0 : index
    %18 = vector.load %arg9[%c0_12, %c13, %c0_13] : memref<1x48x8xf32, #tpu.memory_space<vmem>>, vector<1x2x8xf32>
    %19 = vector.shape_cast %18 : vector<1x2x8xf32> to vector<2x8xf32>
    %20 = vector.shape_cast %14 : vector<2x8xf32> to vector<1x2x8xf32>
    tpu.vector_store %arg9[%c0_12, %c13, %c0_13], %20 {strides = array<i32>} : memref<1x48x8xf32, #tpu.memory_space<vmem>>, vector<1x2x8xf32>,
    %c0_14 = arith.constant 0 : index
    %c2 = arith.constant 2 : index
    %c0_15 = arith.constant 0 : index
    %21 = vector.load %arg9[%c0_14, %c2, %c0_15] : memref<1x48x8xf32, #tpu.memory_space<vmem>>, vector<1x11x8xf32>
    %22 = vector.shape_cast %21 : vector<1x11x8xf32> to vector<11x8xf32>
    %23 = vector.shape_cast %13 : vector<11x8xf32> to vector<1x11x8xf32>
    tpu.vector_store %arg9[%c0_14, %c2, %c0_15], %23 {strides = array<i32>} : memref<1x48x8xf32, #tpu.memory_space<vmem>>, vector<1x11x8xf32>,
    %24 = vector.extract_strided_slice %12 {offsets = [16, 0], sizes = [11, 8], strides = [1, 1]} : vector<48x8xf32> to vector<11x8xf32>
    %cst_16 = arith.constant 0.000000e+00 : f32
    %25 = vector.broadcast %cst_16 : f32 to vector<2x8xf32>
    %c0_17 = arith.constant 0 : index
    %c16 = arith.constant 16 : index
    %c0_18 = arith.constant 0 : index
    %26 = vector.load %arg9[%c0_17, %c16, %c0_18] : memref<1x48x8xf32, #tpu.memory_space<vmem>>, vector<1x2x8xf32>
    %27 = vector.shape_cast %26 : vector<1x2x8xf32> to vector<2x8xf32>
    %28 = vector.shape_cast %25 : vector<2x8xf32> to vector<1x2x8xf32>
    tpu.vector_store %arg9[%c0_17, %c16, %c0_18], %28 {strides = array<i32>} : memref<1x48x8xf32, #tpu.memory_space<vmem>>, vector<1x2x8xf32>,
    %c0_19 = arith.constant 0 : index
    %c29 = arith.constant 29 : index
    %c0_20 = arith.constant 0 : index
    %29 = vector.load %arg9[%c0_19, %c29, %c0_20] : memref<1x48x8xf32, #tpu.memory_space<vmem>>, vector<1x2x8xf32>
    %30 = vector.shape_cast %29 : vector<1x2x8xf32> to vector<2x8xf32>
    %31 = vector.shape_cast %25 : vector<2x8xf32> to vector<1x2x8xf32>
    tpu.vector_store %arg9[%c0_19, %c29, %c0_20], %31 {strides = array<i32>} : memref<1x48x8xf32, #tpu.memory_space<vmem>>, vector<1x2x8xf32>,
    %c0_21 = arith.constant 0 : index
    %c18 = arith.constant 18 : index
    %c0_22 = arith.constant 0 : index
    %32 = vector.load %arg9[%c0_21, %c18, %c0_22] : memref<1x48x8xf32, #tpu.memory_space<vmem>>, vector<1x11x8xf32>
    %33 = vector.shape_cast %32 : vector<1x11x8xf32> to vector<11x8xf32>
    %34 = vector.shape_cast %24 : vector<11x8xf32> to vector<1x11x8xf32>
    tpu.vector_store %arg9[%c0_21, %c18, %c0_22], %34 {strides = array<i32>} : memref<1x48x8xf32, #tpu.memory_space<vmem>>, vector<1x11x8xf32>,
    %35 = vector.extract_strided_slice %12 {offsets = [32, 0], sizes = [11, 8], strides = [1, 1]} : vector<48x8xf32> to vector<11x8xf32>
    %cst_23 = arith.constant 0.000000e+00 : f32
    %36 = vector.broadcast %cst_23 : f32 to vector<2x8xf32>
    %c0_24 = arith.constant 0 : index
    %c32 = arith.constant 32 : index
    %c0_25 = arith.constant 0 : index
    %37 = vector.load %arg9[%c0_24, %c32, %c0_25] : memref<1x48x8xf32, #tpu.memory_space<vmem>>, vector<1x2x8xf32>
    %38 = vector.shape_cast %37 : vector<1x2x8xf32> to vector<2x8xf32>
    %39 = vector.shape_cast %36 : vector<2x8xf32> to vector<1x2x8xf32>
    tpu.vector_store %arg9[%c0_24, %c32, %c0_25], %39 {strides = array<i32>} : memref<1x48x8xf32, #tpu.memory_space<vmem>>, vector<1x2x8xf32>,
    %c0_26 = arith.constant 0 : index
    %c45 = arith.constant 45 : index
    %c0_27 = arith.constant 0 : index
    %40 = vector.load %arg9[%c0_26, %c45, %c0_27] : memref<1x48x8xf32, #tpu.memory_space<vmem>>, vector<1x2x8xf32>
    %41 = vector.shape_cast %40 : vector<1x2x8xf32> to vector<2x8xf32>
    %42 = vector.shape_cast %36 : vector<2x8xf32> to vector<1x2x8xf32>
    tpu.vector_store %arg9[%c0_26, %c45, %c0_27], %42 {strides = array<i32>} : memref<1x48x8xf32, #tpu.memory_space<vmem>>, vector<1x2x8xf32>,
    %c0_28 = arith.constant 0 : index
    %c34 = arith.constant 34 : index
    %c0_29 = arith.constant 0 : index
    %43 = vector.load %arg9[%c0_28, %c34, %c0_29] : memref<1x48x8xf32, #tpu.memory_space<vmem>>, vector<1x11x8xf32>
    %44 = vector.shape_cast %43 : vector<1x11x8xf32> to vector<11x8xf32>
    %45 = vector.shape_cast %35 : vector<11x8xf32> to vector<1x11x8xf32>
    tpu.vector_store %arg9[%c0_28, %c34, %c0_29], %45 {strides = array<i32>} : memref<1x48x8xf32, #tpu.memory_space<vmem>>, vector<1x11x8xf32>,
    %cst_30 = arith.constant 0.000000e+00 : f32
    %46 = vector.broadcast %cst_30 : f32 to vector<4x16xf32>
    %c0_31 = arith.constant 0 : index
    %c0_32 = arith.constant 0 : index
    %c0_33 = arith.constant 0 : index
    %47 = tpu.strided_load %arg9[%c0_31, %c0_32, %c0_33] {strides = array<i32: 1, 3, 1>} : memref<1x48x8xf32, #tpu.memory_space<vmem>>, vector<1x4x8xf32>
    %48 = vector.shape_cast %47 : vector<1x4x8xf32> to vector<4x8xf32>
    %49 = arith.truncf %48 : vector<4x8xf32> to vector<4x8xbf16>
    %c0_34 = arith.constant 0 : index
    %c0_35 = arith.constant 0 : index
    %50 = vector.load %arg3[%c0_34, %c0_35] : memref<40x16xbf16, #tpu.memory_space<vmem>>, vector<8x16xbf16>
    %cst_36 = arith.constant dense<0.000000e+00> : vector<4x16xf32>
    %51 = tpu.matmul %49, %50, %cst_36 {dimension_numbers = #tpu.dot_dimension_numbers<[1], [0], [0], [1], [0, 0, 1, 1], [], []>} : vector<4x8xbf16>, vector<8x16xbf16>, vector<4x16xf32> -> vector<4x16xf32>
    %52 = arith.addf %46, %51 : vector<4x16xf32>
    %c0_37 = arith.constant 0 : index
    %c1 = arith.constant 1 : index
    %c0_38 = arith.constant 0 : index
    %53 = tpu.strided_load %arg9[%c0_37, %c1, %c0_38] {strides = array<i32: 1, 3, 1>} : memref<1x48x8xf32, #tpu.memory_space<vmem>>, vector<1x4x8xf32>
    %54 = vector.shape_cast %53 : vector<1x4x8xf32> to vector<4x8xf32>
    %55 = arith.truncf %54 : vector<4x8xf32> to vector<4x8xbf16>
    %c8 = arith.constant 8 : index
    %c0_39 = arith.constant 0 : index
    %56 = vector.load %arg3[%c8, %c0_39] : memref<40x16xbf16, #tpu.memory_space<vmem>>, vector<8x16xbf16>
    %cst_40 = arith.constant dense<0.000000e+00> : vector<4x16xf32>
    %57 = tpu.matmul %55, %56, %cst_40 {dimension_numbers = #tpu.dot_dimension_numbers<[1], [0], [0], [1], [0, 0, 1, 1], [], []>} : vector<4x8xbf16>, vector<8x16xbf16>, vector<4x16xf32> -> vector<4x16xf32>
    %58 = arith.addf %52, %57 : vector<4x16xf32>
    %c0_41 = arith.constant 0 : index
    %c2_42 = arith.constant 2 : index
    %c0_43 = arith.constant 0 : index
    %59 = tpu.strided_load %arg9[%c0_41, %c2_42, %c0_43] {strides = array<i32: 1, 3, 1>} : memref<1x48x8xf32, #tpu.memory_space<vmem>>, vector<1x4x8xf32>
    %60 = vector.shape_cast %59 : vector<1x4x8xf32> to vector<4x8xf32>
    %61 = arith.truncf %60 : vector<4x8xf32> to vector<4x8xbf16>
    %c16_44 = arith.constant 16 : index
    %c0_45 = arith.constant 0 : index
    %62 = vector.load %arg3[%c16_44, %c0_45] : memref<40x16xbf16, #tpu.memory_space<vmem>>, vector<8x16xbf16>
    %cst_46 = arith.constant dense<0.000000e+00> : vector<4x16xf32>
    %63 = tpu.matmul %61, %62, %cst_46 {dimension_numbers = #tpu.dot_dimension_numbers<[1], [0], [0], [1], [0, 0, 1, 1], [], []>} : vector<4x8xbf16>, vector<8x16xbf16>, vector<4x16xf32> -> vector<4x16xf32>
    %64 = arith.addf %58, %63 : vector<4x16xf32>
    %c0_47 = arith.constant 0 : index
    %c3 = arith.constant 3 : index
    %c0_48 = arith.constant 0 : index
    %65 = tpu.strided_load %arg9[%c0_47, %c3, %c0_48] {strides = array<i32: 1, 3, 1>} : memref<1x48x8xf32, #tpu.memory_space<vmem>>, vector<1x4x8xf32>
    %66 = vector.shape_cast %65 : vector<1x4x8xf32> to vector<4x8xf32>
    %67 = arith.truncf %66 : vector<4x8xf32> to vector<4x8xbf16>
    %c24 = arith.constant 24 : index
    %c0_49 = arith.constant 0 : index
    %68 = vector.load %arg3[%c24, %c0_49] : memref<40x16xbf16, #tpu.memory_space<vmem>>, vector<8x16xbf16>
    %cst_50 = arith.constant dense<0.000000e+00> : vector<4x16xf32>
    %69 = tpu.matmul %67, %68, %cst_50 {dimension_numbers = #tpu.dot_dimension_numbers<[1], [0], [0], [1], [0, 0, 1, 1], [], []>} : vector<4x8xbf16>, vector<8x16xbf16>, vector<4x16xf32> -> vector<4x16xf32>
    %70 = arith.addf %64, %69 : vector<4x16xf32>
    %c0_51 = arith.constant 0 : index
    %c4 = arith.constant 4 : index
    %c0_52 = arith.constant 0 : index
    %71 = tpu.strided_load %arg9[%c0_51, %c4, %c0_52] {strides = array<i32: 1, 3, 1>} : memref<1x48x8xf32, #tpu.memory_space<vmem>>, vector<1x4x8xf32>
    %72 = vector.shape_cast %71 : vector<1x4x8xf32> to vector<4x8xf32>
    %73 = arith.truncf %72 : vector<4x8xf32> to vector<4x8xbf16>
    %c32_53 = arith.constant 32 : index
    %c0_54 = arith.constant 0 : index
    %74 = vector.load %arg3[%c32_53, %c0_54] : memref<40x16xbf16, #tpu.memory_space<vmem>>, vector<8x16xbf16>
    %cst_55 = arith.constant dense<0.000000e+00> : vector<4x16xf32>
    %75 = tpu.matmul %73, %74, %cst_55 {dimension_numbers = #tpu.dot_dimension_numbers<[1], [0], [0], [1], [0, 0, 1, 1], [], []>} : vector<4x8xbf16>, vector<8x16xbf16>, vector<4x16xf32> -> vector<4x16xf32>
    %76 = arith.addf %70, %75 : vector<4x16xf32>
    %c1_56 = arith.constant 1 : index
    %c0_57 = arith.constant 0 : index
    %77 = vector.load %arg8[%c1_56, %c0_57] : memref<8x32xf32, #tpu.memory_space<vmem>>, vector<1x16xf32>
    %78 = vector.broadcast %77 : vector<1x16xf32> to vector<4x16xf32>
    %79 = arith.addf %76, %78 : vector<4x16xf32>
    %cst_58 = arith.constant 0.000000e+00 : f32
    %80 = vector.broadcast %cst_58 : f32 to vector<4x16xf32>
    %81 = arith.cmpf oge, %79, %80 : vector<4x16xf32>
    %cst_59 = arith.constant 1.000000e-01 : f32
    %82 = vector.broadcast %cst_59 : f32 to vector<4x16xf32>
    %83 = arith.mulf %82, %79 : vector<4x16xf32>
    %84 = arith.select %81, %79, %83 : vector<4x16xi1>, vector<4x16xf32>
    %cst_60 = arith.constant 0.000000e+00 : f32
    %85 = vector.broadcast %cst_60 : f32 to vector<2x16xf32>
    %c0_61 = arith.constant 0 : index
    %c0_62 = arith.constant 0 : index
    %c0_63 = arith.constant 0 : index
    %86 = vector.load %arg10[%c0_61, %c0_62, %c0_63] : memref<1x24x16xf32, #tpu.memory_space<vmem>>, vector<1x2x16xf32>
    %87 = vector.shape_cast %86 : vector<1x2x16xf32> to vector<2x16xf32>
    %88 = vector.shape_cast %85 : vector<2x16xf32> to vector<1x2x16xf32>
    tpu.vector_store %arg10[%c0_61, %c0_62, %c0_63], %88 {strides = array<i32>} : memref<1x24x16xf32, #tpu.memory_space<vmem>>, vector<1x2x16xf32>,
    %c0_64 = arith.constant 0 : index
    %c6 = arith.constant 6 : index
    %c0_65 = arith.constant 0 : index
    %89 = vector.load %arg10[%c0_64, %c6, %c0_65] : memref<1x24x16xf32, #tpu.memory_space<vmem>>, vector<1x2x16xf32>
    %90 = vector.shape_cast %89 : vector<1x2x16xf32> to vector<2x16xf32>
    %91 = vector.shape_cast %85 : vector<2x16xf32> to vector<1x2x16xf32>
    tpu.vector_store %arg10[%c0_64, %c6, %c0_65], %91 {strides = array<i32>} : memref<1x24x16xf32, #tpu.memory_space<vmem>>, vector<1x2x16xf32>,
    %c0_66 = arith.constant 0 : index
    %c2_67 = arith.constant 2 : index
    %c0_68 = arith.constant 0 : index
    %92 = vector.load %arg10[%c0_66, %c2_67, %c0_68] : memref<1x24x16xf32, #tpu.memory_space<vmem>>, vector<1x4x16xf32>
    %93 = vector.shape_cast %92 : vector<1x4x16xf32> to vector<4x16xf32>
    %94 = vector.shape_cast %84 : vector<4x16xf32> to vector<1x4x16xf32>
    tpu.vector_store %arg10[%c0_66, %c2_67, %c0_68], %94 {strides = array<i32>} : memref<1x24x16xf32, #tpu.memory_space<vmem>>, vector<1x4x16xf32>,
    %cst_69 = arith.constant 0.000000e+00 : f32
    %95 = vector.broadcast %cst_69 : f32 to vector<4x16xf32>
    %c0_70 = arith.constant 0 : index
    %c16_71 = arith.constant 16 : index
    %c0_72 = arith.constant 0 : index
    %96 = tpu.strided_load %arg9[%c0_70, %c16_71, %c0_72] {strides = array<i32: 1, 3, 1>} : memref<1x48x8xf32, #tpu.memory_space<vmem>>, vector<1x4x8xf32>
    %97 = vector.shape_cast %96 : vector<1x4x8xf32> to vector<4x8xf32>
    %98 = arith.truncf %97 : vector<4x8xf32> to vector<4x8xbf16>
    %c0_73 = arith.constant 0 : index
    %c0_74 = arith.constant 0 : index
    %99 = vector.load %arg3[%c0_73, %c0_74] : memref<40x16xbf16, #tpu.memory_space<vmem>>, vector<8x16xbf16>
    %cst_75 = arith.constant dense<0.000000e+00> : vector<4x16xf32>
    %100 = tpu.matmul %98, %99, %cst_75 {dimension_numbers = #tpu.dot_dimension_numbers<[1], [0], [0], [1], [0, 0, 1, 1], [], []>} : vector<4x8xbf16>, vector<8x16xbf16>, vector<4x16xf32> -> vector<4x16xf32>
    %101 = arith.addf %95, %100 : vector<4x16xf32>
    %c0_76 = arith.constant 0 : index
    %c17 = arith.constant 17 : index
    %c0_77 = arith.constant 0 : index
    %102 = tpu.strided_load %arg9[%c0_76, %c17, %c0_77] {strides = array<i32: 1, 3, 1>} : memref<1x48x8xf32, #tpu.memory_space<vmem>>, vector<1x4x8xf32>
    %103 = vector.shape_cast %102 : vector<1x4x8xf32> to vector<4x8xf32>
    %104 = arith.truncf %103 : vector<4x8xf32> to vector<4x8xbf16>
    %c8_78 = arith.constant 8 : index
    %c0_79 = arith.constant 0 : index
    %105 = vector.load %arg3[%c8_78, %c0_79] : memref<40x16xbf16, #tpu.memory_space<vmem>>, vector<8x16xbf16>
    %cst_80 = arith.constant dense<0.000000e+00> : vector<4x16xf32>
    %106 = tpu.matmul %104, %105, %cst_80 {dimension_numbers = #tpu.dot_dimension_numbers<[1], [0], [0], [1], [0, 0, 1, 1], [], []>} : vector<4x8xbf16>, vector<8x16xbf16>, vector<4x16xf32> -> vector<4x16xf32>
    %107 = arith.addf %101, %106 : vector<4x16xf32>
    %c0_81 = arith.constant 0 : index
    %c18_82 = arith.constant 18 : index
    %c0_83 = arith.constant 0 : index
    %108 = tpu.strided_load %arg9[%c0_81, %c18_82, %c0_83] {strides = array<i32: 1, 3, 1>} : memref<1x48x8xf32, #tpu.memory_space<vmem>>, vector<1x4x8xf32>
    %109 = vector.shape_cast %108 : vector<1x4x8xf32> to vector<4x8xf32>
    %110 = arith.truncf %109 : vector<4x8xf32> to vector<4x8xbf16>
    %c16_84 = arith.constant 16 : index
    %c0_85 = arith.constant 0 : index
    %111 = vector.load %arg3[%c16_84, %c0_85] : memref<40x16xbf16, #tpu.memory_space<vmem>>, vector<8x16xbf16>
    %cst_86 = arith.constant dense<0.000000e+00> : vector<4x16xf32>
    %112 = tpu.matmul %110, %111, %cst_86 {dimension_numbers = #tpu.dot_dimension_numbers<[1], [0], [0], [1], [0, 0, 1, 1], [], []>} : vector<4x8xbf16>, vector<8x16xbf16>, vector<4x16xf32> -> vector<4x16xf32>
    %113 = arith.addf %107, %112 : vector<4x16xf32>
    %c0_87 = arith.constant 0 : index
    %c19 = arith.constant 19 : index
    %c0_88 = arith.constant 0 : index
    %114 = tpu.strided_load %arg9[%c0_87, %c19, %c0_88] {strides = array<i32: 1, 3, 1>} : memref<1x48x8xf32, #tpu.memory_space<vmem>>, vector<1x4x8xf32>
    %115 = vector.shape_cast %114 : vector<1x4x8xf32> to vector<4x8xf32>
    %116 = arith.truncf %115 : vector<4x8xf32> to vector<4x8xbf16>
    %c24_89 = arith.constant 24 : index
    %c0_90 = arith.constant 0 : index
    %117 = vector.load %arg3[%c24_89, %c0_90] : memref<40x16xbf16, #tpu.memory_space<vmem>>, vector<8x16xbf16>
    %cst_91 = arith.constant dense<0.000000e+00> : vector<4x16xf32>
    %118 = tpu.matmul %116, %117, %cst_91 {dimension_numbers = #tpu.dot_dimension_numbers<[1], [0], [0], [1], [0, 0, 1, 1], [], []>} : vector<4x8xbf16>, vector<8x16xbf16>, vector<4x16xf32> -> vector<4x16xf32>
    %119 = arith.addf %113, %118 : vector<4x16xf32>
    %c0_92 = arith.constant 0 : index
    %c20 = arith.constant 20 : index
    %c0_93 = arith.constant 0 : index
    %120 = tpu.strided_load %arg9[%c0_92, %c20, %c0_93] {strides = array<i32: 1, 3, 1>} : memref<1x48x8xf32, #tpu.memory_space<vmem>>, vector<1x4x8xf32>
    %121 = vector.shape_cast %120 : vector<1x4x8xf32> to vector<4x8xf32>
    %122 = arith.truncf %121 : vector<4x8xf32> to vector<4x8xbf16>
    %c32_94 = arith.constant 32 : index
    %c0_95 = arith.constant 0 : index
    %123 = vector.load %arg3[%c32_94, %c0_95] : memref<40x16xbf16, #tpu.memory_space<vmem>>, vector<8x16xbf16>
    %cst_96 = arith.constant dense<0.000000e+00> : vector<4x16xf32>
    %124 = tpu.matmul %122, %123, %cst_96 {dimension_numbers = #tpu.dot_dimension_numbers<[1], [0], [0], [1], [0, 0, 1, 1], [], []>} : vector<4x8xbf16>, vector<8x16xbf16>, vector<4x16xf32> -> vector<4x16xf32>
    %125 = arith.addf %119, %124 : vector<4x16xf32>
    %c1_97 = arith.constant 1 : index
    %c0_98 = arith.constant 0 : index
    %126 = vector.load %arg8[%c1_97, %c0_98] : memref<8x32xf32, #tpu.memory_space<vmem>>, vector<1x16xf32>
    %127 = vector.broadcast %126 : vector<1x16xf32> to vector<4x16xf32>
    %128 = arith.addf %125, %127 : vector<4x16xf32>
    %cst_99 = arith.constant 0.000000e+00 : f32
    %129 = vector.broadcast %cst_99 : f32 to vector<4x16xf32>
    %130 = arith.cmpf oge, %128, %129 : vector<4x16xf32>
    %cst_100 = arith.constant 1.000000e-01 : f32
    %131 = vector.broadcast %cst_100 : f32 to vector<4x16xf32>
    %132 = arith.mulf %131, %128 : vector<4x16xf32>
    %133 = arith.select %130, %128, %132 : vector<4x16xi1>, vector<4x16xf32>
    %cst_101 = arith.constant 0.000000e+00 : f32
    %134 = vector.broadcast %cst_101 : f32 to vector<2x16xf32>
    %c0_102 = arith.constant 0 : index
    %c8_103 = arith.constant 8 : index
    %c0_104 = arith.constant 0 : index
    %135 = vector.load %arg10[%c0_102, %c8_103, %c0_104] : memref<1x24x16xf32, #tpu.memory_space<vmem>>, vector<1x2x16xf32>
    %136 = vector.shape_cast %135 : vector<1x2x16xf32> to vector<2x16xf32>
    %137 = vector.shape_cast %134 : vector<2x16xf32> to vector<1x2x16xf32>
    tpu.vector_store %arg10[%c0_102, %c8_103, %c0_104], %137 {strides = array<i32>} : memref<1x24x16xf32, #tpu.memory_space<vmem>>, vector<1x2x16xf32>,
    %c0_105 = arith.constant 0 : index
    %c14 = arith.constant 14 : index
    %c0_106 = arith.constant 0 : index
    %138 = vector.load %arg10[%c0_105, %c14, %c0_106] : memref<1x24x16xf32, #tpu.memory_space<vmem>>, vector<1x2x16xf32>
    %139 = vector.shape_cast %138 : vector<1x2x16xf32> to vector<2x16xf32>
    %140 = vector.shape_cast %134 : vector<2x16xf32> to vector<1x2x16xf32>
    tpu.vector_store %arg10[%c0_105, %c14, %c0_106], %140 {strides = array<i32>} : memref<1x24x16xf32, #tpu.memory_space<vmem>>, vector<1x2x16xf32>,
    %c0_107 = arith.constant 0 : index
    %c10 = arith.constant 10 : index
    %c0_108 = arith.constant 0 : index
    %141 = vector.load %arg10[%c0_107, %c10, %c0_108] : memref<1x24x16xf32, #tpu.memory_space<vmem>>, vector<1x4x16xf32>
    %142 = vector.shape_cast %141 : vector<1x4x16xf32> to vector<4x16xf32>
    %143 = vector.shape_cast %133 : vector<4x16xf32> to vector<1x4x16xf32>
    tpu.vector_store %arg10[%c0_107, %c10, %c0_108], %143 {strides = array<i32>} : memref<1x24x16xf32, #tpu.memory_space<vmem>>, vector<1x4x16xf32>,
    %cst_109 = arith.constant 0.000000e+00 : f32
    %144 = vector.broadcast %cst_109 : f32 to vector<4x16xf32>
    %c0_110 = arith.constant 0 : index
    %c32_111 = arith.constant 32 : index
    %c0_112 = arith.constant 0 : index
    %145 = tpu.strided_load %arg9[%c0_110, %c32_111, %c0_112] {strides = array<i32: 1, 3, 1>} : memref<1x48x8xf32, #tpu.memory_space<vmem>>, vector<1x4x8xf32>
    %146 = vector.shape_cast %145 : vector<1x4x8xf32> to vector<4x8xf32>
    %147 = arith.truncf %146 : vector<4x8xf32> to vector<4x8xbf16>
    %c0_113 = arith.constant 0 : index
    %c0_114 = arith.constant 0 : index
    %148 = vector.load %arg3[%c0_113, %c0_114] : memref<40x16xbf16, #tpu.memory_space<vmem>>, vector<8x16xbf16>
    %cst_115 = arith.constant dense<0.000000e+00> : vector<4x16xf32>
    %149 = tpu.matmul %147, %148, %cst_115 {dimension_numbers = #tpu.dot_dimension_numbers<[1], [0], [0], [1], [0, 0, 1, 1], [], []>} : vector<4x8xbf16>, vector<8x16xbf16>, vector<4x16xf32> -> vector<4x16xf32>
    %150 = arith.addf %144, %149 : vector<4x16xf32>
    %c0_116 = arith.constant 0 : index
    %c33 = arith.constant 33 : index
    %c0_117 = arith.constant 0 : index
    %151 = tpu.strided_load %arg9[%c0_116, %c33, %c0_117] {strides = array<i32: 1, 3, 1>} : memref<1x48x8xf32, #tpu.memory_space<vmem>>, vector<1x4x8xf32>
    %152 = vector.shape_cast %151 : vector<1x4x8xf32> to vector<4x8xf32>
    %153 = arith.truncf %152 : vector<4x8xf32> to vector<4x8xbf16>
    %c8_118 = arith.constant 8 : index
    %c0_119 = arith.constant 0 : index
    %154 = vector.load %arg3[%c8_118, %c0_119] : memref<40x16xbf16, #tpu.memory_space<vmem>>, vector<8x16xbf16>
    %cst_120 = arith.constant dense<0.000000e+00> : vector<4x16xf32>
    %155 = tpu.matmul %153, %154, %cst_120 {dimension_numbers = #tpu.dot_dimension_numbers<[1], [0], [0], [1], [0, 0, 1, 1], [], []>} : vector<4x8xbf16>, vector<8x16xbf16>, vector<4x16xf32> -> vector<4x16xf32>
    %156 = arith.addf %150, %155 : vector<4x16xf32>
    %c0_121 = arith.constant 0 : index
    %c34_122 = arith.constant 34 : index
    %c0_123 = arith.constant 0 : index
    %157 = tpu.strided_load %arg9[%c0_121, %c34_122, %c0_123] {strides = array<i32: 1, 3, 1>} : memref<1x48x8xf32, #tpu.memory_space<vmem>>, vector<1x4x8xf32>
    %158 = vector.shape_cast %157 : vector<1x4x8xf32> to vector<4x8xf32>
    %159 = arith.truncf %158 : vector<4x8xf32> to vector<4x8xbf16>
    %c16_124 = arith.constant 16 : index
    %c0_125 = arith.constant 0 : index
    %160 = vector.load %arg3[%c16_124, %c0_125] : memref<40x16xbf16, #tpu.memory_space<vmem>>, vector<8x16xbf16>
    %cst_126 = arith.constant dense<0.000000e+00> : vector<4x16xf32>
    %161 = tpu.matmul %159, %160, %cst_126 {dimension_numbers = #tpu.dot_dimension_numbers<[1], [0], [0], [1], [0, 0, 1, 1], [], []>} : vector<4x8xbf16>, vector<8x16xbf16>, vector<4x16xf32> -> vector<4x16xf32>
    %162 = arith.addf %156, %161 : vector<4x16xf32>
    %c0_127 = arith.constant 0 : index
    %c35 = arith.constant 35 : index
    %c0_128 = arith.constant 0 : index
    %163 = tpu.strided_load %arg9[%c0_127, %c35, %c0_128] {strides = array<i32: 1, 3, 1>} : memref<1x48x8xf32, #tpu.memory_space<vmem>>, vector<1x4x8xf32>
    %164 = vector.shape_cast %163 : vector<1x4x8xf32> to vector<4x8xf32>
    %165 = arith.truncf %164 : vector<4x8xf32> to vector<4x8xbf16>
    %c24_129 = arith.constant 24 : index
    %c0_130 = arith.constant 0 : index
    %166 = vector.load %arg3[%c24_129, %c0_130] : memref<40x16xbf16, #tpu.memory_space<vmem>>, vector<8x16xbf16>
    %cst_131 = arith.constant dense<0.000000e+00> : vector<4x16xf32>
    %167 = tpu.matmul %165, %166, %cst_131 {dimension_numbers = #tpu.dot_dimension_numbers<[1], [0], [0], [1], [0, 0, 1, 1], [], []>} : vector<4x8xbf16>, vector<8x16xbf16>, vector<4x16xf32> -> vector<4x16xf32>
    %168 = arith.addf %162, %167 : vector<4x16xf32>
    %c0_132 = arith.constant 0 : index
    %c36 = arith.constant 36 : index
    %c0_133 = arith.constant 0 : index
    %169 = tpu.strided_load %arg9[%c0_132, %c36, %c0_133] {strides = array<i32: 1, 3, 1>} : memref<1x48x8xf32, #tpu.memory_space<vmem>>, vector<1x4x8xf32>
    %170 = vector.shape_cast %169 : vector<1x4x8xf32> to vector<4x8xf32>
    %171 = arith.truncf %170 : vector<4x8xf32> to vector<4x8xbf16>
    %c32_134 = arith.constant 32 : index
    %c0_135 = arith.constant 0 : index
    %172 = vector.load %arg3[%c32_134, %c0_135] : memref<40x16xbf16, #tpu.memory_space<vmem>>, vector<8x16xbf16>
    %cst_136 = arith.constant dense<0.000000e+00> : vector<4x16xf32>
    %173 = tpu.matmul %171, %172, %cst_136 {dimension_numbers = #tpu.dot_dimension_numbers<[1], [0], [0], [1], [0, 0, 1, 1], [], []>} : vector<4x8xbf16>, vector<8x16xbf16>, vector<4x16xf32> -> vector<4x16xf32>
    %174 = arith.addf %168, %173 : vector<4x16xf32>
    %c1_137 = arith.constant 1 : index
    %c0_138 = arith.constant 0 : index
    %175 = vector.load %arg8[%c1_137, %c0_138] : memref<8x32xf32, #tpu.memory_space<vmem>>, vector<1x16xf32>
    %176 = vector.broadcast %175 : vector<1x16xf32> to vector<4x16xf32>
    %177 = arith.addf %174, %176 : vector<4x16xf32>
    %cst_139 = arith.constant 0.000000e+00 : f32
    %178 = vector.broadcast %cst_139 : f32 to vector<4x16xf32>
    %179 = arith.cmpf oge, %177, %178 : vector<4x16xf32>
    %cst_140 = arith.constant 1.000000e-01 : f32
    %180 = vector.broadcast %cst_140 : f32 to vector<4x16xf32>
    %181 = arith.mulf %180, %177 : vector<4x16xf32>
    %182 = arith.select %179, %177, %181 : vector<4x16xi1>, vector<4x16xf32>
    %cst_141 = arith.constant 0.000000e+00 : f32
    %183 = vector.broadcast %cst_141 : f32 to vector<2x16xf32>
    %c0_142 = arith.constant 0 : index
    %c16_143 = arith.constant 16 : index
    %c0_144 = arith.constant 0 : index
    %184 = vector.load %arg10[%c0_142, %c16_143, %c0_144] : memref<1x24x16xf32, #tpu.memory_space<vmem>>, vector<1x2x16xf32>
    %185 = vector.shape_cast %184 : vector<1x2x16xf32> to vector<2x16xf32>
    %186 = vector.shape_cast %183 : vector<2x16xf32> to vector<1x2x16xf32>
    tpu.vector_store %arg10[%c0_142, %c16_143, %c0_144], %186 {strides = array<i32>} : memref<1x24x16xf32, #tpu.memory_space<vmem>>, vector<1x2x16xf32>,
    %c0_145 = arith.constant 0 : index
    %c22 = arith.constant 22 : index
    %c0_146 = arith.constant 0 : index
    %187 = vector.load %arg10[%c0_145, %c22, %c0_146] : memref<1x24x16xf32, #tpu.memory_space<vmem>>, vector<1x2x16xf32>
    %188 = vector.shape_cast %187 : vector<1x2x16xf32> to vector<2x16xf32>
    %189 = vector.shape_cast %183 : vector<2x16xf32> to vector<1x2x16xf32>
    tpu.vector_store %arg10[%c0_145, %c22, %c0_146], %189 {strides = array<i32>} : memref<1x24x16xf32, #tpu.memory_space<vmem>>, vector<1x2x16xf32>,
    %c0_147 = arith.constant 0 : index
    %c18_148 = arith.constant 18 : index
    %c0_149 = arith.constant 0 : index
    %190 = vector.load %arg10[%c0_147, %c18_148, %c0_149] : memref<1x24x16xf32, #tpu.memory_space<vmem>>, vector<1x4x16xf32>
    %191 = vector.shape_cast %190 : vector<1x4x16xf32> to vector<4x16xf32>
    %192 = vector.shape_cast %182 : vector<4x16xf32> to vector<1x4x16xf32>
    tpu.vector_store %arg10[%c0_147, %c18_148, %c0_149], %192 {strides = array<i32>} : memref<1x24x16xf32, #tpu.memory_space<vmem>>, vector<1x4x16xf32>,
    %cst_150 = arith.constant 0.000000e+00 : f32
    %193 = vector.broadcast %cst_150 : f32 to vector<2x32xf32>
    %c0_151 = arith.constant 0 : index
    %c0_152 = arith.constant 0 : index
    %c0_153 = arith.constant 0 : index
    %194 = tpu.strided_load %arg10[%c0_151, %c0_152, %c0_153] {strides = array<i32: 1, 3, 1>} : memref<1x24x16xf32, #tpu.memory_space<vmem>>, vector<1x2x16xf32>
    %195 = vector.shape_cast %194 : vector<1x2x16xf32> to vector<2x16xf32>
    %196 = arith.truncf %195 : vector<2x16xf32> to vector<2x16xbf16>
    %c0_154 = arith.constant 0 : index
    %c0_155 = arith.constant 0 : index
    %197 = vector.load %arg4[%c0_154, %c0_155] : memref<80x32xbf16, #tpu.memory_space<vmem>>, vector<16x32xbf16>
    %cst_156 = arith.constant dense<0.000000e+00> : vector<2x32xf32>
    %198 = tpu.matmul %196, %197, %cst_156 {dimension_numbers = #tpu.dot_dimension_numbers<[1], [0], [0], [1], [0, 0, 1, 1], [], []>} : vector<2x16xbf16>, vector<16x32xbf16>, vector<2x32xf32> -> vector<2x32xf32>
    %199 = arith.addf %193, %198 : vector<2x32xf32>
    %c0_157 = arith.constant 0 : index
    %c1_158 = arith.constant 1 : index
    %c0_159 = arith.constant 0 : index
    %200 = tpu.strided_load %arg10[%c0_157, %c1_158, %c0_159] {strides = array<i32: 1, 3, 1>} : memref<1x24x16xf32, #tpu.memory_space<vmem>>, vector<1x2x16xf32>
    %201 = vector.shape_cast %200 : vector<1x2x16xf32> to vector<2x16xf32>
    %202 = arith.truncf %201 : vector<2x16xf32> to vector<2x16xbf16>
    %c16_160 = arith.constant 16 : index
    %c0_161 = arith.constant 0 : index
    %203 = vector.load %arg4[%c16_160, %c0_161] : memref<80x32xbf16, #tpu.memory_space<vmem>>, vector<16x32xbf16>
    %cst_162 = arith.constant dense<0.000000e+00> : vector<2x32xf32>
    %204 = tpu.matmul %202, %203, %cst_162 {dimension_numbers = #tpu.dot_dimension_numbers<[1], [0], [0], [1], [0, 0, 1, 1], [], []>} : vector<2x16xbf16>, vector<16x32xbf16>, vector<2x32xf32> -> vector<2x32xf32>
    %205 = arith.addf %199, %204 : vector<2x32xf32>
    %c0_163 = arith.constant 0 : index
    %c2_164 = arith.constant 2 : index
    %c0_165 = arith.constant 0 : index
    %206 = tpu.strided_load %arg10[%c0_163, %c2_164, %c0_165] {strides = array<i32: 1, 3, 1>} : memref<1x24x16xf32, #tpu.memory_space<vmem>>, vector<1x2x16xf32>
    %207 = vector.shape_cast %206 : vector<1x2x16xf32> to vector<2x16xf32>
    %208 = arith.truncf %207 : vector<2x16xf32> to vector<2x16xbf16>
    %c32_166 = arith.constant 32 : index
    %c0_167 = arith.constant 0 : index
    %209 = vector.load %arg4[%c32_166, %c0_167] : memref<80x32xbf16, #tpu.memory_space<vmem>>, vector<16x32xbf16>
    %cst_168 = arith.constant dense<0.000000e+00> : vector<2x32xf32>
    %210 = tpu.matmul %208, %209, %cst_168 {dimension_numbers = #tpu.dot_dimension_numbers<[1], [0], [0], [1], [0, 0, 1, 1], [], []>} : vector<2x16xbf16>, vector<16x32xbf16>, vector<2x32xf32> -> vector<2x32xf32>
    %211 = arith.addf %205, %210 : vector<2x32xf32>
    %c0_169 = arith.constant 0 : index
    %c3_170 = arith.constant 3 : index
    %c0_171 = arith.constant 0 : index
    %212 = tpu.strided_load %arg10[%c0_169, %c3_170, %c0_171] {strides = array<i32: 1, 3, 1>} : memref<1x24x16xf32, #tpu.memory_space<vmem>>, vector<1x2x16xf32>
    %213 = vector.shape_cast %212 : vector<1x2x16xf32> to vector<2x16xf32>
    %214 = arith.truncf %213 : vector<2x16xf32> to vector<2x16xbf16>
    %c48 = arith.constant 48 : index
    %c0_172 = arith.constant 0 : index
    %215 = vector.load %arg4[%c48, %c0_172] : memref<80x32xbf16, #tpu.memory_space<vmem>>, vector<16x32xbf16>
    %cst_173 = arith.constant dense<0.000000e+00> : vector<2x32xf32>
    %216 = tpu.matmul %214, %215, %cst_173 {dimension_numbers = #tpu.dot_dimension_numbers<[1], [0], [0], [1], [0, 0, 1, 1], [], []>} : vector<2x16xbf16>, vector<16x32xbf16>, vector<2x32xf32> -> vector<2x32xf32>
    %217 = arith.addf %211, %216 : vector<2x32xf32>
    %c0_174 = arith.constant 0 : index
    %c4_175 = arith.constant 4 : index
    %c0_176 = arith.constant 0 : index
    %218 = tpu.strided_load %arg10[%c0_174, %c4_175, %c0_176] {strides = array<i32: 1, 3, 1>} : memref<1x24x16xf32, #tpu.memory_space<vmem>>, vector<1x2x16xf32>
    %219 = vector.shape_cast %218 : vector<1x2x16xf32> to vector<2x16xf32>
    %220 = arith.truncf %219 : vector<2x16xf32> to vector<2x16xbf16>
    %c64 = arith.constant 64 : index
    %c0_177 = arith.constant 0 : index
    %221 = vector.load %arg4[%c64, %c0_177] : memref<80x32xbf16, #tpu.memory_space<vmem>>, vector<16x32xbf16>
    %cst_178 = arith.constant dense<0.000000e+00> : vector<2x32xf32>
    %222 = tpu.matmul %220, %221, %cst_178 {dimension_numbers = #tpu.dot_dimension_numbers<[1], [0], [0], [1], [0, 0, 1, 1], [], []>} : vector<2x16xbf16>, vector<16x32xbf16>, vector<2x32xf32> -> vector<2x32xf32>
    %223 = arith.addf %217, %222 : vector<2x32xf32>
    %c2_179 = arith.constant 2 : index
    %c0_180 = arith.constant 0 : index
    %224 = vector.load %arg8[%c2_179, %c0_180] : memref<8x32xf32, #tpu.memory_space<vmem>>, vector<1x32xf32>
    %225 = vector.broadcast %224 : vector<1x32xf32> to vector<2x32xf32>
    %226 = arith.addf %223, %225 : vector<2x32xf32>
    %cst_181 = arith.constant 0.000000e+00 : f32
    %227 = vector.broadcast %cst_181 : f32 to vector<2x32xf32>
    %228 = arith.cmpf oge, %226, %227 : vector<2x32xf32>
    %cst_182 = arith.constant 1.000000e-01 : f32
    %229 = vector.broadcast %cst_182 : f32 to vector<2x32xf32>
    %230 = arith.mulf %229, %226 : vector<2x32xf32>
    %231 = arith.select %228, %226, %230 : vector<2x32xi1>, vector<2x32xf32>
    %cst_183 = arith.constant 0.000000e+00 : f32
    %232 = vector.broadcast %cst_183 : f32 to vector<2x32xf32>
    %c0_184 = arith.constant 0 : index
    %c0_185 = arith.constant 0 : index
    %c0_186 = arith.constant 0 : index
    %233 = vector.load %arg11[%c0_184, %c0_185, %c0_186] : memref<1x24x32xf32, #tpu.memory_space<vmem>>, vector<1x2x32xf32>
    %234 = vector.shape_cast %233 : vector<1x2x32xf32> to vector<2x32xf32>
    %235 = vector.shape_cast %232 : vector<2x32xf32> to vector<1x2x32xf32>
    tpu.vector_store %arg11[%c0_184, %c0_185, %c0_186], %235 {strides = array<i32>} : memref<1x24x32xf32, #tpu.memory_space<vmem>>, vector<1x2x32xf32>,
    %c0_187 = arith.constant 0 : index
    %c4_188 = arith.constant 4 : index
    %c0_189 = arith.constant 0 : index
    %236 = vector.load %arg11[%c0_187, %c4_188, %c0_189] : memref<1x24x32xf32, #tpu.memory_space<vmem>>, vector<1x2x32xf32>
    %237 = vector.shape_cast %236 : vector<1x2x32xf32> to vector<2x32xf32>
    %238 = vector.shape_cast %232 : vector<2x32xf32> to vector<1x2x32xf32>
    tpu.vector_store %arg11[%c0_187, %c4_188, %c0_189], %238 {strides = array<i32>} : memref<1x24x32xf32, #tpu.memory_space<vmem>>, vector<1x2x32xf32>,
    %c0_190 = arith.constant 0 : index
    %c2_191 = arith.constant 2 : index
    %c0_192 = arith.constant 0 : index
    %239 = vector.load %arg11[%c0_190, %c2_191, %c0_192] : memref<1x24x32xf32, #tpu.memory_space<vmem>>, vector<1x2x32xf32>
    %240 = vector.shape_cast %239 : vector<1x2x32xf32> to vector<2x32xf32>
    %241 = vector.shape_cast %231 : vector<2x32xf32> to vector<1x2x32xf32>
    tpu.vector_store %arg11[%c0_190, %c2_191, %c0_192], %241 {strides = array<i32>} : memref<1x24x32xf32, #tpu.memory_space<vmem>>, vector<1x2x32xf32>,
    %cst_193 = arith.constant 0.000000e+00 : f32
    %242 = vector.broadcast %cst_193 : f32 to vector<2x32xf32>
    %c0_194 = arith.constant 0 : index
    %c8_195 = arith.constant 8 : index
    %c0_196 = arith.constant 0 : index
    %243 = tpu.strided_load %arg10[%c0_194, %c8_195, %c0_196] {strides = array<i32: 1, 3, 1>} : memref<1x24x16xf32, #tpu.memory_space<vmem>>, vector<1x2x16xf32>
    %244 = vector.shape_cast %243 : vector<1x2x16xf32> to vector<2x16xf32>
    %245 = arith.truncf %244 : vector<2x16xf32> to vector<2x16xbf16>
    %c0_197 = arith.constant 0 : index
    %c0_198 = arith.constant 0 : index
    %246 = vector.load %arg4[%c0_197, %c0_198] : memref<80x32xbf16, #tpu.memory_space<vmem>>, vector<16x32xbf16>
    %cst_199 = arith.constant dense<0.000000e+00> : vector<2x32xf32>
    %247 = tpu.matmul %245, %246, %cst_199 {dimension_numbers = #tpu.dot_dimension_numbers<[1], [0], [0], [1], [0, 0, 1, 1], [], []>} : vector<2x16xbf16>, vector<16x32xbf16>, vector<2x32xf32> -> vector<2x32xf32>
    %248 = arith.addf %242, %247 : vector<2x32xf32>
    %c0_200 = arith.constant 0 : index
    %c9 = arith.constant 9 : index
    %c0_201 = arith.constant 0 : index
    %249 = tpu.strided_load %arg10[%c0_200, %c9, %c0_201] {strides = array<i32: 1, 3, 1>} : memref<1x24x16xf32, #tpu.memory_space<vmem>>, vector<1x2x16xf32>
    %250 = vector.shape_cast %249 : vector<1x2x16xf32> to vector<2x16xf32>
    %251 = arith.truncf %250 : vector<2x16xf32> to vector<2x16xbf16>
    %c16_202 = arith.constant 16 : index
    %c0_203 = arith.constant 0 : index
    %252 = vector.load %arg4[%c16_202, %c0_203] : memref<80x32xbf16, #tpu.memory_space<vmem>>, vector<16x32xbf16>
    %cst_204 = arith.constant dense<0.000000e+00> : vector<2x32xf32>
    %253 = tpu.matmul %251, %252, %cst_204 {dimension_numbers = #tpu.dot_dimension_numbers<[1], [0], [0], [1], [0, 0, 1, 1], [], []>} : vector<2x16xbf16>, vector<16x32xbf16>, vector<2x32xf32> -> vector<2x32xf32>
    %254 = arith.addf %248, %253 : vector<2x32xf32>
    %c0_205 = arith.constant 0 : index
    %c10_206 = arith.constant 10 : index
    %c0_207 = arith.constant 0 : index
    %255 = tpu.strided_load %arg10[%c0_205, %c10_206, %c0_207] {strides = array<i32: 1, 3, 1>} : memref<1x24x16xf32, #tpu.memory_space<vmem>>, vector<1x2x16xf32>
    %256 = vector.shape_cast %255 : vector<1x2x16xf32> to vector<2x16xf32>
    %257 = arith.truncf %256 : vector<2x16xf32> to vector<2x16xbf16>
    %c32_208 = arith.constant 32 : index
    %c0_209 = arith.constant 0 : index
    %258 = vector.load %arg4[%c32_208, %c0_209] : memref<80x32xbf16, #tpu.memory_space<vmem>>, vector<16x32xbf16>
    %cst_210 = arith.constant dense<0.000000e+00> : vector<2x32xf32>
    %259 = tpu.matmul %257, %258, %cst_210 {dimension_numbers = #tpu.dot_dimension_numbers<[1], [0], [0], [1], [0, 0, 1, 1], [], []>} : vector<2x16xbf16>, vector<16x32xbf16>, vector<2x32xf32> -> vector<2x32xf32>
    %260 = arith.addf %254, %259 : vector<2x32xf32>
    %c0_211 = arith.constant 0 : index
    %c11 = arith.constant 11 : index
    %c0_212 = arith.constant 0 : index
    %261 = tpu.strided_load %arg10[%c0_211, %c11, %c0_212] {strides = array<i32: 1, 3, 1>} : memref<1x24x16xf32, #tpu.memory_space<vmem>>, vector<1x2x16xf32>
    %262 = vector.shape_cast %261 : vector<1x2x16xf32> to vector<2x16xf32>
    %263 = arith.truncf %262 : vector<2x16xf32> to vector<2x16xbf16>
    %c48_213 = arith.constant 48 : index
    %c0_214 = arith.constant 0 : index
    %264 = vector.load %arg4[%c48_213, %c0_214] : memref<80x32xbf16, #tpu.memory_space<vmem>>, vector<16x32xbf16>
    %cst_215 = arith.constant dense<0.000000e+00> : vector<2x32xf32>
    %265 = tpu.matmul %263, %264, %cst_215 {dimension_numbers = #tpu.dot_dimension_numbers<[1], [0], [0], [1], [0, 0, 1, 1], [], []>} : vector<2x16xbf16>, vector<16x32xbf16>, vector<2x32xf32> -> vector<2x32xf32>
    %266 = arith.addf %260, %265 : vector<2x32xf32>
    %c0_216 = arith.constant 0 : index
    %c12 = arith.constant 12 : index
    %c0_217 = arith.constant 0 : index
    %267 = tpu.strided_load %arg10[%c0_216, %c12, %c0_217] {strides = array<i32: 1, 3, 1>} : memref<1x24x16xf32, #tpu.memory_space<vmem>>, vector<1x2x16xf32>
    %268 = vector.shape_cast %267 : vector<1x2x16xf32> to vector<2x16xf32>
    %269 = arith.truncf %268 : vector<2x16xf32> to vector<2x16xbf16>
    %c64_218 = arith.constant 64 : index
    %c0_219 = arith.constant 0 : index
    %270 = vector.load %arg4[%c64_218, %c0_219] : memref<80x32xbf16, #tpu.memory_space<vmem>>, vector<16x32xbf16>
    %cst_220 = arith.constant dense<0.000000e+00> : vector<2x32xf32>
    %271 = tpu.matmul %269, %270, %cst_220 {dimension_numbers = #tpu.dot_dimension_numbers<[1], [0], [0], [1], [0, 0, 1, 1], [], []>} : vector<2x16xbf16>, vector<16x32xbf16>, vector<2x32xf32> -> vector<2x32xf32>
    %272 = arith.addf %266, %271 : vector<2x32xf32>
    %c2_221 = arith.constant 2 : index
    %c0_222 = arith.constant 0 : index
    %273 = vector.load %arg8[%c2_221, %c0_222] : memref<8x32xf32, #tpu.memory_space<vmem>>, vector<1x32xf32>
    %274 = vector.broadcast %273 : vector<1x32xf32> to vector<2x32xf32>
    %275 = arith.addf %272, %274 : vector<2x32xf32>
    %cst_223 = arith.constant 0.000000e+00 : f32
    %276 = vector.broadcast %cst_223 : f32 to vector<2x32xf32>
    %277 = arith.cmpf oge, %275, %276 : vector<2x32xf32>
    %cst_224 = arith.constant 1.000000e-01 : f32
    %278 = vector.broadcast %cst_224 : f32 to vector<2x32xf32>
    %279 = arith.mulf %278, %275 : vector<2x32xf32>
    %280 = arith.select %277, %275, %279 : vector<2x32xi1>, vector<2x32xf32>
    %cst_225 = arith.constant 0.000000e+00 : f32
    %281 = vector.broadcast %cst_225 : f32 to vector<2x32xf32>
    %c0_226 = arith.constant 0 : index
    %c8_227 = arith.constant 8 : index
    %c0_228 = arith.constant 0 : index
    %282 = vector.load %arg11[%c0_226, %c8_227, %c0_228] : memref<1x24x32xf32, #tpu.memory_space<vmem>>, vector<1x2x32xf32>
    %283 = vector.shape_cast %282 : vector<1x2x32xf32> to vector<2x32xf32>
    %284 = vector.shape_cast %281 : vector<2x32xf32> to vector<1x2x32xf32>
    tpu.vector_store %arg11[%c0_226, %c8_227, %c0_228], %284 {strides = array<i32>} : memref<1x24x32xf32, #tpu.memory_space<vmem>>, vector<1x2x32xf32>,
    %c0_229 = arith.constant 0 : index
    %c12_230 = arith.constant 12 : index
    %c0_231 = arith.constant 0 : index
    %285 = vector.load %arg11[%c0_229, %c12_230, %c0_231] : memref<1x24x32xf32, #tpu.memory_space<vmem>>, vector<1x2x32xf32>
    %286 = vector.shape_cast %285 : vector<1x2x32xf32> to vector<2x32xf32>
    %287 = vector.shape_cast %281 : vector<2x32xf32> to vector<1x2x32xf32>
    tpu.vector_store %arg11[%c0_229, %c12_230, %c0_231], %287 {strides = array<i32>} : memref<1x24x32xf32, #tpu.memory_space<vmem>>, vector<1x2x32xf32>,
    %c0_232 = arith.constant 0 : index
    %c10_233 = arith.constant 10 : index
    %c0_234 = arith.constant 0 : index
    %288 = vector.load %arg11[%c0_232, %c10_233, %c0_234] : memref<1x24x32xf32, #tpu.memory_space<vmem>>, vector<1x2x32xf32>
    %289 = vector.shape_cast %288 : vector<1x2x32xf32> to vector<2x32xf32>
    %290 = vector.shape_cast %280 : vector<2x32xf32> to vector<1x2x32xf32>
    tpu.vector_store %arg11[%c0_232, %c10_233, %c0_234], %290 {strides = array<i32>} : memref<1x24x32xf32, #tpu.memory_space<vmem>>, vector<1x2x32xf32>,
    %cst_235 = arith.constant 0.000000e+00 : f32
    %291 = vector.broadcast %cst_235 : f32 to vector<2x32xf32>
    %c0_236 = arith.constant 0 : index
    %c16_237 = arith.constant 16 : index
    %c0_238 = arith.constant 0 : index
    %292 = tpu.strided_load %arg10[%c0_236, %c16_237, %c0_238] {strides = array<i32: 1, 3, 1>} : memref<1x24x16xf32, #tpu.memory_space<vmem>>, vector<1x2x16xf32>
    %293 = vector.shape_cast %292 : vector<1x2x16xf32> to vector<2x16xf32>
    %294 = arith.truncf %293 : vector<2x16xf32> to vector<2x16xbf16>
    %c0_239 = arith.constant 0 : index
    %c0_240 = arith.constant 0 : index
    %295 = vector.load %arg4[%c0_239, %c0_240] : memref<80x32xbf16, #tpu.memory_space<vmem>>, vector<16x32xbf16>
    %cst_241 = arith.constant dense<0.000000e+00> : vector<2x32xf32>
    %296 = tpu.matmul %294, %295, %cst_241 {dimension_numbers = #tpu.dot_dimension_numbers<[1], [0], [0], [1], [0, 0, 1, 1], [], []>} : vector<2x16xbf16>, vector<16x32xbf16>, vector<2x32xf32> -> vector<2x32xf32>
    %297 = arith.addf %291, %296 : vector<2x32xf32>
    %c0_242 = arith.constant 0 : index
    %c17_243 = arith.constant 17 : index
    %c0_244 = arith.constant 0 : index
    %298 = tpu.strided_load %arg10[%c0_242, %c17_243, %c0_244] {strides = array<i32: 1, 3, 1>} : memref<1x24x16xf32, #tpu.memory_space<vmem>>, vector<1x2x16xf32>
    %299 = vector.shape_cast %298 : vector<1x2x16xf32> to vector<2x16xf32>
    %300 = arith.truncf %299 : vector<2x16xf32> to vector<2x16xbf16>
    %c16_245 = arith.constant 16 : index
    %c0_246 = arith.constant 0 : index
    %301 = vector.load %arg4[%c16_245, %c0_246] : memref<80x32xbf16, #tpu.memory_space<vmem>>, vector<16x32xbf16>
    %cst_247 = arith.constant dense<0.000000e+00> : vector<2x32xf32>
    %302 = tpu.matmul %300, %301, %cst_247 {dimension_numbers = #tpu.dot_dimension_numbers<[1], [0], [0], [1], [0, 0, 1, 1], [], []>} : vector<2x16xbf16>, vector<16x32xbf16>, vector<2x32xf32> -> vector<2x32xf32>
    %303 = arith.addf %297, %302 : vector<2x32xf32>
    %c0_248 = arith.constant 0 : index
    %c18_249 = arith.constant 18 : index
    %c0_250 = arith.constant 0 : index
    %304 = tpu.strided_load %arg10[%c0_248, %c18_249, %c0_250] {strides = array<i32: 1, 3, 1>} : memref<1x24x16xf32, #tpu.memory_space<vmem>>, vector<1x2x16xf32>
    %305 = vector.shape_cast %304 : vector<1x2x16xf32> to vector<2x16xf32>
    %306 = arith.truncf %305 : vector<2x16xf32> to vector<2x16xbf16>
    %c32_251 = arith.constant 32 : index
    %c0_252 = arith.constant 0 : index
    %307 = vector.load %arg4[%c32_251, %c0_252] : memref<80x32xbf16, #tpu.memory_space<vmem>>, vector<16x32xbf16>
    %cst_253 = arith.constant dense<0.000000e+00> : vector<2x32xf32>
    %308 = tpu.matmul %306, %307, %cst_253 {dimension_numbers = #tpu.dot_dimension_numbers<[1], [0], [0], [1], [0, 0, 1, 1], [], []>} : vector<2x16xbf16>, vector<16x32xbf16>, vector<2x32xf32> -> vector<2x32xf32>
    %309 = arith.addf %303, %308 : vector<2x32xf32>
    %c0_254 = arith.constant 0 : index
    %c19_255 = arith.constant 19 : index
    %c0_256 = arith.constant 0 : index
    %310 = tpu.strided_load %arg10[%c0_254, %c19_255, %c0_256] {strides = array<i32: 1, 3, 1>} : memref<1x24x16xf32, #tpu.memory_space<vmem>>, vector<1x2x16xf32>
    %311 = vector.shape_cast %310 : vector<1x2x16xf32> to vector<2x16xf32>
    %312 = arith.truncf %311 : vector<2x16xf32> to vector<2x16xbf16>
    %c48_257 = arith.constant 48 : index
    %c0_258 = arith.constant 0 : index
    %313 = vector.load %arg4[%c48_257, %c0_258] : memref<80x32xbf16, #tpu.memory_space<vmem>>, vector<16x32xbf16>
    %cst_259 = arith.constant dense<0.000000e+00> : vector<2x32xf32>
    %314 = tpu.matmul %312, %313, %cst_259 {dimension_numbers = #tpu.dot_dimension_numbers<[1], [0], [0], [1], [0, 0, 1, 1], [], []>} : vector<2x16xbf16>, vector<16x32xbf16>, vector<2x32xf32> -> vector<2x32xf32>
    %315 = arith.addf %309, %314 : vector<2x32xf32>
    %c0_260 = arith.constant 0 : index
    %c20_261 = arith.constant 20 : index
    %c0_262 = arith.constant 0 : index
    %316 = tpu.strided_load %arg10[%c0_260, %c20_261, %c0_262] {strides = array<i32: 1, 3, 1>} : memref<1x24x16xf32, #tpu.memory_space<vmem>>, vector<1x2x16xf32>
    %317 = vector.shape_cast %316 : vector<1x2x16xf32> to vector<2x16xf32>
    %318 = arith.truncf %317 : vector<2x16xf32> to vector<2x16xbf16>
    %c64_263 = arith.constant 64 : index
    %c0_264 = arith.constant 0 : index
    %319 = vector.load %arg4[%c64_263, %c0_264] : memref<80x32xbf16, #tpu.memory_space<vmem>>, vector<16x32xbf16>
    %cst_265 = arith.constant dense<0.000000e+00> : vector<2x32xf32>
    %320 = tpu.matmul %318, %319, %cst_265 {dimension_numbers = #tpu.dot_dimension_numbers<[1], [0], [0], [1], [0, 0, 1, 1], [], []>} : vector<2x16xbf16>, vector<16x32xbf16>, vector<2x32xf32> -> vector<2x32xf32>
    %321 = arith.addf %315, %320 : vector<2x32xf32>
    %c2_266 = arith.constant 2 : index
    %c0_267 = arith.constant 0 : index
    %322 = vector.load %arg8[%c2_266, %c0_267] : memref<8x32xf32, #tpu.memory_space<vmem>>, vector<1x32xf32>
    %323 = vector.broadcast %322 : vector<1x32xf32> to vector<2x32xf32>
    %324 = arith.addf %321, %323 : vector<2x32xf32>
    %cst_268 = arith.constant 0.000000e+00 : f32
    %325 = vector.broadcast %cst_268 : f32 to vector<2x32xf32>
    %326 = arith.cmpf oge, %324, %325 : vector<2x32xf32>
    %cst_269 = arith.constant 1.000000e-01 : f32
    %327 = vector.broadcast %cst_269 : f32 to vector<2x32xf32>
    %328 = arith.mulf %327, %324 : vector<2x32xf32>
    %329 = arith.select %326, %324, %328 : vector<2x32xi1>, vector<2x32xf32>
    %cst_270 = arith.constant 0.000000e+00 : f32
    %330 = vector.broadcast %cst_270 : f32 to vector<2x32xf32>
    %c0_271 = arith.constant 0 : index
    %c16_272 = arith.constant 16 : index
    %c0_273 = arith.constant 0 : index
    %331 = vector.load %arg11[%c0_271, %c16_272, %c0_273] : memref<1x24x32xf32, #tpu.memory_space<vmem>>, vector<1x2x32xf32>
    %332 = vector.shape_cast %331 : vector<1x2x32xf32> to vector<2x32xf32>
    %333 = vector.shape_cast %330 : vector<2x32xf32> to vector<1x2x32xf32>
    tpu.vector_store %arg11[%c0_271, %c16_272, %c0_273], %333 {strides = array<i32>} : memref<1x24x32xf32, #tpu.memory_space<vmem>>, vector<1x2x32xf32>,
    %c0_274 = arith.constant 0 : index
    %c20_275 = arith.constant 20 : index
    %c0_276 = arith.constant 0 : index
    %334 = vector.load %arg11[%c0_274, %c20_275, %c0_276] : memref<1x24x32xf32, #tpu.memory_space<vmem>>, vector<1x2x32xf32>
    %335 = vector.shape_cast %334 : vector<1x2x32xf32> to vector<2x32xf32>
    %336 = vector.shape_cast %330 : vector<2x32xf32> to vector<1x2x32xf32>
    tpu.vector_store %arg11[%c0_274, %c20_275, %c0_276], %336 {strides = array<i32>} : memref<1x24x32xf32, #tpu.memory_space<vmem>>, vector<1x2x32xf32>,
    %c0_277 = arith.constant 0 : index
    %c18_278 = arith.constant 18 : index
    %c0_279 = arith.constant 0 : index
    %337 = vector.load %arg11[%c0_277, %c18_278, %c0_279] : memref<1x24x32xf32, #tpu.memory_space<vmem>>, vector<1x2x32xf32>
    %338 = vector.shape_cast %337 : vector<1x2x32xf32> to vector<2x32xf32>
    %339 = vector.shape_cast %329 : vector<2x32xf32> to vector<1x2x32xf32>
    tpu.vector_store %arg11[%c0_277, %c18_278, %c0_279], %339 {strides = array<i32>} : memref<1x24x32xf32, #tpu.memory_space<vmem>>, vector<1x2x32xf32>,
    %cst_280 = arith.constant 0.000000e+00 : f32
    %340 = vector.broadcast %cst_280 : f32 to vector<1x32xf32>
    %c0_281 = arith.constant 0 : index
    %c0_282 = arith.constant 0 : index
    %c0_283 = arith.constant 0 : index
    %341 = vector.load %arg11[%c0_281, %c0_282, %c0_283] : memref<1x24x32xf32, #tpu.memory_space<vmem>>, vector<1x1x32xf32>
    %342 = vector.shape_cast %341 : vector<1x1x32xf32> to vector<1x32xf32>
    %343 = arith.truncf %342 : vector<1x32xf32> to vector<1x32xbf16>
    %c0_284 = arith.constant 0 : index
    %c0_285 = arith.constant 0 : index
    %344 = vector.load %arg5[%c0_284, %c0_285] : memref<160x32xbf16, #tpu.memory_space<vmem>>, vector<32x32xbf16>
    %cst_286 = arith.constant dense<0.000000e+00> : vector<1x32xf32>
    %345 = tpu.matmul %343, %344, %cst_286 {dimension_numbers = #tpu.dot_dimension_numbers<[1], [0], [0], [1], [0, 0, 1, 1], [], []>} : vector<1x32xbf16>, vector<32x32xbf16>, vector<1x32xf32> -> vector<1x32xf32>
    %346 = arith.addf %340, %345 : vector<1x32xf32>
    %c0_287 = arith.constant 0 : index
    %c1_288 = arith.constant 1 : index
    %c0_289 = arith.constant 0 : index
    %347 = vector.load %arg11[%c0_287, %c1_288, %c0_289] : memref<1x24x32xf32, #tpu.memory_space<vmem>>, vector<1x1x32xf32>
    %348 = vector.shape_cast %347 : vector<1x1x32xf32> to vector<1x32xf32>
    %349 = arith.truncf %348 : vector<1x32xf32> to vector<1x32xbf16>
    %c32_290 = arith.constant 32 : index
    %c0_291 = arith.constant 0 : index
    %350 = vector.load %arg5[%c32_290, %c0_291] : memref<160x32xbf16, #tpu.memory_space<vmem>>, vector<32x32xbf16>
    %cst_292 = arith.constant dense<0.000000e+00> : vector<1x32xf32>
    %351 = tpu.matmul %349, %350, %cst_292 {dimension_numbers = #tpu.dot_dimension_numbers<[1], [0], [0], [1], [0, 0, 1, 1], [], []>} : vector<1x32xbf16>, vector<32x32xbf16>, vector<1x32xf32> -> vector<1x32xf32>
    %352 = arith.addf %346, %351 : vector<1x32xf32>
    %c0_293 = arith.constant 0 : index
    %c2_294 = arith.constant 2 : index
    %c0_295 = arith.constant 0 : index
    %353 = vector.load %arg11[%c0_293, %c2_294, %c0_295] : memref<1x24x32xf32, #tpu.memory_space<vmem>>, vector<1x1x32xf32>
    %354 = vector.shape_cast %353 : vector<1x1x32xf32> to vector<1x32xf32>
    %355 = arith.truncf %354 : vector<1x32xf32> to vector<1x32xbf16>
    %c64_296 = arith.constant 64 : index
    %c0_297 = arith.constant 0 : index
    %356 = vector.load %arg5[%c64_296, %c0_297] : memref<160x32xbf16, #tpu.memory_space<vmem>>, vector<32x32xbf16>
    %cst_298 = arith.constant dense<0.000000e+00> : vector<1x32xf32>
    %357 = tpu.matmul %355, %356, %cst_298 {dimension_numbers = #tpu.dot_dimension_numbers<[1], [0], [0], [1], [0, 0, 1, 1], [], []>} : vector<1x32xbf16>, vector<32x32xbf16>, vector<1x32xf32> -> vector<1x32xf32>
    %358 = arith.addf %352, %357 : vector<1x32xf32>
    %c0_299 = arith.constant 0 : index
    %c3_300 = arith.constant 3 : index
    %c0_301 = arith.constant 0 : index
    %359 = vector.load %arg11[%c0_299, %c3_300, %c0_301] : memref<1x24x32xf32, #tpu.memory_space<vmem>>, vector<1x1x32xf32>
    %360 = vector.shape_cast %359 : vector<1x1x32xf32> to vector<1x32xf32>
    %361 = arith.truncf %360 : vector<1x32xf32> to vector<1x32xbf16>
    %c96 = arith.constant 96 : index
    %c0_302 = arith.constant 0 : index
    %362 = vector.load %arg5[%c96, %c0_302] : memref<160x32xbf16, #tpu.memory_space<vmem>>, vector<32x32xbf16>
    %cst_303 = arith.constant dense<0.000000e+00> : vector<1x32xf32>
    %363 = tpu.matmul %361, %362, %cst_303 {dimension_numbers = #tpu.dot_dimension_numbers<[1], [0], [0], [1], [0, 0, 1, 1], [], []>} : vector<1x32xbf16>, vector<32x32xbf16>, vector<1x32xf32> -> vector<1x32xf32>
    %364 = arith.addf %358, %363 : vector<1x32xf32>
    %c0_304 = arith.constant 0 : index
    %c4_305 = arith.constant 4 : index
    %c0_306 = arith.constant 0 : index
    %365 = vector.load %arg11[%c0_304, %c4_305, %c0_306] : memref<1x24x32xf32, #tpu.memory_space<vmem>>, vector<1x1x32xf32>
    %366 = vector.shape_cast %365 : vector<1x1x32xf32> to vector<1x32xf32>
    %367 = arith.truncf %366 : vector<1x32xf32> to vector<1x32xbf16>
    %c128 = arith.constant 128 : index
    %c0_307 = arith.constant 0 : index
    %368 = vector.load %arg5[%c128, %c0_307] : memref<160x32xbf16, #tpu.memory_space<vmem>>, vector<32x32xbf16>
    %cst_308 = arith.constant dense<0.000000e+00> : vector<1x32xf32>
    %369 = tpu.matmul %367, %368, %cst_308 {dimension_numbers = #tpu.dot_dimension_numbers<[1], [0], [0], [1], [0, 0, 1, 1], [], []>} : vector<1x32xbf16>, vector<32x32xbf16>, vector<1x32xf32> -> vector<1x32xf32>
    %370 = arith.addf %364, %369 : vector<1x32xf32>
    %c3_309 = arith.constant 3 : index
    %c0_310 = arith.constant 0 : index
    %371 = vector.load %arg8[%c3_309, %c0_310] : memref<8x32xf32, #tpu.memory_space<vmem>>, vector<1x32xf32>
    %372 = arith.addf %370, %371 : vector<1x32xf32>
    %cst_311 = arith.constant 0.000000e+00 : f32
    %373 = vector.broadcast %cst_311 : f32 to vector<1x32xf32>
    %374 = arith.cmpf oge, %372, %373 : vector<1x32xf32>
    %cst_312 = arith.constant 1.000000e-01 : f32
    %375 = vector.broadcast %cst_312 : f32 to vector<1x32xf32>
    %376 = arith.mulf %375, %372 : vector<1x32xf32>
    %377 = arith.select %374, %372, %376 : vector<1x32xi1>, vector<1x32xf32>
    %cst_313 = arith.constant 0.000000e+00 : f32
    %378 = vector.broadcast %cst_313 : f32 to vector<2x32xf32>
    %c0_314 = arith.constant 0 : index
    %c0_315 = arith.constant 0 : index
    %c0_316 = arith.constant 0 : index
    %379 = vector.load %arg12[%c0_314, %c0_315, %c0_316] : memref<1x24x32xf32, #tpu.memory_space<vmem>>, vector<1x2x32xf32>
    %380 = vector.shape_cast %379 : vector<1x2x32xf32> to vector<2x32xf32>
    %381 = vector.shape_cast %378 : vector<2x32xf32> to vector<1x2x32xf32>
    tpu.vector_store %arg12[%c0_314, %c0_315, %c0_316], %381 {strides = array<i32>} : memref<1x24x32xf32, #tpu.memory_space<vmem>>, vector<1x2x32xf32>,
    %c0_317 = arith.constant 0 : index
    %c3_318 = arith.constant 3 : index
    %c0_319 = arith.constant 0 : index
    %382 = vector.load %arg12[%c0_317, %c3_318, %c0_319] : memref<1x24x32xf32, #tpu.memory_space<vmem>>, vector<1x2x32xf32>
    %383 = vector.shape_cast %382 : vector<1x2x32xf32> to vector<2x32xf32>
    %384 = vector.shape_cast %378 : vector<2x32xf32> to vector<1x2x32xf32>
    tpu.vector_store %arg12[%c0_317, %c3_318, %c0_319], %384 {strides = array<i32>} : memref<1x24x32xf32, #tpu.memory_space<vmem>>, vector<1x2x32xf32>,
    %c0_320 = arith.constant 0 : index
    %c2_321 = arith.constant 2 : index
    %c0_322 = arith.constant 0 : index
    %385 = vector.load %arg12[%c0_320, %c2_321, %c0_322] : memref<1x24x32xf32, #tpu.memory_space<vmem>>, vector<1x1x32xf32>
    %386 = vector.shape_cast %385 : vector<1x1x32xf32> to vector<1x32xf32>
    %387 = vector.shape_cast %377 : vector<1x32xf32> to vector<1x1x32xf32>
    tpu.vector_store %arg12[%c0_320, %c2_321, %c0_322], %387 {strides = array<i32>} : memref<1x24x32xf32, #tpu.memory_space<vmem>>, vector<1x1x32xf32>,
    %cst_323 = arith.constant 0.000000e+00 : f32
    %388 = vector.broadcast %cst_323 : f32 to vector<1x32xf32>
    %c0_324 = arith.constant 0 : index
    %c8_325 = arith.constant 8 : index
    %c0_326 = arith.constant 0 : index
    %389 = vector.load %arg11[%c0_324, %c8_325, %c0_326] : memref<1x24x32xf32, #tpu.memory_space<vmem>>, vector<1x1x32xf32>
    %390 = vector.shape_cast %389 : vector<1x1x32xf32> to vector<1x32xf32>
    %391 = arith.truncf %390 : vector<1x32xf32> to vector<1x32xbf16>
    %c0_327 = arith.constant 0 : index
    %c0_328 = arith.constant 0 : index
    %392 = vector.load %arg5[%c0_327, %c0_328] : memref<160x32xbf16, #tpu.memory_space<vmem>>, vector<32x32xbf16>
    %cst_329 = arith.constant dense<0.000000e+00> : vector<1x32xf32>
    %393 = tpu.matmul %391, %392, %cst_329 {dimension_numbers = #tpu.dot_dimension_numbers<[1], [0], [0], [1], [0, 0, 1, 1], [], []>} : vector<1x32xbf16>, vector<32x32xbf16>, vector<1x32xf32> -> vector<1x32xf32>
    %394 = arith.addf %388, %393 : vector<1x32xf32>
    %c0_330 = arith.constant 0 : index
    %c9_331 = arith.constant 9 : index
    %c0_332 = arith.constant 0 : index
    %395 = vector.load %arg11[%c0_330, %c9_331, %c0_332] : memref<1x24x32xf32, #tpu.memory_space<vmem>>, vector<1x1x32xf32>
    %396 = vector.shape_cast %395 : vector<1x1x32xf32> to vector<1x32xf32>
    %397 = arith.truncf %396 : vector<1x32xf32> to vector<1x32xbf16>
    %c32_333 = arith.constant 32 : index
    %c0_334 = arith.constant 0 : index
    %398 = vector.load %arg5[%c32_333, %c0_334] : memref<160x32xbf16, #tpu.memory_space<vmem>>, vector<32x32xbf16>
    %cst_335 = arith.constant dense<0.000000e+00> : vector<1x32xf32>
    %399 = tpu.matmul %397, %398, %cst_335 {dimension_numbers = #tpu.dot_dimension_numbers<[1], [0], [0], [1], [0, 0, 1, 1], [], []>} : vector<1x32xbf16>, vector<32x32xbf16>, vector<1x32xf32> -> vector<1x32xf32>
    %400 = arith.addf %394, %399 : vector<1x32xf32>
    %c0_336 = arith.constant 0 : index
    %c10_337 = arith.constant 10 : index
    %c0_338 = arith.constant 0 : index
    %401 = vector.load %arg11[%c0_336, %c10_337, %c0_338] : memref<1x24x32xf32, #tpu.memory_space<vmem>>, vector<1x1x32xf32>
    %402 = vector.shape_cast %401 : vector<1x1x32xf32> to vector<1x32xf32>
    %403 = arith.truncf %402 : vector<1x32xf32> to vector<1x32xbf16>
    %c64_339 = arith.constant 64 : index
    %c0_340 = arith.constant 0 : index
    %404 = vector.load %arg5[%c64_339, %c0_340] : memref<160x32xbf16, #tpu.memory_space<vmem>>, vector<32x32xbf16>
    %cst_341 = arith.constant dense<0.000000e+00> : vector<1x32xf32>
    %405 = tpu.matmul %403, %404, %cst_341 {dimension_numbers = #tpu.dot_dimension_numbers<[1], [0], [0], [1], [0, 0, 1, 1], [], []>} : vector<1x32xbf16>, vector<32x32xbf16>, vector<1x32xf32> -> vector<1x32xf32>
    %406 = arith.addf %400, %405 : vector<1x32xf32>
    %c0_342 = arith.constant 0 : index
    %c11_343 = arith.constant 11 : index
    %c0_344 = arith.constant 0 : index
    %407 = vector.load %arg11[%c0_342, %c11_343, %c0_344] : memref<1x24x32xf32, #tpu.memory_space<vmem>>, vector<1x1x32xf32>
    %408 = vector.shape_cast %407 : vector<1x1x32xf32> to vector<1x32xf32>
    %409 = arith.truncf %408 : vector<1x32xf32> to vector<1x32xbf16>
    %c96_345 = arith.constant 96 : index
    %c0_346 = arith.constant 0 : index
    %410 = vector.load %arg5[%c96_345, %c0_346] : memref<160x32xbf16, #tpu.memory_space<vmem>>, vector<32x32xbf16>
    %cst_347 = arith.constant dense<0.000000e+00> : vector<1x32xf32>
    %411 = tpu.matmul %409, %410, %cst_347 {dimension_numbers = #tpu.dot_dimension_numbers<[1], [0], [0], [1], [0, 0, 1, 1], [], []>} : vector<1x32xbf16>, vector<32x32xbf16>, vector<1x32xf32> -> vector<1x32xf32>
    %412 = arith.addf %406, %411 : vector<1x32xf32>
    %c0_348 = arith.constant 0 : index
    %c12_349 = arith.constant 12 : index
    %c0_350 = arith.constant 0 : index
    %413 = vector.load %arg11[%c0_348, %c12_349, %c0_350] : memref<1x24x32xf32, #tpu.memory_space<vmem>>, vector<1x1x32xf32>
    %414 = vector.shape_cast %413 : vector<1x1x32xf32> to vector<1x32xf32>
    %415 = arith.truncf %414 : vector<1x32xf32> to vector<1x32xbf16>
    %c128_351 = arith.constant 128 : index
    %c0_352 = arith.constant 0 : index
    %416 = vector.load %arg5[%c128_351, %c0_352] : memref<160x32xbf16, #tpu.memory_space<vmem>>, vector<32x32xbf16>
    %cst_353 = arith.constant dense<0.000000e+00> : vector<1x32xf32>
    %417 = tpu.matmul %415, %416, %cst_353 {dimension_numbers = #tpu.dot_dimension_numbers<[1], [0], [0], [1], [0, 0, 1, 1], [], []>} : vector<1x32xbf16>, vector<32x32xbf16>, vector<1x32xf32> -> vector<1x32xf32>
    %418 = arith.addf %412, %417 : vector<1x32xf32>
    %c3_354 = arith.constant 3 : index
    %c0_355 = arith.constant 0 : index
    %419 = vector.load %arg8[%c3_354, %c0_355] : memref<8x32xf32, #tpu.memory_space<vmem>>, vector<1x32xf32>
    %420 = arith.addf %418, %419 : vector<1x32xf32>
    %cst_356 = arith.constant 0.000000e+00 : f32
    %421 = vector.broadcast %cst_356 : f32 to vector<1x32xf32>
    %422 = arith.cmpf oge, %420, %421 : vector<1x32xf32>
    %cst_357 = arith.constant 1.000000e-01 : f32
    %423 = vector.broadcast %cst_357 : f32 to vector<1x32xf32>
    %424 = arith.mulf %423, %420 : vector<1x32xf32>
    %425 = arith.select %422, %420, %424 : vector<1x32xi1>, vector<1x32xf32>
    %cst_358 = arith.constant 0.000000e+00 : f32
    %426 = vector.broadcast %cst_358 : f32 to vector<2x32xf32>
    %c0_359 = arith.constant 0 : index
    %c8_360 = arith.constant 8 : index
    %c0_361 = arith.constant 0 : index
    %427 = vector.load %arg12[%c0_359, %c8_360, %c0_361] : memref<1x24x32xf32, #tpu.memory_space<vmem>>, vector<1x2x32xf32>
    %428 = vector.shape_cast %427 : vector<1x2x32xf32> to vector<2x32xf32>
    %429 = vector.shape_cast %426 : vector<2x32xf32> to vector<1x2x32xf32>
    tpu.vector_store %arg12[%c0_359, %c8_360, %c0_361], %429 {strides = array<i32>} : memref<1x24x32xf32, #tpu.memory_space<vmem>>, vector<1x2x32xf32>,
    %c0_362 = arith.constant 0 : index
    %c11_363 = arith.constant 11 : index
    %c0_364 = arith.constant 0 : index
    %430 = vector.load %arg12[%c0_362, %c11_363, %c0_364] : memref<1x24x32xf32, #tpu.memory_space<vmem>>, vector<1x2x32xf32>
    %431 = vector.shape_cast %430 : vector<1x2x32xf32> to vector<2x32xf32>
    %432 = vector.shape_cast %426 : vector<2x32xf32> to vector<1x2x32xf32>
    tpu.vector_store %arg12[%c0_362, %c11_363, %c0_364], %432 {strides = array<i32>} : memref<1x24x32xf32, #tpu.memory_space<vmem>>, vector<1x2x32xf32>,
    %c0_365 = arith.constant 0 : index
    %c10_366 = arith.constant 10 : index
    %c0_367 = arith.constant 0 : index
    %433 = vector.load %arg12[%c0_365, %c10_366, %c0_367] : memref<1x24x32xf32, #tpu.memory_space<vmem>>, vector<1x1x32xf32>
    %434 = vector.shape_cast %433 : vector<1x1x32xf32> to vector<1x32xf32>
    %435 = vector.shape_cast %425 : vector<1x32xf32> to vector<1x1x32xf32>
    tpu.vector_store %arg12[%c0_365, %c10_366, %c0_367], %435 {strides = array<i32>} : memref<1x24x32xf32, #tpu.memory_space<vmem>>, vector<1x1x32xf32>,
    %cst_368 = arith.constant 0.000000e+00 : f32
    %436 = vector.broadcast %cst_368 : f32 to vector<1x32xf32>
    %c0_369 = arith.constant 0 : index
    %c16_370 = arith.constant 16 : index
    %c0_371 = arith.constant 0 : index
    %437 = vector.load %arg11[%c0_369, %c16_370, %c0_371] : memref<1x24x32xf32, #tpu.memory_space<vmem>>, vector<1x1x32xf32>
    %438 = vector.shape_cast %437 : vector<1x1x32xf32> to vector<1x32xf32>
    %439 = arith.truncf %438 : vector<1x32xf32> to vector<1x32xbf16>
    %c0_372 = arith.constant 0 : index
    %c0_373 = arith.constant 0 : index
    %440 = vector.load %arg5[%c0_372, %c0_373] : memref<160x32xbf16, #tpu.memory_space<vmem>>, vector<32x32xbf16>
    %cst_374 = arith.constant dense<0.000000e+00> : vector<1x32xf32>
    %441 = tpu.matmul %439, %440, %cst_374 {dimension_numbers = #tpu.dot_dimension_numbers<[1], [0], [0], [1], [0, 0, 1, 1], [], []>} : vector<1x32xbf16>, vector<32x32xbf16>, vector<1x32xf32> -> vector<1x32xf32>
    %442 = arith.addf %436, %441 : vector<1x32xf32>
    %c0_375 = arith.constant 0 : index
    %c17_376 = arith.constant 17 : index
    %c0_377 = arith.constant 0 : index
    %443 = vector.load %arg11[%c0_375, %c17_376, %c0_377] : memref<1x24x32xf32, #tpu.memory_space<vmem>>, vector<1x1x32xf32>
    %444 = vector.shape_cast %443 : vector<1x1x32xf32> to vector<1x32xf32>
    %445 = arith.truncf %444 : vector<1x32xf32> to vector<1x32xbf16>
    %c32_378 = arith.constant 32 : index
    %c0_379 = arith.constant 0 : index
    %446 = vector.load %arg5[%c32_378, %c0_379] : memref<160x32xbf16, #tpu.memory_space<vmem>>, vector<32x32xbf16>
    %cst_380 = arith.constant dense<0.000000e+00> : vector<1x32xf32>
    %447 = tpu.matmul %445, %446, %cst_380 {dimension_numbers = #tpu.dot_dimension_numbers<[1], [0], [0], [1], [0, 0, 1, 1], [], []>} : vector<1x32xbf16>, vector<32x32xbf16>, vector<1x32xf32> -> vector<1x32xf32>
    %448 = arith.addf %442, %447 : vector<1x32xf32>
    %c0_381 = arith.constant 0 : index
    %c18_382 = arith.constant 18 : index
    %c0_383 = arith.constant 0 : index
    %449 = vector.load %arg11[%c0_381, %c18_382, %c0_383] : memref<1x24x32xf32, #tpu.memory_space<vmem>>, vector<1x1x32xf32>
    %450 = vector.shape_cast %449 : vector<1x1x32xf32> to vector<1x32xf32>
    %451 = arith.truncf %450 : vector<1x32xf32> to vector<1x32xbf16>
    %c64_384 = arith.constant 64 : index
    %c0_385 = arith.constant 0 : index
    %452 = vector.load %arg5[%c64_384, %c0_385] : memref<160x32xbf16, #tpu.memory_space<vmem>>, vector<32x32xbf16>
    %cst_386 = arith.constant dense<0.000000e+00> : vector<1x32xf32>
    %453 = tpu.matmul %451, %452, %cst_386 {dimension_numbers = #tpu.dot_dimension_numbers<[1], [0], [0], [1], [0, 0, 1, 1], [], []>} : vector<1x32xbf16>, vector<32x32xbf16>, vector<1x32xf32> -> vector<1x32xf32>
    %454 = arith.addf %448, %453 : vector<1x32xf32>
    %c0_387 = arith.constant 0 : index
    %c19_388 = arith.constant 19 : index
    %c0_389 = arith.constant 0 : index
    %455 = vector.load %arg11[%c0_387, %c19_388, %c0_389] : memref<1x24x32xf32, #tpu.memory_space<vmem>>, vector<1x1x32xf32>
    %456 = vector.shape_cast %455 : vector<1x1x32xf32> to vector<1x32xf32>
    %457 = arith.truncf %456 : vector<1x32xf32> to vector<1x32xbf16>
    %c96_390 = arith.constant 96 : index
    %c0_391 = arith.constant 0 : index
    %458 = vector.load %arg5[%c96_390, %c0_391] : memref<160x32xbf16, #tpu.memory_space<vmem>>, vector<32x32xbf16>
    %cst_392 = arith.constant dense<0.000000e+00> : vector<1x32xf32>
    %459 = tpu.matmul %457, %458, %cst_392 {dimension_numbers = #tpu.dot_dimension_numbers<[1], [0], [0], [1], [0, 0, 1, 1], [], []>} : vector<1x32xbf16>, vector<32x32xbf16>, vector<1x32xf32> -> vector<1x32xf32>
    %460 = arith.addf %454, %459 : vector<1x32xf32>
    %c0_393 = arith.constant 0 : index
    %c20_394 = arith.constant 20 : index
    %c0_395 = arith.constant 0 : index
    %461 = vector.load %arg11[%c0_393, %c20_394, %c0_395] : memref<1x24x32xf32, #tpu.memory_space<vmem>>, vector<1x1x32xf32>
    %462 = vector.shape_cast %461 : vector<1x1x32xf32> to vector<1x32xf32>
    %463 = arith.truncf %462 : vector<1x32xf32> to vector<1x32xbf16>
    %c128_396 = arith.constant 128 : index
    %c0_397 = arith.constant 0 : index
    %464 = vector.load %arg5[%c128_396, %c0_397] : memref<160x32xbf16, #tpu.memory_space<vmem>>, vector<32x32xbf16>
    %cst_398 = arith.constant dense<0.000000e+00> : vector<1x32xf32>
    %465 = tpu.matmul %463, %464, %cst_398 {dimension_numbers = #tpu.dot_dimension_numbers<[1], [0], [0], [1], [0, 0, 1, 1], [], []>} : vector<1x32xbf16>, vector<32x32xbf16>, vector<1x32xf32> -> vector<1x32xf32>
    %466 = arith.addf %460, %465 : vector<1x32xf32>
    %c3_399 = arith.constant 3 : index
    %c0_400 = arith.constant 0 : index
    %467 = vector.load %arg8[%c3_399, %c0_400] : memref<8x32xf32, #tpu.memory_space<vmem>>, vector<1x32xf32>
    %468 = arith.addf %466, %467 : vector<1x32xf32>
    %cst_401 = arith.constant 0.000000e+00 : f32
    %469 = vector.broadcast %cst_401 : f32 to vector<1x32xf32>
    %470 = arith.cmpf oge, %468, %469 : vector<1x32xf32>
    %cst_402 = arith.constant 1.000000e-01 : f32
    %471 = vector.broadcast %cst_402 : f32 to vector<1x32xf32>
    %472 = arith.mulf %471, %468 : vector<1x32xf32>
    %473 = arith.select %470, %468, %472 : vector<1x32xi1>, vector<1x32xf32>
    %cst_403 = arith.constant 0.000000e+00 : f32
    %474 = vector.broadcast %cst_403 : f32 to vector<2x32xf32>
    %c0_404 = arith.constant 0 : index
    %c16_405 = arith.constant 16 : index
    %c0_406 = arith.constant 0 : index
    %475 = vector.load %arg12[%c0_404, %c16_405, %c0_406] : memref<1x24x32xf32, #tpu.memory_space<vmem>>, vector<1x2x32xf32>
    %476 = vector.shape_cast %475 : vector<1x2x32xf32> to vector<2x32xf32>
    %477 = vector.shape_cast %474 : vector<2x32xf32> to vector<1x2x32xf32>
    tpu.vector_store %arg12[%c0_404, %c16_405, %c0_406], %477 {strides = array<i32>} : memref<1x24x32xf32, #tpu.memory_space<vmem>>, vector<1x2x32xf32>,
    %c0_407 = arith.constant 0 : index
    %c19_408 = arith.constant 19 : index
    %c0_409 = arith.constant 0 : index
    %478 = vector.load %arg12[%c0_407, %c19_408, %c0_409] : memref<1x24x32xf32, #tpu.memory_space<vmem>>, vector<1x2x32xf32>
    %479 = vector.shape_cast %478 : vector<1x2x32xf32> to vector<2x32xf32>
    %480 = vector.shape_cast %474 : vector<2x32xf32> to vector<1x2x32xf32>
    tpu.vector_store %arg12[%c0_407, %c19_408, %c0_409], %480 {strides = array<i32>} : memref<1x24x32xf32, #tpu.memory_space<vmem>>, vector<1x2x32xf32>,
    %c0_410 = arith.constant 0 : index
    %c18_411 = arith.constant 18 : index
    %c0_412 = arith.constant 0 : index
    %481 = vector.load %arg12[%c0_410, %c18_411, %c0_412] : memref<1x24x32xf32, #tpu.memory_space<vmem>>, vector<1x1x32xf32>
    %482 = vector.shape_cast %481 : vector<1x1x32xf32> to vector<1x32xf32>
    %483 = vector.shape_cast %473 : vector<1x32xf32> to vector<1x1x32xf32>
    tpu.vector_store %arg12[%c0_410, %c18_411, %c0_412], %483 {strides = array<i32>} : memref<1x24x32xf32, #tpu.memory_space<vmem>>, vector<1x1x32xf32>,
    %cst_413 = arith.constant 0.000000e+00 : f32
    %484 = vector.broadcast %cst_413 : f32 to vector<1x32xf32>
    %c0_414 = arith.constant 0 : index
    %c0_415 = arith.constant 0 : index
    %c0_416 = arith.constant 0 : index
    %485 = vector.load %arg12[%c0_414, %c0_415, %c0_416] : memref<1x24x32xf32, #tpu.memory_space<vmem>>, vector<1x1x32xf32>
    %486 = vector.shape_cast %485 : vector<1x1x32xf32> to vector<1x32xf32>
    %487 = arith.truncf %486 : vector<1x32xf32> to vector<1x32xbf16>
    %c0_417 = arith.constant 0 : index
    %c0_418 = arith.constant 0 : index
    %488 = vector.load %arg6[%c0_417, %c0_418] : memref<160x32xbf16, #tpu.memory_space<vmem>>, vector<32x32xbf16>
    %cst_419 = arith.constant dense<0.000000e+00> : vector<1x32xf32>
    %489 = tpu.matmul %487, %488, %cst_419 {dimension_numbers = #tpu.dot_dimension_numbers<[1], [0], [0], [1], [0, 0, 1, 1], [], []>} : vector<1x32xbf16>, vector<32x32xbf16>, vector<1x32xf32> -> vector<1x32xf32>
    %490 = arith.addf %484, %489 : vector<1x32xf32>
    %c0_420 = arith.constant 0 : index
    %c1_421 = arith.constant 1 : index
    %c0_422 = arith.constant 0 : index
    %491 = vector.load %arg12[%c0_420, %c1_421, %c0_422] : memref<1x24x32xf32, #tpu.memory_space<vmem>>, vector<1x1x32xf32>
    %492 = vector.shape_cast %491 : vector<1x1x32xf32> to vector<1x32xf32>
    %493 = arith.truncf %492 : vector<1x32xf32> to vector<1x32xbf16>
    %c32_423 = arith.constant 32 : index
    %c0_424 = arith.constant 0 : index
    %494 = vector.load %arg6[%c32_423, %c0_424] : memref<160x32xbf16, #tpu.memory_space<vmem>>, vector<32x32xbf16>
    %cst_425 = arith.constant dense<0.000000e+00> : vector<1x32xf32>
    %495 = tpu.matmul %493, %494, %cst_425 {dimension_numbers = #tpu.dot_dimension_numbers<[1], [0], [0], [1], [0, 0, 1, 1], [], []>} : vector<1x32xbf16>, vector<32x32xbf16>, vector<1x32xf32> -> vector<1x32xf32>
    %496 = arith.addf %490, %495 : vector<1x32xf32>
    %c0_426 = arith.constant 0 : index
    %c2_427 = arith.constant 2 : index
    %c0_428 = arith.constant 0 : index
    %497 = vector.load %arg12[%c0_426, %c2_427, %c0_428] : memref<1x24x32xf32, #tpu.memory_space<vmem>>, vector<1x1x32xf32>
    %498 = vector.shape_cast %497 : vector<1x1x32xf32> to vector<1x32xf32>
    %499 = arith.truncf %498 : vector<1x32xf32> to vector<1x32xbf16>
    %c64_429 = arith.constant 64 : index
    %c0_430 = arith.constant 0 : index
    %500 = vector.load %arg6[%c64_429, %c0_430] : memref<160x32xbf16, #tpu.memory_space<vmem>>, vector<32x32xbf16>
    %cst_431 = arith.constant dense<0.000000e+00> : vector<1x32xf32>
    %501 = tpu.matmul %499, %500, %cst_431 {dimension_numbers = #tpu.dot_dimension_numbers<[1], [0], [0], [1], [0, 0, 1, 1], [], []>} : vector<1x32xbf16>, vector<32x32xbf16>, vector<1x32xf32> -> vector<1x32xf32>
    %502 = arith.addf %496, %501 : vector<1x32xf32>
    %c0_432 = arith.constant 0 : index
    %c3_433 = arith.constant 3 : index
    %c0_434 = arith.constant 0 : index
    %503 = vector.load %arg12[%c0_432, %c3_433, %c0_434] : memref<1x24x32xf32, #tpu.memory_space<vmem>>, vector<1x1x32xf32>
    %504 = vector.shape_cast %503 : vector<1x1x32xf32> to vector<1x32xf32>
    %505 = arith.truncf %504 : vector<1x32xf32> to vector<1x32xbf16>
    %c96_435 = arith.constant 96 : index
    %c0_436 = arith.constant 0 : index
    %506 = vector.load %arg6[%c96_435, %c0_436] : memref<160x32xbf16, #tpu.memory_space<vmem>>, vector<32x32xbf16>
    %cst_437 = arith.constant dense<0.000000e+00> : vector<1x32xf32>
    %507 = tpu.matmul %505, %506, %cst_437 {dimension_numbers = #tpu.dot_dimension_numbers<[1], [0], [0], [1], [0, 0, 1, 1], [], []>} : vector<1x32xbf16>, vector<32x32xbf16>, vector<1x32xf32> -> vector<1x32xf32>
    %508 = arith.addf %502, %507 : vector<1x32xf32>
    %c0_438 = arith.constant 0 : index
    %c4_439 = arith.constant 4 : index
    %c0_440 = arith.constant 0 : index
    %509 = vector.load %arg12[%c0_438, %c4_439, %c0_440] : memref<1x24x32xf32, #tpu.memory_space<vmem>>, vector<1x1x32xf32>
    %510 = vector.shape_cast %509 : vector<1x1x32xf32> to vector<1x32xf32>
    %511 = arith.truncf %510 : vector<1x32xf32> to vector<1x32xbf16>
    %c128_441 = arith.constant 128 : index
    %c0_442 = arith.constant 0 : index
    %512 = vector.load %arg6[%c128_441, %c0_442] : memref<160x32xbf16, #tpu.memory_space<vmem>>, vector<32x32xbf16>
    %cst_443 = arith.constant dense<0.000000e+00> : vector<1x32xf32>
    %513 = tpu.matmul %511, %512, %cst_443 {dimension_numbers = #tpu.dot_dimension_numbers<[1], [0], [0], [1], [0, 0, 1, 1], [], []>} : vector<1x32xbf16>, vector<32x32xbf16>, vector<1x32xf32> -> vector<1x32xf32>
    %514 = arith.addf %508, %513 : vector<1x32xf32>
    %c4_444 = arith.constant 4 : index
    %c0_445 = arith.constant 0 : index
    %515 = vector.load %arg8[%c4_444, %c0_445] : memref<8x32xf32, #tpu.memory_space<vmem>>, vector<1x32xf32>
    %516 = arith.addf %514, %515 : vector<1x32xf32>
    %cst_446 = arith.constant 0.000000e+00 : f32
    %517 = vector.broadcast %cst_446 : f32 to vector<1x32xf32>
    %518 = arith.cmpf oge, %516, %517 : vector<1x32xf32>
    %cst_447 = arith.constant 1.000000e-01 : f32
    %519 = vector.broadcast %cst_447 : f32 to vector<1x32xf32>
    %520 = arith.mulf %519, %516 : vector<1x32xf32>
    %521 = arith.select %518, %516, %520 : vector<1x32xi1>, vector<1x32xf32>
    %cst_448 = arith.constant 0.000000e+00 : f32
    %522 = vector.broadcast %cst_448 : f32 to vector<1x32xf32>
    %c0_449 = arith.constant 0 : index
    %c0_450 = arith.constant 0 : index
    %c0_451 = arith.constant 0 : index
    %523 = vector.load %arg13[%c0_449, %c0_450, %c0_451] : memref<1x24x32xf32, #tpu.memory_space<vmem>>, vector<1x1x32xf32>
    %524 = vector.shape_cast %523 : vector<1x1x32xf32> to vector<1x32xf32>
    %525 = vector.shape_cast %522 : vector<1x32xf32> to vector<1x1x32xf32>
    tpu.vector_store %arg13[%c0_449, %c0_450, %c0_451], %525 {strides = array<i32>} : memref<1x24x32xf32, #tpu.memory_space<vmem>>, vector<1x1x32xf32>,
    %c0_452 = arith.constant 0 : index
    %c2_453 = arith.constant 2 : index
    %c0_454 = arith.constant 0 : index
    %526 = vector.load %arg13[%c0_452, %c2_453, %c0_454] : memref<1x24x32xf32, #tpu.memory_space<vmem>>, vector<1x1x32xf32>
    %527 = vector.shape_cast %526 : vector<1x1x32xf32> to vector<1x32xf32>
    %528 = vector.shape_cast %522 : vector<1x32xf32> to vector<1x1x32xf32>
    tpu.vector_store %arg13[%c0_452, %c2_453, %c0_454], %528 {strides = array<i32>} : memref<1x24x32xf32, #tpu.memory_space<vmem>>, vector<1x1x32xf32>,
    %c0_455 = arith.constant 0 : index
    %c1_456 = arith.constant 1 : index
    %c0_457 = arith.constant 0 : index
    %529 = vector.load %arg13[%c0_455, %c1_456, %c0_457] : memref<1x24x32xf32, #tpu.memory_space<vmem>>, vector<1x1x32xf32>
    %530 = vector.shape_cast %529 : vector<1x1x32xf32> to vector<1x32xf32>
    %531 = vector.shape_cast %521 : vector<1x32xf32> to vector<1x1x32xf32>
    tpu.vector_store %arg13[%c0_455, %c1_456, %c0_457], %531 {strides = array<i32>} : memref<1x24x32xf32, #tpu.memory_space<vmem>>, vector<1x1x32xf32>,
    %cst_458 = arith.constant 0.000000e+00 : f32
    %532 = vector.broadcast %cst_458 : f32 to vector<1x32xf32>
    %c0_459 = arith.constant 0 : index
    %c8_460 = arith.constant 8 : index
    %c0_461 = arith.constant 0 : index
    %533 = vector.load %arg12[%c0_459, %c8_460, %c0_461] : memref<1x24x32xf32, #tpu.memory_space<vmem>>, vector<1x1x32xf32>
    %534 = vector.shape_cast %533 : vector<1x1x32xf32> to vector<1x32xf32>
    %535 = arith.truncf %534 : vector<1x32xf32> to vector<1x32xbf16>
    %c0_462 = arith.constant 0 : index
    %c0_463 = arith.constant 0 : index
    %536 = vector.load %arg6[%c0_462, %c0_463] : memref<160x32xbf16, #tpu.memory_space<vmem>>, vector<32x32xbf16>
    %cst_464 = arith.constant dense<0.000000e+00> : vector<1x32xf32>
    %537 = tpu.matmul %535, %536, %cst_464 {dimension_numbers = #tpu.dot_dimension_numbers<[1], [0], [0], [1], [0, 0, 1, 1], [], []>} : vector<1x32xbf16>, vector<32x32xbf16>, vector<1x32xf32> -> vector<1x32xf32>
    %538 = arith.addf %532, %537 : vector<1x32xf32>
    %c0_465 = arith.constant 0 : index
    %c9_466 = arith.constant 9 : index
    %c0_467 = arith.constant 0 : index
    %539 = vector.load %arg12[%c0_465, %c9_466, %c0_467] : memref<1x24x32xf32, #tpu.memory_space<vmem>>, vector<1x1x32xf32>
    %540 = vector.shape_cast %539 : vector<1x1x32xf32> to vector<1x32xf32>
    %541 = arith.truncf %540 : vector<1x32xf32> to vector<1x32xbf16>
    %c32_468 = arith.constant 32 : index
    %c0_469 = arith.constant 0 : index
    %542 = vector.load %arg6[%c32_468, %c0_469] : memref<160x32xbf16, #tpu.memory_space<vmem>>, vector<32x32xbf16>
    %cst_470 = arith.constant dense<0.000000e+00> : vector<1x32xf32>
    %543 = tpu.matmul %541, %542, %cst_470 {dimension_numbers = #tpu.dot_dimension_numbers<[1], [0], [0], [1], [0, 0, 1, 1], [], []>} : vector<1x32xbf16>, vector<32x32xbf16>, vector<1x32xf32> -> vector<1x32xf32>
    %544 = arith.addf %538, %543 : vector<1x32xf32>
    %c0_471 = arith.constant 0 : index
    %c10_472 = arith.constant 10 : index
    %c0_473 = arith.constant 0 : index
    %545 = vector.load %arg12[%c0_471, %c10_472, %c0_473] : memref<1x24x32xf32, #tpu.memory_space<vmem>>, vector<1x1x32xf32>
    %546 = vector.shape_cast %545 : vector<1x1x32xf32> to vector<1x32xf32>
    %547 = arith.truncf %546 : vector<1x32xf32> to vector<1x32xbf16>
    %c64_474 = arith.constant 64 : index
    %c0_475 = arith.constant 0 : index
    %548 = vector.load %arg6[%c64_474, %c0_475] : memref<160x32xbf16, #tpu.memory_space<vmem>>, vector<32x32xbf16>
    %cst_476 = arith.constant dense<0.000000e+00> : vector<1x32xf32>
    %549 = tpu.matmul %547, %548, %cst_476 {dimension_numbers = #tpu.dot_dimension_numbers<[1], [0], [0], [1], [0, 0, 1, 1], [], []>} : vector<1x32xbf16>, vector<32x32xbf16>, vector<1x32xf32> -> vector<1x32xf32>
    %550 = arith.addf %544, %549 : vector<1x32xf32>
    %c0_477 = arith.constant 0 : index
    %c11_478 = arith.constant 11 : index
    %c0_479 = arith.constant 0 : index
    %551 = vector.load %arg12[%c0_477, %c11_478, %c0_479] : memref<1x24x32xf32, #tpu.memory_space<vmem>>, vector<1x1x32xf32>
    %552 = vector.shape_cast %551 : vector<1x1x32xf32> to vector<1x32xf32>
    %553 = arith.truncf %552 : vector<1x32xf32> to vector<1x32xbf16>
    %c96_480 = arith.constant 96 : index
    %c0_481 = arith.constant 0 : index
    %554 = vector.load %arg6[%c96_480, %c0_481] : memref<160x32xbf16, #tpu.memory_space<vmem>>, vector<32x32xbf16>
    %cst_482 = arith.constant dense<0.000000e+00> : vector<1x32xf32>
    %555 = tpu.matmul %553, %554, %cst_482 {dimension_numbers = #tpu.dot_dimension_numbers<[1], [0], [0], [1], [0, 0, 1, 1], [], []>} : vector<1x32xbf16>, vector<32x32xbf16>, vector<1x32xf32> -> vector<1x32xf32>
    %556 = arith.addf %550, %555 : vector<1x32xf32>
    %c0_483 = arith.constant 0 : index
    %c12_484 = arith.constant 12 : index
    %c0_485 = arith.constant 0 : index
    %557 = vector.load %arg12[%c0_483, %c12_484, %c0_485] : memref<1x24x32xf32, #tpu.memory_space<vmem>>, vector<1x1x32xf32>
    %558 = vector.shape_cast %557 : vector<1x1x32xf32> to vector<1x32xf32>
    %559 = arith.truncf %558 : vector<1x32xf32> to vector<1x32xbf16>
    %c128_486 = arith.constant 128 : index
    %c0_487 = arith.constant 0 : index
    %560 = vector.load %arg6[%c128_486, %c0_487] : memref<160x32xbf16, #tpu.memory_space<vmem>>, vector<32x32xbf16>
    %cst_488 = arith.constant dense<0.000000e+00> : vector<1x32xf32>
    %561 = tpu.matmul %559, %560, %cst_488 {dimension_numbers = #tpu.dot_dimension_numbers<[1], [0], [0], [1], [0, 0, 1, 1], [], []>} : vector<1x32xbf16>, vector<32x32xbf16>, vector<1x32xf32> -> vector<1x32xf32>
    %562 = arith.addf %556, %561 : vector<1x32xf32>
    %c4_489 = arith.constant 4 : index
    %c0_490 = arith.constant 0 : index
    %563 = vector.load %arg8[%c4_489, %c0_490] : memref<8x32xf32, #tpu.memory_space<vmem>>, vector<1x32xf32>
    %564 = arith.addf %562, %563 : vector<1x32xf32>
    %cst_491 = arith.constant 0.000000e+00 : f32
    %565 = vector.broadcast %cst_491 : f32 to vector<1x32xf32>
    %566 = arith.cmpf oge, %564, %565 : vector<1x32xf32>
    %cst_492 = arith.constant 1.000000e-01 : f32
    %567 = vector.broadcast %cst_492 : f32 to vector<1x32xf32>
    %568 = arith.mulf %567, %564 : vector<1x32xf32>
    %569 = arith.select %566, %564, %568 : vector<1x32xi1>, vector<1x32xf32>
    %cst_493 = arith.constant 0.000000e+00 : f32
    %570 = vector.broadcast %cst_493 : f32 to vector<1x32xf32>
    %c0_494 = arith.constant 0 : index
    %c8_495 = arith.constant 8 : index
    %c0_496 = arith.constant 0 : index
    %571 = vector.load %arg13[%c0_494, %c8_495, %c0_496] : memref<1x24x32xf32, #tpu.memory_space<vmem>>, vector<1x1x32xf32>
    %572 = vector.shape_cast %571 : vector<1x1x32xf32> to vector<1x32xf32>
    %573 = vector.shape_cast %570 : vector<1x32xf32> to vector<1x1x32xf32>
    tpu.vector_store %arg13[%c0_494, %c8_495, %c0_496], %573 {strides = array<i32>} : memref<1x24x32xf32, #tpu.memory_space<vmem>>, vector<1x1x32xf32>,
    %c0_497 = arith.constant 0 : index
    %c10_498 = arith.constant 10 : index
    %c0_499 = arith.constant 0 : index
    %574 = vector.load %arg13[%c0_497, %c10_498, %c0_499] : memref<1x24x32xf32, #tpu.memory_space<vmem>>, vector<1x1x32xf32>
    %575 = vector.shape_cast %574 : vector<1x1x32xf32> to vector<1x32xf32>
    %576 = vector.shape_cast %570 : vector<1x32xf32> to vector<1x1x32xf32>
    tpu.vector_store %arg13[%c0_497, %c10_498, %c0_499], %576 {strides = array<i32>} : memref<1x24x32xf32, #tpu.memory_space<vmem>>, vector<1x1x32xf32>,
    %c0_500 = arith.constant 0 : index
    %c9_501 = arith.constant 9 : index
    %c0_502 = arith.constant 0 : index
    %577 = vector.load %arg13[%c0_500, %c9_501, %c0_502] : memref<1x24x32xf32, #tpu.memory_space<vmem>>, vector<1x1x32xf32>
    %578 = vector.shape_cast %577 : vector<1x1x32xf32> to vector<1x32xf32>
    %579 = vector.shape_cast %569 : vector<1x32xf32> to vector<1x1x32xf32>
    tpu.vector_store %arg13[%c0_500, %c9_501, %c0_502], %579 {strides = array<i32>} : memref<1x24x32xf32, #tpu.memory_space<vmem>>, vector<1x1x32xf32>,
    %cst_503 = arith.constant 0.000000e+00 : f32
    %580 = vector.broadcast %cst_503 : f32 to vector<1x32xf32>
    %c0_504 = arith.constant 0 : index
    %c16_505 = arith.constant 16 : index
    %c0_506 = arith.constant 0 : index
    %581 = vector.load %arg12[%c0_504, %c16_505, %c0_506] : memref<1x24x32xf32, #tpu.memory_space<vmem>>, vector<1x1x32xf32>
    %582 = vector.shape_cast %581 : vector<1x1x32xf32> to vector<1x32xf32>
    %583 = arith.truncf %582 : vector<1x32xf32> to vector<1x32xbf16>
    %c0_507 = arith.constant 0 : index
    %c0_508 = arith.constant 0 : index
    %584 = vector.load %arg6[%c0_507, %c0_508] : memref<160x32xbf16, #tpu.memory_space<vmem>>, vector<32x32xbf16>
    %cst_509 = arith.constant dense<0.000000e+00> : vector<1x32xf32>
    %585 = tpu.matmul %583, %584, %cst_509 {dimension_numbers = #tpu.dot_dimension_numbers<[1], [0], [0], [1], [0, 0, 1, 1], [], []>} : vector<1x32xbf16>, vector<32x32xbf16>, vector<1x32xf32> -> vector<1x32xf32>
    %586 = arith.addf %580, %585 : vector<1x32xf32>
    %c0_510 = arith.constant 0 : index
    %c17_511 = arith.constant 17 : index
    %c0_512 = arith.constant 0 : index
    %587 = vector.load %arg12[%c0_510, %c17_511, %c0_512] : memref<1x24x32xf32, #tpu.memory_space<vmem>>, vector<1x1x32xf32>
    %588 = vector.shape_cast %587 : vector<1x1x32xf32> to vector<1x32xf32>
    %589 = arith.truncf %588 : vector<1x32xf32> to vector<1x32xbf16>
    %c32_513 = arith.constant 32 : index
    %c0_514 = arith.constant 0 : index
    %590 = vector.load %arg6[%c32_513, %c0_514] : memref<160x32xbf16, #tpu.memory_space<vmem>>, vector<32x32xbf16>
    %cst_515 = arith.constant dense<0.000000e+00> : vector<1x32xf32>
    %591 = tpu.matmul %589, %590, %cst_515 {dimension_numbers = #tpu.dot_dimension_numbers<[1], [0], [0], [1], [0, 0, 1, 1], [], []>} : vector<1x32xbf16>, vector<32x32xbf16>, vector<1x32xf32> -> vector<1x32xf32>
    %592 = arith.addf %586, %591 : vector<1x32xf32>
    %c0_516 = arith.constant 0 : index
    %c18_517 = arith.constant 18 : index
    %c0_518 = arith.constant 0 : index
    %593 = vector.load %arg12[%c0_516, %c18_517, %c0_518] : memref<1x24x32xf32, #tpu.memory_space<vmem>>, vector<1x1x32xf32>
    %594 = vector.shape_cast %593 : vector<1x1x32xf32> to vector<1x32xf32>
    %595 = arith.truncf %594 : vector<1x32xf32> to vector<1x32xbf16>
    %c64_519 = arith.constant 64 : index
    %c0_520 = arith.constant 0 : index
    %596 = vector.load %arg6[%c64_519, %c0_520] : memref<160x32xbf16, #tpu.memory_space<vmem>>, vector<32x32xbf16>
    %cst_521 = arith.constant dense<0.000000e+00> : vector<1x32xf32>
    %597 = tpu.matmul %595, %596, %cst_521 {dimension_numbers = #tpu.dot_dimension_numbers<[1], [0], [0], [1], [0, 0, 1, 1], [], []>} : vector<1x32xbf16>, vector<32x32xbf16>, vector<1x32xf32> -> vector<1x32xf32>
    %598 = arith.addf %592, %597 : vector<1x32xf32>
    %c0_522 = arith.constant 0 : index
    %c19_523 = arith.constant 19 : index
    %c0_524 = arith.constant 0 : index
    %599 = vector.load %arg12[%c0_522, %c19_523, %c0_524] : memref<1x24x32xf32, #tpu.memory_space<vmem>>, vector<1x1x32xf32>
    %600 = vector.shape_cast %599 : vector<1x1x32xf32> to vector<1x32xf32>
    %601 = arith.truncf %600 : vector<1x32xf32> to vector<1x32xbf16>
    %c96_525 = arith.constant 96 : index
    %c0_526 = arith.constant 0 : index
    %602 = vector.load %arg6[%c96_525, %c0_526] : memref<160x32xbf16, #tpu.memory_space<vmem>>, vector<32x32xbf16>
    %cst_527 = arith.constant dense<0.000000e+00> : vector<1x32xf32>
    %603 = tpu.matmul %601, %602, %cst_527 {dimension_numbers = #tpu.dot_dimension_numbers<[1], [0], [0], [1], [0, 0, 1, 1], [], []>} : vector<1x32xbf16>, vector<32x32xbf16>, vector<1x32xf32> -> vector<1x32xf32>
    %604 = arith.addf %598, %603 : vector<1x32xf32>
    %c0_528 = arith.constant 0 : index
    %c20_529 = arith.constant 20 : index
    %c0_530 = arith.constant 0 : index
    %605 = vector.load %arg12[%c0_528, %c20_529, %c0_530] : memref<1x24x32xf32, #tpu.memory_space<vmem>>, vector<1x1x32xf32>
    %606 = vector.shape_cast %605 : vector<1x1x32xf32> to vector<1x32xf32>
    %607 = arith.truncf %606 : vector<1x32xf32> to vector<1x32xbf16>
    %c128_531 = arith.constant 128 : index
    %c0_532 = arith.constant 0 : index
    %608 = vector.load %arg6[%c128_531, %c0_532] : memref<160x32xbf16, #tpu.memory_space<vmem>>, vector<32x32xbf16>
    %cst_533 = arith.constant dense<0.000000e+00> : vector<1x32xf32>
    %609 = tpu.matmul %607, %608, %cst_533 {dimension_numbers = #tpu.dot_dimension_numbers<[1], [0], [0], [1], [0, 0, 1, 1], [], []>} : vector<1x32xbf16>, vector<32x32xbf16>, vector<1x32xf32> -> vector<1x32xf32>
    %610 = arith.addf %604, %609 : vector<1x32xf32>
    %c4_534 = arith.constant 4 : index
    %c0_535 = arith.constant 0 : index
    %611 = vector.load %arg8[%c4_534, %c0_535] : memref<8x32xf32, #tpu.memory_space<vmem>>, vector<1x32xf32>
    %612 = arith.addf %610, %611 : vector<1x32xf32>
    %cst_536 = arith.constant 0.000000e+00 : f32
    %613 = vector.broadcast %cst_536 : f32 to vector<1x32xf32>
    %614 = arith.cmpf oge, %612, %613 : vector<1x32xf32>
    %cst_537 = arith.constant 1.000000e-01 : f32
    %615 = vector.broadcast %cst_537 : f32 to vector<1x32xf32>
    %616 = arith.mulf %615, %612 : vector<1x32xf32>
    %617 = arith.select %614, %612, %616 : vector<1x32xi1>, vector<1x32xf32>
    %cst_538 = arith.constant 0.000000e+00 : f32
    %618 = vector.broadcast %cst_538 : f32 to vector<1x32xf32>
    %c0_539 = arith.constant 0 : index
    %c16_540 = arith.constant 16 : index
    %c0_541 = arith.constant 0 : index
    %619 = vector.load %arg13[%c0_539, %c16_540, %c0_541] : memref<1x24x32xf32, #tpu.memory_space<vmem>>, vector<1x1x32xf32>
    %620 = vector.shape_cast %619 : vector<1x1x32xf32> to vector<1x32xf32>
    %621 = vector.shape_cast %618 : vector<1x32xf32> to vector<1x1x32xf32>
    tpu.vector_store %arg13[%c0_539, %c16_540, %c0_541], %621 {strides = array<i32>} : memref<1x24x32xf32, #tpu.memory_space<vmem>>, vector<1x1x32xf32>,
    %c0_542 = arith.constant 0 : index
    %c18_543 = arith.constant 18 : index
    %c0_544 = arith.constant 0 : index
    %622 = vector.load %arg13[%c0_542, %c18_543, %c0_544] : memref<1x24x32xf32, #tpu.memory_space<vmem>>, vector<1x1x32xf32>
    %623 = vector.shape_cast %622 : vector<1x1x32xf32> to vector<1x32xf32>
    %624 = vector.shape_cast %618 : vector<1x32xf32> to vector<1x1x32xf32>
    tpu.vector_store %arg13[%c0_542, %c18_543, %c0_544], %624 {strides = array<i32>} : memref<1x24x32xf32, #tpu.memory_space<vmem>>, vector<1x1x32xf32>,
    %c0_545 = arith.constant 0 : index
    %c17_546 = arith.constant 17 : index
    %c0_547 = arith.constant 0 : index
    %625 = vector.load %arg13[%c0_545, %c17_546, %c0_547] : memref<1x24x32xf32, #tpu.memory_space<vmem>>, vector<1x1x32xf32>
    %626 = vector.shape_cast %625 : vector<1x1x32xf32> to vector<1x32xf32>
    %627 = vector.shape_cast %617 : vector<1x32xf32> to vector<1x1x32xf32>
    tpu.vector_store %arg13[%c0_545, %c17_546, %c0_547], %627 {strides = array<i32>} : memref<1x24x32xf32, #tpu.memory_space<vmem>>, vector<1x1x32xf32>,
    %cst_548 = arith.constant 0.000000e+00 : f32
    %628 = vector.broadcast %cst_548 : f32 to vector<1x1xf32>
    %c0_549 = arith.constant 0 : index
    %c0_550 = arith.constant 0 : index
    %c0_551 = arith.constant 0 : index
    %629 = vector.load %arg13[%c0_549, %c0_550, %c0_551] : memref<1x24x32xf32, #tpu.memory_space<vmem>>, vector<1x1x32xf32>
    %630 = vector.shape_cast %629 : vector<1x1x32xf32> to vector<1x32xf32>
    %c0_552 = arith.constant 0 : index
    %c0_553 = arith.constant 0 : index
    %631 = vector.load %arg7[%c0_552, %c0_553] : memref<3x32xf32, #tpu.memory_space<vmem>>, vector<1x32xf32>
    %632 = arith.mulf %630, %631 : vector<1x32xf32>
    %cst_554 = arith.constant dense<0.000000e+00> : vector<1xf32>
    %633 = vector.multi_reduction <add>, %632, %cst_554 [1] : vector<1x32xf32> to vector<1xf32>
    %634 = vector.shape_cast %633 : vector<1xf32> to vector<1x1xf32>
    %635 = arith.addf %628, %634 : vector<1x1xf32>
    %c0_555 = arith.constant 0 : index
    %c1_556 = arith.constant 1 : index
    %c0_557 = arith.constant 0 : index
    %636 = vector.load %arg13[%c0_555, %c1_556, %c0_557] : memref<1x24x32xf32, #tpu.memory_space<vmem>>, vector<1x1x32xf32>
    %637 = vector.shape_cast %636 : vector<1x1x32xf32> to vector<1x32xf32>
    %c1_558 = arith.constant 1 : index
    %c0_559 = arith.constant 0 : index
    %638 = vector.load %arg7[%c1_558, %c0_559] : memref<3x32xf32, #tpu.memory_space<vmem>>, vector<1x32xf32>
    %639 = arith.mulf %637, %638 : vector<1x32xf32>
    %cst_560 = arith.constant dense<0.000000e+00> : vector<1xf32>
    %640 = vector.multi_reduction <add>, %639, %cst_560 [1] : vector<1x32xf32> to vector<1xf32>
    %641 = vector.shape_cast %640 : vector<1xf32> to vector<1x1xf32>
    %642 = arith.addf %635, %641 : vector<1x1xf32>
    %c0_561 = arith.constant 0 : index
    %c2_562 = arith.constant 2 : index
    %c0_563 = arith.constant 0 : index
    %643 = vector.load %arg13[%c0_561, %c2_562, %c0_563] : memref<1x24x32xf32, #tpu.memory_space<vmem>>, vector<1x1x32xf32>
    %644 = vector.shape_cast %643 : vector<1x1x32xf32> to vector<1x32xf32>
    %c2_564 = arith.constant 2 : index
    %c0_565 = arith.constant 0 : index
    %645 = vector.load %arg7[%c2_564, %c0_565] : memref<3x32xf32, #tpu.memory_space<vmem>>, vector<1x32xf32>
    %646 = arith.mulf %644, %645 : vector<1x32xf32>
    %cst_566 = arith.constant dense<0.000000e+00> : vector<1xf32>
    %647 = vector.multi_reduction <add>, %646, %cst_566 [1] : vector<1x32xf32> to vector<1xf32>
    %648 = vector.shape_cast %647 : vector<1xf32> to vector<1x1xf32>
    %649 = arith.addf %642, %648 : vector<1x1xf32>
    %c5 = arith.constant 5 : index
    %c0_567 = arith.constant 0 : index
    %650 = vector.load %arg8[%c5, %c0_567] : memref<8x32xf32, #tpu.memory_space<vmem>>, vector<1x1xf32>
    %651 = arith.addf %649, %650 : vector<1x1xf32>
    %c0_568 = arith.constant 0 : index
    %c0_569 = arith.constant 0 : index
    %c0_570 = arith.constant 0 : index
    %652 = vector.load %arg14[%c0_568, %c0_569, %c0_570] : memref<1x24x1xf32, #tpu.memory_space<vmem>>, vector<1x1x1xf32>
    %653 = vector.shape_cast %652 : vector<1x1x1xf32> to vector<1x1xf32>
    %654 = vector.shape_cast %651 : vector<1x1xf32> to vector<1x1x1xf32>
    tpu.vector_store %arg14[%c0_568, %c0_569, %c0_570], %654 {strides = array<i32>} : memref<1x24x1xf32, #tpu.memory_space<vmem>>, vector<1x1x1xf32>,
    %cst_571 = arith.constant 0.000000e+00 : f32
    %655 = vector.broadcast %cst_571 : f32 to vector<1x1xf32>
    %c0_572 = arith.constant 0 : index
    %c8_573 = arith.constant 8 : index
    %c0_574 = arith.constant 0 : index
    %656 = vector.load %arg13[%c0_572, %c8_573, %c0_574] : memref<1x24x32xf32, #tpu.memory_space<vmem>>, vector<1x1x32xf32>
    %657 = vector.shape_cast %656 : vector<1x1x32xf32> to vector<1x32xf32>
    %c0_575 = arith.constant 0 : index
    %c0_576 = arith.constant 0 : index
    %658 = vector.load %arg7[%c0_575, %c0_576] : memref<3x32xf32, #tpu.memory_space<vmem>>, vector<1x32xf32>
    %659 = arith.mulf %657, %658 : vector<1x32xf32>
    %cst_577 = arith.constant dense<0.000000e+00> : vector<1xf32>
    %660 = vector.multi_reduction <add>, %659, %cst_577 [1] : vector<1x32xf32> to vector<1xf32>
    %661 = vector.shape_cast %660 : vector<1xf32> to vector<1x1xf32>
    %662 = arith.addf %655, %661 : vector<1x1xf32>
    %c0_578 = arith.constant 0 : index
    %c9_579 = arith.constant 9 : index
    %c0_580 = arith.constant 0 : index
    %663 = vector.load %arg13[%c0_578, %c9_579, %c0_580] : memref<1x24x32xf32, #tpu.memory_space<vmem>>, vector<1x1x32xf32>
    %664 = vector.shape_cast %663 : vector<1x1x32xf32> to vector<1x32xf32>
    %c1_581 = arith.constant 1 : index
    %c0_582 = arith.constant 0 : index
    %665 = vector.load %arg7[%c1_581, %c0_582] : memref<3x32xf32, #tpu.memory_space<vmem>>, vector<1x32xf32>
    %666 = arith.mulf %664, %665 : vector<1x32xf32>
    %cst_583 = arith.constant dense<0.000000e+00> : vector<1xf32>
    %667 = vector.multi_reduction <add>, %666, %cst_583 [1] : vector<1x32xf32> to vector<1xf32>
    %668 = vector.shape_cast %667 : vector<1xf32> to vector<1x1xf32>
    %669 = arith.addf %662, %668 : vector<1x1xf32>
    %c0_584 = arith.constant 0 : index
    %c10_585 = arith.constant 10 : index
    %c0_586 = arith.constant 0 : index
    %670 = vector.load %arg13[%c0_584, %c10_585, %c0_586] : memref<1x24x32xf32, #tpu.memory_space<vmem>>, vector<1x1x32xf32>
    %671 = vector.shape_cast %670 : vector<1x1x32xf32> to vector<1x32xf32>
    %c2_587 = arith.constant 2 : index
    %c0_588 = arith.constant 0 : index
    %672 = vector.load %arg7[%c2_587, %c0_588] : memref<3x32xf32, #tpu.memory_space<vmem>>, vector<1x32xf32>
    %673 = arith.mulf %671, %672 : vector<1x32xf32>
    %cst_589 = arith.constant dense<0.000000e+00> : vector<1xf32>
    %674 = vector.multi_reduction <add>, %673, %cst_589 [1] : vector<1x32xf32> to vector<1xf32>
    %675 = vector.shape_cast %674 : vector<1xf32> to vector<1x1xf32>
    %676 = arith.addf %669, %675 : vector<1x1xf32>
    %c5_590 = arith.constant 5 : index
    %c0_591 = arith.constant 0 : index
    %677 = vector.load %arg8[%c5_590, %c0_591] : memref<8x32xf32, #tpu.memory_space<vmem>>, vector<1x1xf32>
    %678 = arith.addf %676, %677 : vector<1x1xf32>
    %c0_592 = arith.constant 0 : index
    %c8_593 = arith.constant 8 : index
    %c0_594 = arith.constant 0 : index
    %679 = vector.load %arg14[%c0_592, %c8_593, %c0_594] : memref<1x24x1xf32, #tpu.memory_space<vmem>>, vector<1x1x1xf32>
    %680 = vector.shape_cast %679 : vector<1x1x1xf32> to vector<1x1xf32>
    %681 = vector.shape_cast %678 : vector<1x1xf32> to vector<1x1x1xf32>
    tpu.vector_store %arg14[%c0_592, %c8_593, %c0_594], %681 {strides = array<i32>} : memref<1x24x1xf32, #tpu.memory_space<vmem>>, vector<1x1x1xf32>,
    %cst_595 = arith.constant 0.000000e+00 : f32
    %682 = vector.broadcast %cst_595 : f32 to vector<1x1xf32>
    %c0_596 = arith.constant 0 : index
    %c16_597 = arith.constant 16 : index
    %c0_598 = arith.constant 0 : index
    %683 = vector.load %arg13[%c0_596, %c16_597, %c0_598] : memref<1x24x32xf32, #tpu.memory_space<vmem>>, vector<1x1x32xf32>
    %684 = vector.shape_cast %683 : vector<1x1x32xf32> to vector<1x32xf32>
    %c0_599 = arith.constant 0 : index
    %c0_600 = arith.constant 0 : index
    %685 = vector.load %arg7[%c0_599, %c0_600] : memref<3x32xf32, #tpu.memory_space<vmem>>, vector<1x32xf32>
    %686 = arith.mulf %684, %685 : vector<1x32xf32>
    %cst_601 = arith.constant dense<0.000000e+00> : vector<1xf32>
    %687 = vector.multi_reduction <add>, %686, %cst_601 [1] : vector<1x32xf32> to vector<1xf32>
    %688 = vector.shape_cast %687 : vector<1xf32> to vector<1x1xf32>
    %689 = arith.addf %682, %688 : vector<1x1xf32>
    %c0_602 = arith.constant 0 : index
    %c17_603 = arith.constant 17 : index
    %c0_604 = arith.constant 0 : index
    %690 = vector.load %arg13[%c0_602, %c17_603, %c0_604] : memref<1x24x32xf32, #tpu.memory_space<vmem>>, vector<1x1x32xf32>
    %691 = vector.shape_cast %690 : vector<1x1x32xf32> to vector<1x32xf32>
    %c1_605 = arith.constant 1 : index
    %c0_606 = arith.constant 0 : index
    %692 = vector.load %arg7[%c1_605, %c0_606] : memref<3x32xf32, #tpu.memory_space<vmem>>, vector<1x32xf32>
    %693 = arith.mulf %691, %692 : vector<1x32xf32>
    %cst_607 = arith.constant dense<0.000000e+00> : vector<1xf32>
    %694 = vector.multi_reduction <add>, %693, %cst_607 [1] : vector<1x32xf32> to vector<1xf32>
    %695 = vector.shape_cast %694 : vector<1xf32> to vector<1x1xf32>
    %696 = arith.addf %689, %695 : vector<1x1xf32>
    %c0_608 = arith.constant 0 : index
    %c18_609 = arith.constant 18 : index
    %c0_610 = arith.constant 0 : index
    %697 = vector.load %arg13[%c0_608, %c18_609, %c0_610] : memref<1x24x32xf32, #tpu.memory_space<vmem>>, vector<1x1x32xf32>
    %698 = vector.shape_cast %697 : vector<1x1x32xf32> to vector<1x32xf32>
    %c2_611 = arith.constant 2 : index
    %c0_612 = arith.constant 0 : index
    %699 = vector.load %arg7[%c2_611, %c0_612] : memref<3x32xf32, #tpu.memory_space<vmem>>, vector<1x32xf32>
    %700 = arith.mulf %698, %699 : vector<1x32xf32>
    %cst_613 = arith.constant dense<0.000000e+00> : vector<1xf32>
    %701 = vector.multi_reduction <add>, %700, %cst_613 [1] : vector<1x32xf32> to vector<1xf32>
    %702 = vector.shape_cast %701 : vector<1xf32> to vector<1x1xf32>
    %703 = arith.addf %696, %702 : vector<1x1xf32>
    %c5_614 = arith.constant 5 : index
    %c0_615 = arith.constant 0 : index
    %704 = vector.load %arg8[%c5_614, %c0_615] : memref<8x32xf32, #tpu.memory_space<vmem>>, vector<1x1xf32>
    %705 = arith.addf %703, %704 : vector<1x1xf32>
    %c0_616 = arith.constant 0 : index
    %c16_617 = arith.constant 16 : index
    %c0_618 = arith.constant 0 : index
    %706 = vector.load %arg14[%c0_616, %c16_617, %c0_618] : memref<1x24x1xf32, #tpu.memory_space<vmem>>, vector<1x1x1xf32>
    %707 = vector.shape_cast %706 : vector<1x1x1xf32> to vector<1x1xf32>
    %708 = vector.shape_cast %705 : vector<1x1xf32> to vector<1x1x1xf32>
    tpu.vector_store %arg14[%c0_616, %c16_617, %c0_618], %708 {strides = array<i32>} : memref<1x24x1xf32, #tpu.memory_space<vmem>>, vector<1x1x1xf32>,
    return
  }
  func.func @transform_0(%arg0: i32) -> (i32, i32, i32) {
    %c0_i32 = arith.constant 0 : i32
    %c0_i32_0 = arith.constant 0 : i32
    %c0_i32_1 = arith.constant 0 : i32
    return %arg0, %c0_i32, %c0_i32_0 : i32, i32, i32
  }
  func.func @transform_1(%arg0: i32) -> (i32, i32) {
    %c0_i32 = arith.constant 0 : i32
    %c0_i32_0 = arith.constant 0 : i32
    %c0_i32_1 = arith.constant 0 : i32
    return %c0_i32, %c0_i32_0 : i32, i32
  }
  func.func @transform_2(%arg0: i32) -> (i32, i32) {
    %c0_i32 = arith.constant 0 : i32
    %c0_i32_0 = arith.constant 0 : i32
    %c0_i32_1 = arith.constant 0 : i32
    return %c0_i32, %c0_i32_0 : i32, i32
  }
  func.func @transform_3(%arg0: i32) -> (i32, i32) {
    %c0_i32 = arith.constant 0 : i32
    %c0_i32_0 = arith.constant 0 : i32
    %c0_i32_1 = arith.constant 0 : i32
    return %c0_i32, %c0_i32_0 : i32, i32
  }
  func.func @transform_4(%arg0: i32) -> (i32, i32) {
    %c0_i32 = arith.constant 0 : i32
    %c0_i32_0 = arith.constant 0 : i32
    %c0_i32_1 = arith.constant 0 : i32
    return %c0_i32, %c0_i32_0 : i32, i32
  }
  func.func @transform_5(%arg0: i32) -> (i32, i32) {
    %c0_i32 = arith.constant 0 : i32
    %c0_i32_0 = arith.constant 0 : i32
    %c0_i32_1 = arith.constant 0 : i32
    return %c0_i32, %c0_i32_0 : i32, i32
  }
  func.func @transform_6(%arg0: i32) -> (i32, i32) {
    %c0_i32 = arith.constant 0 : i32
    %c0_i32_0 = arith.constant 0 : i32
    %c0_i32_1 = arith.constant 0 : i32
    return %c0_i32, %c0_i32_0 : i32, i32
  }
  func.func @transform_7(%arg0: i32) -> (i32, i32) {
    %c0_i32 = arith.constant 0 : i32
    %c0_i32_0 = arith.constant 0 : i32
    %c0_i32_1 = arith.constant 0 : i32
    return %c0_i32, %c0_i32_0 : i32, i32
  }
  func.func @transform_8(%arg0: i32) -> (i32, i32, i32) {
    %c0_i32 = arith.constant 0 : i32
    %c0_i32_0 = arith.constant 0 : i32
    %c0_i32_1 = arith.constant 0 : i32
    return %arg0, %c0_i32, %c0_i32_0 : i32, i32, i32
  }
  func.func @transform_9(%arg0: i32) -> (i32, i32, i32) {
    %c0_i32 = arith.constant 0 : i32
    %c0_i32_0 = arith.constant 0 : i32
    %c0_i32_1 = arith.constant 0 : i32
    return %arg0, %c0_i32, %c0_i32_0 : i32, i32, i32
  }
  func.func @transform_10(%arg0: i32) -> (i32, i32, i32) {
    %c0_i32 = arith.constant 0 : i32
    %c0_i32_0 = arith.constant 0 : i32
    %c0_i32_1 = arith.constant 0 : i32
    return %arg0, %c0_i32, %c0_i32_0 : i32, i32, i32
  }
  func.func @transform_11(%arg0: i32) -> (i32, i32, i32) {
    %c0_i32 = arith.constant 0 : i32
    %c0_i32_0 = arith.constant 0 : i32
    %c0_i32_1 = arith.constant 0 : i32
    return %arg0, %c0_i32, %c0_i32_0 : i32, i32, i32
  }
  func.func @transform_12(%arg0: i32) -> (i32, i32, i32) {
    %c0_i32 = arith.constant 0 : i32
    %c0_i32_0 = arith.constant 0 : i32
    %c0_i32_1 = arith.constant 0 : i32
    return %arg0, %c0_i32, %c0_i32_0 : i32, i32, i32
  }
  func.func @transform_13(%arg0: i32) -> (i32, i32, i32) {
    %c0_i32 = arith.constant 0 : i32
    %c0_i32_0 = arith.constant 0 : i32
    %c0_i32_1 = arith.constant 0 : i32
    return %arg0, %c0_i32, %c0_i32_0 : i32, i32, i32
  }
}

</mosaic_0001>

<bundles_post_ra>
// kernel: tpu_custom_call.1
= control target key start
LH: loop header
LB: loop body
LE: loop exit
PB: predicated region body
PF: predicated region fallthrough
CT: control target
= control target key end

     0   :  { %s6668_s0 = inlined_call_operand.vmem [shape: f32[2,48,8], index: 0, kind: input, shape index: {}]   ;;  %s6669_s1 = inlined_call_operand.vmem [shape: bf16[8,8], index: 1, kind: input, shape index: {}]   ;;  %s6670_s2 = inlined_call_operand.vmem [shape: bf16[40,16], index: 2, kind: input, shape index: {}]   ;;  %s6671_s3 = inlined_call_operand.vmem [shape: bf16[80,32], index: 3, kind: input, shape index: {}]   ;;  %s6672_s4 = inlined_call_operand.vmem [shape: bf16[160,32], index: 4, kind: input, shape index: {}]   ;;  %s6673_s5 = inlined_call_operand.vmem [shape: bf16[160,32], index: 5, kind: input, shape index: {}]   ;;  %s6674_s6 = inlined_call_operand.vmem [shape: f32[3,32], index: 6, kind: input, shape index: {}]   ;;  %s6675_s7 = inlined_call_operand.vmem [shape: f32[8,32], index: 7, kind: input, shape index: {}]   ;;  %s6676_s8 = inlined_call_operand.vmem [shape: f32[2,48,8], index: 8, kind: output, shape index: {0}]   ;;  %s6677_s9 = inlined_call_operand.vmem [shape: f32[2,24,16], index: 9, kind: output, shape index: {1}]   ;;  %s6678_s10 = inlined_call_operand.hbm [shape: f32[2,24,32], index: 10, kind: output, shape index: {2}]   ;;  %s6679_s11 = inlined_call_operand.hbm [shape: f32[2,24,32], index: 11, kind: output, shape index: {3}]   ;;  %s6680_s12 = inlined_call_operand.hbm [shape: f32[2,24,32], index: 12, kind: output, shape index: {4}]   ;;  %s6681_s13 = inlined_call_operand.vmem [shape: f32[2,24,1], index: 13, kind: output, shape index: {5}]  }
   0x1   :  { %6685 = sst [smem:[#allocation9_spill]] %s6668_s0 }
   0x2   :  { %6686 = sst [smem:[#allocation10_spill]] %s6669_s1 }
   0x3   :  { %6687 = sst [smem:[#allocation11_spill]] %s6670_s2 }
   0x4   :  { %6688 = sst [smem:[#allocation12_spill]] %s6671_s3 }
   0x5   :  { %6689 = sst [smem:[#allocation13_spill]] %s6672_s4 }
   0x6   :  { %6690 = sst [smem:[#allocation14_spill]] %s6673_s5 }
   0x7   :  { %6691 = sst [smem:[#allocation15_spill]] %s6674_s6 }
   0x8   :  { %6692 = sst [smem:[#allocation16_spill]] %s6676_s8 }
   0x9   :  { %6693 = sst [smem:[#allocation17_spill]] %s6677_s9 }
   0xa   :  { %6694 = sst [smem:[#allocation18_spill]] %s6679_s11 }
   0xb   :  { %19 = vsyncpa [#allocation3], 0 }
   0xc   :  { %21 = vsyncpa [#allocation3 + $0x1], 0 }
   0xd   :  { %22 = vsyncpa [#allocation5], 0 }
   0xe   :  { %24 = vsyncpa [#allocation5 + $0x1], 0  ;;  %s5616_s25 = smov 0   ;;  %s5618_s26 = smov 0  }
   0xf   :  { %s5620_s27 = smov 0   ;;  %s5622_s28 = smov 0  }
  0x10 LB: > { %s5637_s29 = sadd.s32 4294967295, %s5537_s28   ;;  %s6682_s30 = sadd.s32 4294967294, %s5537_s28   ;;  %s5537_s28 = sphi %s5622_s28, %s6713_s28   ;;  %s5533_s27 = sphi %s5620_s27, %s6712_s27   ;;  %s5529_s26 = sphi %s5618_s26, %s6711_s26   ;;  %s5525_s25 = sphi %s5616_s25, %s6710_s25  }
  0x11   : > { %s5641_s14 = sadd.s32 1, %s5537_s28   ;;  %s262_s15 = sadd.s32 1, %s5533_s27 }
  0x12   : > { %s259_s16 = ssub.s32 %s5537_s28, %s5641_s14  ;;  %p272_p0 = scmp.ne.s32.totalorder %s5533_s27, %s5529_s26 }
  0x13   : > { %p260_p1 = scmp.eq.s32.totalorder %s259_s16, 0  ;;  %p273_p2 = scmp.eq.s32.totalorder %s5637_s29, 1 }
  0x14   : > { %p278_p3 = scmp.ne.s32.totalorder %s5529_s26, %s5525_s25  ;;  %p279_p4 = scmp.eq.s32.totalorder %s6682_s30, 1 }
  0x15   : > { %s5654_s17 = scalar_select %p260_p1, %s5533_s27, %s262_s15  }
  0x16   : > { %p5656_p5 = por %p273_p2, %p272_p0  ;;  %p5660_p6 = por %p279_p4, %p278_p3 }
  0x17   : > { %p4516_p7 = scmp.ge.s32.totalorder %s5537_s28, 1  ;;  %p404_p8 = scmp.lt.s32.totalorder %s5537_s28, 3 }
  0x19   : > { %p405_p9 = pnand %p4516_p7, %p404_p8 }
  0x1a   : > { %s6697_s1 = sld [smem:[#allocation10_spill]] (!%p405_p9)  ;;  %p473_p10 = scmp.lt.s32.totalorder (!%p405_p9), %s5637_s29, 1 }
  0x1b   : > { %408 = sbr.rel (%p405_p9) target bundleno = 1336 (0x538), region = 52  ;;  %s6698_s0 = sld [smem:[#allocation9_spill]] (!%p405_p9) }
  0x1c   : > { %s6699_s8 = sld [smem:[#allocation16_spill]] (!%p405_p9) }
  0x1d   : > { %s6700_s2 = sld [smem:[#allocation11_spill]] (!%p405_p9) }
  0x1e   : > { %s6701_s9 = sld [smem:[#allocation17_spill]] (!%p405_p9) }
  0x1f   : > { %s6702_s3 = sld [smem:[#allocation12_spill]] (!%p405_p9) }
  0x20   : > { %v503_v0 = vld [vmem:[%s6697_s1] sm:$0xf]  ;;  %vm519_vm0 = vcmask 1043456   ;;  %v5539_v1 = vmov 0.0   ;;  %vm5540_vm1 = vmmov 0   ;;  %s5675_s22 = scalar_select %p473_p10, %s5637_s29, 1 }
  0x21   : > { %4853 = vmatprep.subr.bf16.mxu0 %v5539_v1  ;;  %v521_v2 = vsel %vm519_vm0, %v503_v0, 0  ;;  %4855 = vmatprep.mubr.msk.bf16.mxu0 %vm5540_vm1, %v5539_v1  ;;  %vm509_vm2 = vcmask 64512   ;;  %vm598_vm3 = vcmask 58368   ;;  %v4521_v16 = vld [vmem:[%s6675_s7] ss:$0 sm:$0xff]  ;;  %vm602_vm6 = vcmask 59392  }
  0x22   : > { %4854 = vmatpush3.bf16.msra.mxu0 %v521_v2  ;;  %4867 = vmatprep.subr.bf16.mxu1 %v5539_v1  ;;  %s5288_s23 = smul.u32 48, %s5675_s22  ;;  %vm873_vm11 = vcmask 123904   ;;  %vm876_vm13 = vcmask 125952   ;;  %vm1423_vm14 = vcmask 130048   ;;  %s6703_s4 = sld [smem:[#allocation13_spill]] }
  0x23   : > { %4885 = vmatprep.subr.bf16.mxu0 %v5539_v1  ;;  %4869 = vmatprep.mubr.msk.bf16.mxu1 %vm5540_vm1, %v5539_v1  ;;  %v618_v12 = vld [vmem:[%s6700_s2 + $0x4] sm:$0xf]  ;;  %v765_v13 = vld [vmem:[%s6700_s2 + $0xc] sm:$0xf]  ;;  %v614_v34 = vld [vmem:[%s6700_s2] sm:$0xf] }
  0x24   : > { %s477_s16 = scalar_lea.vmem %s6698_s0, %s5288_s23  ;;  %s5697_s24 = scalar_lea.vmem %s6699_s8, %s5288_s23  ;;  %v623_v14 = vsel %vm519_vm0, %v618_v12, 0  ;;  %v770_v15 = vsel %vm519_vm0, %v765_v13, 0  ;;  %v885_v37 = vld [vmem:[%s6700_s2 + $0x4] sm:$0xf]  ;;  %v669_v44 = vsel %vm519_vm0, %v614_v34, 0 }
  0x25   : > { %v494_v3 = vld [vmem:[%s477_s16] sm:$0xff]  ;;  %v495_v4 = vld [vmem:[%s477_s16 + $0x8] sm:$0xff]  ;;  %v496_v6 = vld [vmem:[%s477_s16 + $0x10] sm:$0xff]  ;;  %599 = vst.msk [vmem:[%s5697_s24] sm:$0x3] %vm598_vm3, %v5539_v1  ;;  %4868 = vmatpush3.bf16.msra.mxu1 %v623_v14  ;;  %v890_v46 = vsel %vm519_vm0, %v885_v37, 0 }
  0x26   : > { %v500_v5 = vpack.c.bf16 %v495_v4, %v494_v3  ;;  %v497_v7 = vld [vmem:[%s477_s16 + $0x18] sm:$0xff]  ;;  %v498_v9 = vld [vmem:[%s477_s16 + $0x20] sm:$0xff]  ;;  %v499_v10 = vld [vmem:[%s477_s16 + $0x28] sm:$0xff]  ;;  %600 = vst.msk [vmem:[%s5697_s24 + $0xd] sm:$0x3] %vm598_vm3, %v5539_v1  ;;  %4873 = vmatprep.subr.bf16.mxu1 %v5539_v1  ;;  %s6683_s15 = smul.u32 24, %s5675_s22 }
  0x27   : > { %v501_v8 = vpack.c.bf16 %v497_v7, %v496_v6  ;;  %v502_v11 = vpack.c.bf16 %v499_v10, %v498_v9  ;;  %604 = vst.msk [vmem:[%s5697_s24 + $0x10] sm:$0x3] %vm598_vm3, %v5539_v1  ;;  %605 = vst.msk [vmem:[%s5697_s24 + $0x1d] sm:$0x3] %vm598_vm3, %v5539_v1  ;;  %v714_v52 = vld [vmem:[%s6700_s2 + $0x8] sm:$0xf] }
  0x28   : > { %4856 = vmatmul.mubr.msk.bf16.vlgmr.msra.gmra.mxu0 %vm509_vm2, %v500_v5  ;;  %608 = vst.msk [vmem:[%s5697_s24 + $0x20] sm:$0x3] %vm598_vm3, %v5539_v1  ;;  %609 = vst.msk [vmem:[%s5697_s24 + $0x2d] sm:$0x3] %vm598_vm3, %v5539_v1  ;;  %v981_v53 = vld [vmem:[%s6700_s2 + $0x8] sm:$0xf]  ;;  %s5867_s21 = scalar_lea.vmem %s6701_s9, %s6683_s15 }
  0x29   : > { %4859 = vmatprep.mubr.msk.bf16.mxu0 %vm5540_vm1, %v5539_v1  ;;  %4886 = vmatpush3.bf16.msra.mxu0 %v770_v15  ;;  %v719_v60 = vsel %vm519_vm0, %v714_v52, 0  ;;  %v986_v62 = vsel %vm519_vm0, %v981_v53, 0  ;;  %v816_v0 = vld [vmem:[%s6700_s2 + $0x10] sm:$0xf]  ;;  %v881_v9 = vld [vmem:[%s6700_s2] sm:$0xf] }
  0x2a   : > { %4897 = vmatprep.subr.bf16.mxu0 %v5539_v1  ;;  %v1083_v3 = vld [vmem:[%s6700_s2 + $0x10] sm:$0xf]  ;;  %v821_v6 = vsel %vm519_vm0, %v816_v0, 0  ;;  %v936_v14 = vsel %vm519_vm0, %v881_v9, 0  ;;  %874 = vst.msk [vmem:[%s5867_s21] sm:$0x3] %vm873_vm11, %v5539_v1 }
  0x2b   : > { %v1088_v7 = vsel %vm519_vm0, %v1083_v3, 0  ;;  %875 = vst.msk [vmem:[%s5867_s21 + $0x6] sm:$0x3] %vm873_vm11, %v5539_v1  ;;  %1140 = vst.msk [vmem:[%s5867_s21 + $0x8] sm:$0x3] %vm873_vm11, %v5539_v1  ;;  %s6684_s23 = sand.u32 1, %s5529_s26  }
  0x2c   : > { %1141 = vst.msk [vmem:[%s5867_s21 + $0xe] sm:$0x3] %vm873_vm11, %v5539_v1  ;;  %1405 = vst.msk [vmem:[%s5867_s21 + $0x10] sm:$0x3] %vm873_vm11, %v5539_v1  ;;  %s6021_s16 = smul.u32 24, %s6684_s23  ;;  %vm2288_vm3 = vcmask 261120  }
  0x2d   : > { %1406 = vst.msk [vmem:[%s5867_s21 + $0x16] sm:$0x3] %vm873_vm11, %v5539_v1  ;;  %s6704_s5 = sld [smem:[#allocation14_spill]]  ;;  %s4250_s15 = sand.u32 1, %s5637_s29  }
  0x2e   : > { %s6244_s1 = scalar_lea.vmem [#allocation4], %s6021_s16  ;;  %s6705_s6 = sld [smem:[#allocation15_spill]] }
  0x2f   : > { %s4296_s30 = sshll.u32 %s6244_s1, 4  ;;  %s6706_s11 = sld [smem:[#allocation18_spill]]  ;;  %s6543_s30 = int_to_ptr.vmem [resolvable:$true] %s4296_s30 }
  0x30   : > { %4860 = vmatmul.mubr.msk.bf16.gmra.mxu0 %vm509_vm2, %v501_v8  ;;  %s6545_s23 = scalar_lea.sflag [#allocation5], %s4250_s15 }
  0x31   : > { %4863 = vmatprep.mubr.msk.bf16.mxu0 %vm5540_vm1, %v5539_v1 }
  0x38   : > { %4864 = vmatmul.mubr.msk.bf16.gmra.mxu0 %vm509_vm2, %v502_v11  ;;  %v1146_v11 = vld [vmem:[%s6700_s2] sm:$0xf] }
  0x39   : > { %4887 = vmatprep.mubr.msk.bf16.mxu0 %vm5540_vm1, %v5539_v1  ;;  %v1201_v15 = vsel %vm519_vm0, %v1146_v11, 0 }
  0xe8   : > { %v557_v17 = vpop.f32.mrf.mxu0 }
  0xe9   : > { %v558_v18 = vadd.f32 %v4521_v16, %v557_v17  ;;  %v1032_v17 = vld [vmem:[%s6700_s2 + $0xc] sm:$0xf] }
  0xea   : > { %v4857_v19 = vpop.f32.mrf.mxu0 }
  0xeb   : > { %vm580_vm4 = vcmp.ge.f32.partialorder %v558_v18, 0.0  ;;  %v586_v20 = vmul.f32 0.1, %v558_v18  ;;  %v1297_v19 = vld [vmem:[%s6700_s2 + $0xc] sm:$0xf] }
  0xec   : > { %v560_v21 = vpop.f32.mrf.mxu0 }
  0xed   : > { %v592_v22 = vsel %vm580_vm4, %v558_v18, %v586_v20  ;;  %v561_v23 = vadd.f32 %v4521_v16, %v560_v21 }
  0xee   : > { %601 = vst.msk [vmem:[%s5697_s24 + $0x2] sm:$0xff] %vm509_vm2, %v592_v22  ;;  %v4858_v24 = vpop.f32.mrf.mxu0  ;;  %v1037_v22 = vsel %vm519_vm0, %v1032_v17, 0 }
  0xef   : > { %vm581_vm5 = vcmp.ge.f32.partialorder %v561_v23, 0.0  ;;  %v587_v25 = vmul.f32 0.1, %v561_v23 }
  0xf0   : > { %v565_v26 = vpop.f32.mrf.mxu0 }
  0xf1   : > { %v593_v27 = vsel %vm581_vm5, %v561_v23, %v587_v25  ;;  %v566_v28 = vadd.f32 %v4521_v16, %v565_v26  ;;  %v1302_v23 = vsel %vm519_vm0, %v1297_v19, 0  ;;  %v1150_v26 = vld [vmem:[%s6700_s2 + $0x4] sm:$0xf] }
  0xf2   : > { %603 = vst.msk [vmem:[%s5697_s24 + $0xa] sm:$0x7] %vm602_vm6, %v593_v27  ;;  %v4861_v29 = vpop.f32.mrf.mxu0 }
  0xf3   : > { %vm582_vm7 = vcmp.ge.f32.partialorder %v566_v28, 0.0  ;;  %v588_v30 = vmul.f32 0.1, %v566_v28  ;;  %v1155_v29 = vsel %vm519_vm0, %v1150_v26, 0 }
  0xf4   : > { %v568_v31 = vpop.f32.mrf.mxu0 }
  0xf5   : > { %v594_v32 = vsel %vm582_vm7, %v566_v28, %v588_v30  ;;  %v569_v33 = vadd.f32 %v4521_v16, %v568_v31  ;;  %v612_v55 = vld [vmem:[%s5697_s24] ss:$3 sm:$0xf] }
  0xf6   : > { %606 = vst.msk [vmem:[%s5697_s24 + $0x12] sm:$0xff] %vm509_vm2, %v594_v32  ;;  %v4862_v35 = vpop.f32.mrf.mxu0  ;;  %v613_v59 = vpack.c.bf16 %v612_v55, %v612_v55  ;;  %v1246_v31 = vld [vmem:[%s6700_s2 + $0x8] sm:$0xf] }
  0xf7   : > { %vm583_vm8 = vcmp.ge.f32.partialorder %v569_v33, 0.0  ;;  %v589_v36 = vmul.f32 0.1, %v569_v33  ;;  %v1348_v35 = vld [vmem:[%s6700_s2 + $0x10] sm:$0xf]  ;;  %s5421_s2 = scalar_lea.vmem %s6543_s30, 384 }
  0xf8   : > { %v573_v38 = vpop.f32.mrf.mxu0  ;;  %v1353_v37 = vsel %vm519_vm0, %v1348_v35, 0  ;;  %p5422_p11 = scmp.ne.s32.totalorder %s6543_s30, %s5421_s2 }
  0xf9   : > { %v595_v39 = vsel %vm583_vm8, %v569_v33, %v589_v36  ;;  %v4525_v40 = vld [vmem:[%s5697_s24 + $0x1] ss:$3 sm:$0xf]  ;;  %v4530_v41 = vld [vmem:[%s5697_s24 + $0x3] ss:$3 sm:$0xf]  ;;  %v574_v42 = vadd.f32 %v4521_v16, %v573_v38 }
  0xfa   : > { %607 = vst.msk [vmem:[%s5697_s24 + $0x1a] sm:$0x7] %vm602_vm6, %v595_v39  ;;  %v617_v43 = vpack.c.bf16 %v4525_v40, %v4525_v40  ;;  %v764_v45 = vpack.c.bf16 %v4530_v41, %v4530_v41  ;;  %v4865_v47 = vpop.f32.mrf.mxu0  ;;  %v4528_v2 = vld [vmem:[%s5697_s24 + $0x2] ss:$3 sm:$0xf]  ;;  %v1251_v33 = vsel %vm519_vm0, %v1246_v31, 0  ;;  %p5423_p12 = pnand %p5422_p11, %p5656_p5 }
  0xfb   : > { %vm584_vm9 = vcmp.ge.f32.partialorder %v574_v42, 0.0  ;;  %v590_v48 = vmul.f32 0.1, %v574_v42  ;;  %v713_v5 = vpack.c.bf16 %v4528_v2, %v4528_v2  ;;  %v4532_v10 = vld [vmem:[%s5697_s24 + $0x4] ss:$3 sm:$0xf] }
  0xfc   : > { %4870 = vmatmul.mubr.msk.bf16.vlgmr.msra.gmra.mxu1 %vm509_vm2, %v617_v43  ;;  %4888 = vmatmul.mubr.msk.bf16.vlgmr.msra.gmra.mxu0 %vm509_vm2, %v764_v45  ;;  %v576_v49 = vpop.f32.mrf.mxu0  ;;  %v815_v13 = vpack.c.bf16 %v4532_v10, %v4532_v10  ;;  %v5346_v40 = vld [vmem:[%s6702_s3 + $0x8] sm:$0xff]   ;;  %v5347_v41 = vld [vmem:[%s6702_s3] sm:$0xff]   ;;  %vm2580_vm8 = vcmask 253952   ;;  %p5424_p13 = pneg %p5423_p12 }
  0xfd   : > { %4874 = vmatpush3.bf16.msra.mxu1 %v669_v44  ;;  %4898 = vmatpush3.bf16.msra.mxu0 %v890_v46  ;;  %v596_v50 = vsel %vm584_vm9, %v574_v42, %v590_v48  ;;  %v577_v51 = vadd.f32 %v4521_v16, %v576_v49  ;;  %v4535_v18 = vld [vmem:[%s5697_s24 + $0x10] ss:$3 sm:$0xf] }
  0xfe   : > { %4875 = vmatprep.mubr.msk.bf16.mxu1 %vm5540_vm1, %v5539_v1  ;;  %4879 = vmatprep.subr.bf16.mxu1 %v5539_v1  ;;  %610 = vst.msk [vmem:[%s5697_s24 + $0x22] sm:$0xff] %vm509_vm2, %v596_v50  ;;  %v4866_v54 = vpop.f32.mrf.mxu0  ;;  %v880_v21 = vpack.c.bf16 %v4535_v18, %v4535_v18 }
  0xff   : > { %4899 = vmatprep.mubr.msk.bf16.mxu0 %vm5540_vm1, %v5539_v1  ;;  %4909 = vmatprep.subr.bf16.mxu0 %v5539_v1  ;;  %vm585_vm10 = vcmp.ge.f32.partialorder %v577_v51, 0.0  ;;  %v591_v56 = vmul.f32 0.1, %v577_v51 }
 0x101   : > { %v4536_v57 = vld [vmem:[%s5697_s24 + $0x11] ss:$3 sm:$0xf]  ;;  %v597_v58 = vsel %vm585_vm10, %v577_v51, %v591_v56  ;;  %v4539_v63 = vld [vmem:[%s5697_s24 + $0x12] ss:$3 sm:$0xf] }
 0x102   : > { %v884_v61 = vpack.c.bf16 %v4536_v57, %v4536_v57  ;;  %611 = vst.msk [vmem:[%s5697_s24 + $0x2a] sm:$0x7] %vm602_vm6, %v597_v58  ;;  %v980_v4 = vpack.c.bf16 %v4539_v63, %v4539_v63  ;;  %v4543_v8 = vld [vmem:[%s5697_s24 + $0x14] ss:$3 sm:$0xf] }
 0x103   : > { %v1082_v12 = vpack.c.bf16 %v4543_v8, %v4543_v8  ;;  %v4541_v25 = vld [vmem:[%s5697_s24 + $0x13] ss:$3 sm:$0xf] }
 0x104   : > { %4876 = vmatmul.mubr.msk.bf16.vlgmr.msra.gmra.mxu1 %vm509_vm2, %v613_v59  ;;  %4900 = vmatmul.mubr.msk.bf16.vlgmr.msra.gmra.mxu0 %vm509_vm2, %v884_v61  ;;  %v1031_v28 = vpack.c.bf16 %v4541_v25, %v4541_v25 }
 0x105   : > { %4880 = vmatpush3.bf16.msra.mxu1 %v719_v60  ;;  %4910 = vmatpush3.bf16.msra.mxu0 %v986_v62  ;;  %v4546_v16 = vld [vmem:[%s5697_s24 + $0x20] ss:$3 sm:$0xf] }
 0x106   : > { %4881 = vmatprep.mubr.msk.bf16.mxu1 %vm5540_vm1, %v5539_v1  ;;  %4891 = vmatprep.subr.bf16.mxu1 %v5539_v1  ;;  %v1145_v20 = vpack.c.bf16 %v4546_v16, %v4546_v16 }
 0x107   : > { %4911 = vmatprep.mubr.msk.bf16.mxu0 %vm5540_vm1, %v5539_v1  ;;  %4921 = vmatprep.subr.bf16.mxu0 %v5539_v1 }
 0x109   : > { %v4552_v24 = vld [vmem:[%s5697_s24 + $0x23] ss:$3 sm:$0xf]  ;;  %v4547_v30 = vld [vmem:[%s5697_s24 + $0x21] ss:$3 sm:$0xf] }
 0x10a   : > { %v1296_v27 = vpack.c.bf16 %v4552_v24, %v4552_v24  ;;  %v1149_v32 = vpack.c.bf16 %v4547_v30, %v4547_v30  ;;  %v4550_v34 = vld [vmem:[%s5697_s24 + $0x22] ss:$3 sm:$0xf]  ;;  %v4554_v38 = vld [vmem:[%s5697_s24 + $0x24] ss:$3 sm:$0xf] }
 0x10b   : > { %v1245_v36 = vpack.c.bf16 %v4550_v34, %v4550_v34  ;;  %v1347_v39 = vpack.c.bf16 %v4554_v38, %v4554_v38 }
 0x10c   : > { %4882 = vmatmul.mubr.msk.bf16.vlgmr.msra.gmra.mxu1 %vm509_vm2, %v713_v5  ;;  %4912 = vmatmul.mubr.msk.bf16.vlgmr.msra.gmra.mxu0 %vm509_vm2, %v980_v4 }
 0x10d   : > { %4892 = vmatpush3.bf16.msra.mxu1 %v821_v6  ;;  %4922 = vmatpush3.bf16.msra.mxu0 %v1088_v7  ;;  %v5892_v7 = vld [vmem:[%s6675_s7 + $0x1] ss:$0 sm:$0xff] }
 0x10e   : > { %4893 = vmatprep.mubr.msk.bf16.mxu1 %vm5540_vm1, %v5539_v1  ;;  %4903 = vmatprep.subr.bf16.mxu1 %v5539_v1 }
 0x10f   : > { %4923 = vmatprep.mubr.msk.bf16.mxu0 %vm5540_vm1, %v5539_v1  ;;  %4933 = vmatprep.subr.bf16.mxu0 %v5539_v1 }
 0x114   : > { %4894 = vmatmul.mubr.msk.bf16.vlgmr.msra.gmra.mxu1 %vm509_vm2, %v815_v13  ;;  %4924 = vmatmul.mubr.msk.bf16.vlgmr.msra.gmra.mxu0 %vm509_vm2, %v1082_v12 }
 0x115   : > { %4904 = vmatpush3.bf16.msra.mxu1 %v936_v14  ;;  %4934 = vmatpush3.bf16.msra.mxu0 %v1201_v15 }
 0x116   : > { %4905 = vmatprep.mubr.msk.bf16.mxu1 %vm5540_vm1, %v5539_v1  ;;  %4915 = vmatprep.subr.bf16.mxu1 %v5539_v1 }
 0x117   : > { %4935 = vmatprep.mubr.msk.bf16.mxu0 %vm5540_vm1, %v5539_v1  ;;  %4945 = vmatprep.subr.bf16.mxu0 %v5539_v1 }
 0x11c   : > { %4906 = vmatmul.mubr.msk.bf16.vlgmr.msra.gmra.mxu1 %vm509_vm2, %v880_v21  ;;  %4936 = vmatmul.mubr.msk.bf16.vlgmr.msra.gmra.mxu0 %vm509_vm2, %v1145_v20 }
 0x11d   : > { %4916 = vmatpush3.bf16.msra.mxu1 %v1037_v22  ;;  %4946 = vmatpush3.bf16.msra.mxu0 %v1302_v23 }
 0x11e   : > { %4917 = vmatprep.mubr.msk.bf16.mxu1 %vm5540_vm1, %v5539_v1  ;;  %4927 = vmatprep.subr.bf16.mxu1 %v5539_v1 }
 0x11f   : > { %4947 = vmatprep.mubr.msk.bf16.mxu0 %vm5540_vm1, %v5539_v1  ;;  %4957 = vmatprep.subr.bf16.mxu0 %v5539_v1 }
 0x124   : > { %4918 = vmatmul.mubr.msk.bf16.vlgmr.msra.gmra.mxu1 %vm509_vm2, %v1031_v28  ;;  %4948 = vmatmul.mubr.msk.bf16.vlgmr.msra.gmra.mxu0 %vm509_vm2, %v1296_v27  ;;  %v5348_v28 = vld [vmem:[%s6702_s3 + $0x10] sm:$0xff]  }
 0x125   : > { %4928 = vmatpush3.bf16.msra.mxu1 %v1155_v29  ;;  %4929 = vmatprep.mubr.msk.bf16.mxu1 %vm5540_vm1, %v5539_v1  ;;  %v5349_v29 = vld [vmem:[%s6702_s3 + $0x18] sm:$0xff]  }
 0x126   : > { %4939 = vmatprep.subr.bf16.mxu1 %v5539_v1  ;;  %4959 = vmatprep.mubr.msk.bf16.mxu0 %vm5540_vm1, %v5539_v1 }
 0x127   : > { %4958 = vmatpush3.bf16.msra.mxu0 %v5346_v40 }
 0x128   : > { %4969 = vmatprep.subr.bf16.mxu0 %v5539_v1 }
 0x12c   : > { %4930 = vmatmul.mubr.msk.bf16.vlgmr.msra.gmra.mxu1 %vm509_vm2, %v1149_v32 }
 0x12d   : > { %4940 = vmatpush3.bf16.msra.mxu1 %v1251_v33  ;;  %4941 = vmatprep.mubr.msk.bf16.mxu1 %vm5540_vm1, %v5539_v1 }
 0x12e   : > { %4951 = vmatprep.subr.bf16.mxu1 %v5539_v1 }
 0x134   : > { %4942 = vmatmul.mubr.msk.bf16.vlgmr.msra.gmra.mxu1 %vm509_vm2, %v1245_v36 }
 0x135   : > { %4952 = vmatpush3.bf16.msra.mxu1 %v1353_v37  ;;  %4953 = vmatprep.mubr.msk.bf16.mxu1 %vm5540_vm1, %v5539_v1 }
 0x136   : > { %4963 = vmatprep.subr.bf16.mxu1 %v5539_v1 }
 0x13c   : > { %4954 = vmatmul.mubr.msk.bf16.vlgmr.msra.gmra.mxu1 %vm509_vm2, %v1347_v39  ;;  %vm1690_vm2 = vcmask 254976  }
 0x13d   : > { %4965 = vmatprep.mubr.msk.bf16.mxu1 %vm5540_vm1, %v5539_v1  ;;  %4964 = vmatpush3.bf16.msra.mxu1 %v5347_v41  ;;  %2578 = vst.msk [vmem:[%s6244_s1] sm:$0x3] %vm1690_vm2, %v5539_v1  ;;  %2579 = vst.msk [vmem:[%s6244_s1 + $0x3] sm:$0x3] %vm1690_vm2, %v5539_v1 }
 0x13e   : > { %4975 = vmatprep.subr.bf16.mxu1 %v5539_v1  ;;  %2895 = vst.msk [vmem:[%s6244_s1 + $0x8] sm:$0x3] %vm1690_vm2, %v5539_v1  ;;  %2896 = vst.msk [vmem:[%s6244_s1 + $0xb] sm:$0x3] %vm1690_vm2, %v5539_v1 }
 0x13f   : > { %3211 = vst.msk [vmem:[%s6244_s1 + $0x10] sm:$0x3] %vm1690_vm2, %v5539_v1  ;;  %3212 = vst.msk [vmem:[%s6244_s1 + $0x13] sm:$0x3] %vm1690_vm2, %v5539_v1 }
 0x1bc   : > { %v659_v42 = vpop.f32.mrf.mxu1  ;;  %v806_v43 = vpop.f32.mrf.mxu0 }
 0x1be   : > { %v4871_v44 = vpop.f32.mrf.mxu1  ;;  %v4889_v45 = vpop.f32.mrf.mxu0 }
 0x1c0   : > { %v662_v46 = vpop.f32.mrf.mxu1  ;;  %v809_v47 = vpop.f32.mrf.mxu0 }
 0x1c2   : > { %v4872_v48 = vpop.f32.mrf.mxu1  ;;  %v4890_v49 = vpop.f32.mrf.mxu0 }
 0x1c3   : > { %v5350_v49 = vld [vmem:[%s6702_s3 + $0x20] sm:$0xff]  }
 0x1c4   : > { %v705_v50 = vpop.f32.mrf.mxu1  ;;  %v926_v51 = vpop.f32.mrf.mxu0 }
 0x1c5   : > { %v706_v60 = vadd.f32 %v705_v50, %v659_v42  ;;  %v5351_v50 = vld [vmem:[%s6702_s3 + $0x8] sm:$0xff]  }
 0x1c6   : > { %v4877_v52 = vpop.f32.mrf.mxu1  ;;  %v4901_v53 = vpop.f32.mrf.mxu0 }
 0x1c8   : > { %v708_v54 = vpop.f32.mrf.mxu1  ;;  %v929_v55 = vpop.f32.mrf.mxu0 }
 0x1ca   : > { %v4878_v56 = vpop.f32.mrf.mxu1  ;;  %v4902_v57 = vpop.f32.mrf.mxu0 }
 0x1cc   : > { %v755_v58 = vpop.f32.mrf.mxu1  ;;  %v1022_v59 = vpop.f32.mrf.mxu0 }
 0x1cd   : > { %v761_v63 = vadd.f32 %v755_v58, %v706_v60 }
 0x1ce   : > { %v4883_v61 = vpop.f32.mrf.mxu1  ;;  %v4913_v62 = vpop.f32.mrf.mxu0 }
 0x1cf   : > { %v812_v5 = vadd.f32 %v806_v43, %v761_v63 }
 0x1d0   : > { %v758_v0 = vpop.f32.mrf.mxu1  ;;  %v1025_v2 = vpop.f32.mrf.mxu0 }
 0x1d1   : > { %v5353_v0 = vld [vmem:[%s6702_s3 + $0x10] sm:$0xff]  }
 0x1d2   : > { %v4884_v3 = vpop.f32.mrf.mxu1  ;;  %v4914_v4 = vpop.f32.mrf.mxu0 }
 0x1d4   : > { %v857_v6 = vpop.f32.mrf.mxu1  ;;  %v1124_v8 = vpop.f32.mrf.mxu0 }
 0x1d5   : > { %v863_v9 = vadd.f32 %v857_v6, %v812_v5 }
 0x1d6   : > { %v4895_v10 = vpop.f32.mrf.mxu1  ;;  %v4925_v11 = vpop.f32.mrf.mxu0 }
 0x1d7   : > { %v869_v12 = vadd.f32 %v5892_v7, %v863_v9  ;;  %v5354_v10 = vld [vmem:[%s6702_s3 + $0x18] sm:$0xff]  }
 0x1d8   : > { %v860_v13 = vpop.f32.mrf.mxu1  ;;  %v1127_v14 = vpop.f32.mrf.mxu0 }
 0x1d9   : > { %vm870_vm12 = vcmp.ge.f32.partialorder %v869_v12, 0.0  ;;  %v871_v15 = vmul.f32 0.1, %v869_v12 }
 0x1da   : > { %v4896_v16 = vpop.f32.mrf.mxu1  ;;  %v4926_v17 = vpop.f32.mrf.mxu0 }
 0x1db   : > { %v872_v18 = vsel %vm870_vm12, %v869_v12, %v871_v15  ;;  %v5355_v15 = vld [vmem:[%s6702_s3 + $0x20] sm:$0xff]  }
 0x1dc   : > { %877 = vst.msk [vmem:[%s5867_s21 + $0x2] sm:$0xf] %vm876_vm13, %v872_v18  ;;  %v972_v19 = vpop.f32.mrf.mxu1  ;;  %v1237_v20 = vpop.f32.mrf.mxu0 }
 0x1dd   : > { %v973_v23 = vadd.f32 %v972_v19, %v926_v51 }
 0x1de   : > { %v4907_v21 = vpop.f32.mrf.mxu1  ;;  %v4937_v22 = vpop.f32.mrf.mxu0 }
 0x1df   : > { %v1028_v30 = vadd.f32 %v1022_v59, %v973_v23  ;;  %v5352_v59 = vld [vmem:[%s6702_s3] sm:$0xff]   ;;  %v5356_v23 = vld [vmem:[%s6702_s3 + $0x8] sm:$0xff]  }
 0x1e0   : > { %v975_v24 = vpop.f32.mrf.mxu1  ;;  %v1240_v25 = vpop.f32.mrf.mxu0 }
 0x1e2   : > { %v4908_v26 = vpop.f32.mrf.mxu1  ;;  %v4938_v27 = vpop.f32.mrf.mxu0 }
 0x1e3   : > { %v4557_v31 = vld [vmem:[%s5867_s21 + $0x1] ss:$3 sm:$0x3]  ;;  %v1408_v32 = vld [vmem:[%s5867_s21] ss:$3 sm:$0x3] }
 0x1e4   : > { %v1073_v33 = vpop.f32.mrf.mxu1  ;;  %v5905_v34 = vpop.f32.mrf.mxu0  ;;  %v1414_v35 = vpack.c.bf16 %v4557_v31, %v4557_v31  ;;  %v1409_v36 = vpack.c.bf16 %v1408_v32, %v1408_v32  ;;  %v4562_v44 = vld [vmem:[%s5867_s21 + $0x2] ss:$3 sm:$0x3]  ;;  %v4565_v45 = vld [vmem:[%s5867_s21 + $0x3] ss:$3 sm:$0x3] }
 0x1e5   : > { %v1079_v37 = vadd.f32 %v1073_v33, %v1028_v30  ;;  %v1518_v52 = vpack.c.bf16 %v4562_v44, %v4562_v44  ;;  %v1573_v53 = vpack.c.bf16 %v4565_v45, %v4565_v45  ;;  %v4568_v57 = vld [vmem:[%s5867_s21 + $0x4] ss:$3 sm:$0x3]  ;;  %v5359_v32 = vld [vmem:[%s6702_s3 + $0x18] sm:$0xff]  }
 0x1e6   : > { %v4919_v38 = vpop.f32.mrf.mxu1  ;;  %v4949_v39 = vpop.f32.mrf.mxu0  ;;  %4960 = vmatmul.mubr.msk.bf16.vlgmr.msra.gmra.mxu0 %vm1423_vm14, %v1414_v35  ;;  %4966 = vmatmul.mubr.msk.bf16.vlgmr.msra.gmra.mxu1 %vm1423_vm14, %v1409_v36  ;;  %v1628_v61 = vpack.c.bf16 %v4568_v57, %v4568_v57  ;;  %v5357_v26 = vld [vmem:[%s6702_s3] sm:$0xff]  }
 0x1e7   : > { %v1130_v40 = vadd.f32 %v1124_v8, %v1079_v37  ;;  %4970 = vmatpush3.bf16.msra.mxu0 %v5348_v28  ;;  %4976 = vmatpush3.bf16.msra.mxu1 %v5349_v29  ;;  %v5358_v28 = vld [vmem:[%s6702_s3 + $0x10] sm:$0xff]   ;;  %v5360_v35 = vld [vmem:[%s6702_s3 + $0x20] sm:$0xff]   ;;  %s6452_s3 = scalar_lea.vmem [#allocation6], %s6021_s16 }
 0x1e8   : > { %v1076_v41 = vpop.f32.mrf.mxu1  ;;  %v1341_v42 = vpop.f32.mrf.mxu0  ;;  %4971 = vmatprep.mubr.msk.bf16.mxu0 %vm5540_vm1, %v5539_v1  ;;  %4977 = vmatprep.mubr.msk.bf16.mxu1 %vm5540_vm1, %v5539_v1  ;;  %3527 = vst.msk [vmem:[%s6452_s3] sm:$0x1] %vm2580_vm8, %v5539_v1  ;;  %3528 = vst.msk [vmem:[%s6452_s3 + $0x2] sm:$0x1] %vm2580_vm8, %v5539_v1 }
 0x1e9   : > { %v1136_v43 = vadd.f32 %v5892_v7, %v1130_v40  ;;  %4981 = vmatprep.subr.bf16.mxu0 %v5539_v1  ;;  %4987 = vmatprep.subr.bf16.mxu1 %v5539_v1  ;;  %v5361_v41 = vld [vmem:[%s6703_s4 + $0x18] sm:$0xff]   ;;  %v5362_v42 = vld [vmem:[%s6703_s4 + $0x10] sm:$0xff]   ;;  %3843 = vst.msk [vmem:[%s6452_s3 + $0x8] sm:$0x1] %vm2580_vm8, %v5539_v1  ;;  %3844 = vst.msk [vmem:[%s6452_s3 + $0xa] sm:$0x1] %vm2580_vm8, %v5539_v1 }
 0x1ea   : > { %v4920_v46 = vpop.f32.mrf.mxu1  ;;  %v4950_v47 = vpop.f32.mrf.mxu0  ;;  %4159 = vst.msk [vmem:[%s6452_s3 + $0x10] sm:$0x1] %vm2580_vm8, %v5539_v1  ;;  %4160 = vst.msk [vmem:[%s6452_s3 + $0x12] sm:$0x1] %vm2580_vm8, %v5539_v1 }
 0x1eb   : > { %vm1137_vm15 = vcmp.ge.f32.partialorder %v1136_v43, 0.0  ;;  %v1138_v48 = vmul.f32 0.1, %v1136_v43  ;;  %v5364_v46 = vld [vmem:[%s6703_s4] sm:$0xff]  }
 0x1ec   : > { %v1191_v51 = vpop.f32.mrf.mxu1 }
 0x1ed   : > { %v1139_v54 = vsel %vm1137_vm15, %v1136_v43, %v1138_v48  ;;  %v1238_v62 = vadd.f32 %v1237_v20, %v1191_v51  ;;  %v5363_v43 = vld [vmem:[%s6703_s4 + $0x8] sm:$0xff]   ;;  %v5367_v51 = vld [vmem:[%s6703_s4 + $0x20] sm:$0xff]  }
 0x1ee   : > { %1142 = vst.msk [vmem:[%s5867_s21 + $0xa] sm:$0xf] %vm876_vm13, %v1139_v54  ;;  %v4931_v55 = vpop.f32.mrf.mxu1  ;;  %4972 = vmatmul.mubr.msk.bf16.vlgmr.msra.gmra.mxu0 %vm1423_vm14, %v1518_v52  ;;  %4978 = vmatmul.mubr.msk.bf16.vlgmr.msra.gmra.mxu1 %vm1423_vm14, %v1573_v53  ;;  %v5368_v52 = vld [vmem:[%s6703_s4 + $0x30] sm:$0xff]  }
 0x1ef   : > { %4982 = vmatpush3.bf16.msra.mxu0 %v5350_v49  ;;  %4988 = vmatpush3.bf16.msra.mxu1 %v5351_v50  ;;  %v5365_v49 = vld [vmem:[%s6703_s4 + $0x28] sm:$0xff]   ;;  %v5366_v50 = vld [vmem:[%s6703_s4 + $0x38] sm:$0xff]  }
 0x1f0   : > { %v1194_v56 = vpop.f32.mrf.mxu1  ;;  %4983 = vmatprep.mubr.msk.bf16.mxu0 %vm5540_vm1, %v5539_v1  ;;  %4993 = vmatprep.subr.bf16.mxu0 %v5539_v1 }
 0x1f1   : > { %4989 = vmatprep.mubr.msk.bf16.mxu1 %vm5540_vm1, %v5539_v1  ;;  %4999 = vmatprep.subr.bf16.mxu1 %v5539_v1 }
 0x1f2   : > { %v4932_v58 = vpop.f32.mrf.mxu1 }
 0x1f4   : > { %v1287_v60 = vpop.f32.mrf.mxu1 }
 0x1f5   : > { %v4573_v63 = vld [vmem:[%s5867_s21 + $0x9] ss:$3 sm:$0x3]  ;;  %v1293_v4 = vadd.f32 %v1287_v60, %v1238_v62  ;;  %v4572_v6 = vld [vmem:[%s5867_s21 + $0x8] ss:$3 sm:$0x3] }
 0x1f6   : > { %v4943_v2 = vpop.f32.mrf.mxu1  ;;  %4984 = vmatmul.mubr.msk.bf16.vlgmr.msra.gmra.mxu0 %vm1423_vm14, %v1628_v61  ;;  %v1701_v3 = vpack.c.bf16 %v4573_v63, %v4573_v63  ;;  %v4578_v11 = vld [vmem:[%s5867_s21 + $0xa] ss:$3 sm:$0x3]  ;;  %v1696_v13 = vpack.c.bf16 %v4572_v6, %v4572_v6  ;;  %v4581_v21 = vld [vmem:[%s5867_s21 + $0xb] ss:$3 sm:$0x3] }
 0x1f7   : > { %4994 = vmatpush3.bf16.msra.mxu0 %v5352_v59  ;;  %4995 = vmatprep.mubr.msk.bf16.mxu0 %vm5540_vm1, %v5539_v1  ;;  %v1344_v9 = vadd.f32 %v5905_v34, %v1293_v4  ;;  %v1804_v17 = vpack.c.bf16 %v4578_v11, %v4578_v11  ;;  %v4584_v24 = vld [vmem:[%s5867_s21 + $0xc] ss:$3 sm:$0x3]  ;;  %v1859_v25 = vpack.c.bf16 %v4581_v21, %v4581_v21  ;;  %v6087_v11 = vld [vmem:[%s6675_s7 + $0x2] ss:$0 sm:$0xff] }
 0x1f8   : > { %v1290_v5 = vpop.f32.mrf.mxu1  ;;  %4990 = vmatmul.mubr.msk.bf16.vlgmr.msra.gmra.mxu1 %vm1423_vm14, %v1701_v3  ;;  %5005 = vmatprep.subr.bf16.mxu0 %v5539_v1  ;;  %v1914_v27 = vpack.c.bf16 %v4584_v24, %v4584_v24 }
 0x1f9   : > { %5000 = vmatpush3.bf16.msra.mxu1 %v5353_v0  ;;  %5001 = vmatprep.mubr.msk.bf16.mxu1 %vm5540_vm1, %v5539_v1 }
 0x1fa   : > { %v4944_v8 = vpop.f32.mrf.mxu1  ;;  %5011 = vmatprep.subr.bf16.mxu1 %v5539_v1 }
 0x1fc   : > { %v1389_v12 = vpop.f32.mrf.mxu1 }
 0x1fd   : > { %v1395_v14 = vadd.f32 %v1389_v12, %v1344_v9 }
 0x1fe   : > { %v4955_v16 = vpop.f32.mrf.mxu1  ;;  %4996 = vmatmul.mubr.msk.bf16.vlgmr.msra.gmra.mxu0 %vm1423_vm14, %v1696_v13 }
 0x1ff   : > { %v1401_v18 = vadd.f32 %v5892_v7, %v1395_v14  ;;  %5006 = vmatpush3.bf16.msra.mxu0 %v5354_v10  ;;  %5007 = vmatprep.mubr.msk.bf16.mxu0 %vm5540_vm1, %v5539_v1 }
 0x200   : > { %v1392_v19 = vpop.f32.mrf.mxu1  ;;  %5002 = vmatmul.mubr.msk.bf16.vlgmr.msra.gmra.mxu1 %vm1423_vm14, %v1804_v17  ;;  %5017 = vmatprep.subr.bf16.mxu0 %v5539_v1 }
 0x201   : > { %vm1402_vm0 = vcmp.ge.f32.partialorder %v1401_v18, 0.0  ;;  %v1403_v20 = vmul.f32 0.1, %v1401_v18  ;;  %5012 = vmatpush3.bf16.msra.mxu1 %v5355_v15  ;;  %5013 = vmatprep.mubr.msk.bf16.mxu1 %vm5540_vm1, %v5539_v1 }
 0x202   : > { %v4956_v22 = vpop.f32.mrf.mxu1  ;;  %5023 = vmatprep.subr.bf16.mxu1 %v5539_v1 }
 0x203   : > { %v1404_v7 = vsel %vm1402_vm0, %v1401_v18, %v1403_v20 }
 0x204   : > { %1407 = vst.msk [vmem:[%s5867_s21 + $0x12] sm:$0xf] %vm876_vm13, %v1404_v7 }
 0x206   : > { %5008 = vmatmul.mubr.msk.bf16.vlgmr.msra.gmra.mxu0 %vm1423_vm14, %v1859_v25 }
 0x207   : > { %5018 = vmatpush3.bf16.msra.mxu0 %v5356_v23  ;;  %5019 = vmatprep.mubr.msk.bf16.mxu0 %vm5540_vm1, %v5539_v1 }
 0x208   : > { %5014 = vmatmul.mubr.msk.bf16.vlgmr.msra.gmra.mxu1 %vm1423_vm14, %v1914_v27  ;;  %5029 = vmatprep.subr.bf16.mxu0 %v5539_v1 }
 0x209   : > { %5024 = vmatpush3.bf16.msra.mxu1 %v5357_v26  ;;  %5025 = vmatprep.mubr.msk.bf16.mxu1 %vm5540_vm1, %v5539_v1 }
 0x20a   : > { %5035 = vmatprep.subr.bf16.mxu1 %v5539_v1 }
 0x20b   : > { %v4589_v29 = vld [vmem:[%s5867_s21 + $0x11] ss:$3 sm:$0x3]  ;;  %v4588_v30 = vld [vmem:[%s5867_s21 + $0x10] ss:$3 sm:$0x3] }
 0x20c   : > { %v1986_v31 = vpack.c.bf16 %v4589_v29, %v4589_v29  ;;  %v1981_v33 = vpack.c.bf16 %v4588_v30, %v4588_v30  ;;  %v4594_v34 = vld [vmem:[%s5867_s21 + $0x12] ss:$3 sm:$0x3]  ;;  %v4597_v36 = vld [vmem:[%s5867_s21 + $0x13] ss:$3 sm:$0x3] }
 0x20d   : > { %v2089_v37 = vpack.c.bf16 %v4594_v34, %v4594_v34  ;;  %v2144_v38 = vpack.c.bf16 %v4597_v36, %v4597_v36  ;;  %v4600_v39 = vld [vmem:[%s5867_s21 + $0x14] ss:$3 sm:$0x3]  ;;  %s6027_s21 = scalar_lea.vmem [#allocation2], %s6021_s16  ;;  %v5369_v30 = vld [vmem:[%s6703_s4 + $0x48] sm:$0xff]   ;;  %v5370_v34 = vld [vmem:[%s6703_s4 + $0x18] sm:$0xff]  }
 0x20e   : > { %5020 = vmatmul.mubr.msk.bf16.vlgmr.msra.gmra.mxu0 %vm1423_vm14, %v1986_v31  ;;  %v2199_v40 = vpack.c.bf16 %v4600_v39, %v4600_v39  ;;  %1691 = vst.msk [vmem:[%s6027_s21] sm:$0x3] %vm1690_vm2, %v5539_v1  ;;  %1692 = vst.msk [vmem:[%s6027_s21 + $0x4] sm:$0x3] %vm1690_vm2, %v5539_v1  ;;  %s6533_s16 = smul.u32 384, %s5637_s29 }
 0x20f   : > { %5030 = vmatpush3.bf16.msra.mxu0 %v5358_v28  ;;  %5031 = vmatprep.mubr.msk.bf16.mxu0 %vm5540_vm1, %v5539_v1  ;;  %1976 = vst.msk [vmem:[%s6027_s21 + $0x8] sm:$0x3] %vm1690_vm2, %v5539_v1  ;;  %1977 = vst.msk [vmem:[%s6027_s21 + $0xc] sm:$0x3] %vm1690_vm2, %v5539_v1 }
 0x210   : > { %5026 = vmatmul.mubr.msk.bf16.vlgmr.msra.gmra.mxu1 %vm1423_vm14, %v1981_v33  ;;  %5041 = vmatprep.subr.bf16.mxu0 %v5539_v1  ;;  %2261 = vst.msk [vmem:[%s6027_s21 + $0x10] sm:$0x3] %vm1690_vm2, %v5539_v1  ;;  %2262 = vst.msk [vmem:[%s6027_s21 + $0x14] sm:$0x3] %vm1690_vm2, %v5539_v1  ;;  %s6541_s0 = scalar_lea.hbm %s6706_s11, %s6533_s16 }
 0x211   : > { %5036 = vmatpush3.bf16.msra.mxu1 %v5359_v32  ;;  %5037 = vmatprep.mubr.msk.bf16.mxu1 %vm5540_vm1, %v5539_v1 }
 0x212   : > { %5047 = vmatprep.subr.bf16.mxu1 %v5539_v1 }
 0x215   : > { %v2270_v44 = vld [vmem:[%s6027_s21 + $0x1] sm:$0x1]  ;;  %v2264_v47 = vld [vmem:[%s6027_s21] sm:$0x1] }
 0x216   : > { %5032 = vmatmul.mubr.msk.bf16.vlgmr.msra.gmra.mxu0 %vm1423_vm14, %v2089_v37  ;;  %v2271_v45 = vpack.c.bf16 %v2270_v44, %v2270_v44  ;;  %v2265_v48 = vpack.c.bf16 %v2264_v47, %v2264_v47  ;;  %v5372_v44 = vld [vmem:[%s6703_s4 + $0x10] sm:$0xff]  }
 0x217   : > { %5042 = vmatpush3.bf16.msra.mxu0 %v5360_v35  ;;  %5043 = vmatprep.mubr.msk.bf16.mxu0 %vm5540_vm1, %v5539_v1 }
 0x218   : > { %5038 = vmatmul.mubr.msk.bf16.vlgmr.msra.gmra.mxu1 %vm1423_vm14, %v2144_v38  ;;  %5055 = vmatprep.subr.bf16.mxu0 %v5539_v1 }
 0x219   : > { %5051 = vmatprep.mubr.msk.bf16.mxu1 %vm5540_vm1, %v5539_v1  ;;  %5048 = vmatpush3.bf16.msra.mxu1 %v5361_v41 }
 0x21a   : > { %5049 = vmatprep.subr.bf16.mxu1 %v5539_v1 }
 0x21d   : > { %5050 = vmatpush3.bf16.msra.mxu1 %v5362_v42  ;;  %v5371_v42 = vld [vmem:[%s6703_s4 + $0x40] sm:$0xff]  }
 0x21e   : > { %5044 = vmatmul.mubr.msk.bf16.vlgmr.msra.gmra.mxu0 %vm1423_vm14, %v2199_v40  ;;  %5063 = vmatprep.subr.bf16.mxu1 %v5539_v1 }
 0x21f   : > { %5059 = vmatprep.mubr.msk.bf16.mxu0 %vm5540_vm1, %v5539_v1  ;;  %5056 = vmatpush3.bf16.msra.mxu0 %v5363_v43 }
 0x220   : > { %5052 = vmatmul.mubr.msk.bf16.vlgmr.msra.gmra.mxu1 %vm2288_vm3, %v2271_v45  ;;  %5057 = vmatprep.subr.bf16.mxu0 %v5539_v1  ;;  %v2511_v45 = vld [vmem:[%s6027_s21 + $0x4] sm:$0x1] }
 0x221   : > { %5067 = vmatprep.mubr.msk.bf16.mxu1 %vm5540_vm1, %v5539_v1  ;;  %5064 = vmatpush3.bf16.msra.mxu1 %v5365_v49 }
 0x222   : > { %5065 = vmatprep.subr.bf16.mxu1 %v5539_v1 }
 0x223   : > { %5058 = vmatpush3.bf16.msra.mxu0 %v5364_v46  ;;  %v2588_v46 = vld [vmem:[%s6027_s21 + $0x9] sm:$0x1] }
 0x224   : > { %5071 = vmatprep.subr.bf16.mxu0 %v5539_v1 }
 0x225   : > { %5066 = vmatpush3.bf16.msra.mxu1 %v5367_v51 }
 0x226   : > { %5060 = vmatmul.mubr.msk.bf16.vlgmr.msra.gmra.mxu0 %vm2288_vm3, %v2265_v48  ;;  %5079 = vmatprep.subr.bf16.mxu1 %v5539_v1 }
 0x227   : > { %5072 = vmatpush3.bf16.msra.mxu0 %v5366_v50  ;;  %5075 = vmatprep.mubr.msk.bf16.mxu0 %vm5540_vm1, %v5539_v1 }
 0x228   : > { %5073 = vmatprep.subr.bf16.mxu0 %v5539_v1 }
 0x22b   : > { %5074 = vmatpush3.bf16.msra.mxu0 %v5368_v52  ;;  %v2512_v52 = vpack.c.bf16 %v2511_v45, %v2511_v45 }
 0x22c   : > { %5087 = vmatprep.subr.bf16.mxu0 %v5539_v1 }
 0x2a6   : > { %v1461_v53 = vpop.f32.mrf.mxu0  ;;  %v1510_v54 = vpop.f32.mrf.mxu1 }
 0x2a7   : > { %v1511_v63 = vadd.f32 %v1510_v54, %v1461_v53  ;;  %v2589_v53 = vpack.c.bf16 %v2588_v46, %v2588_v46  ;;  %v5386_v46 = vld [vmem:[%s6703_s4 + $0x38] sm:$0xff]  }
 0x2a8   : > { %v4961_v55 = vpop.f32.mrf.mxu0  ;;  %v4967_v56 = vpop.f32.mrf.mxu1 }
 0x2a9   : > { %v5373_v55 = vld [vmem:[%s6703_s4 + $0x8] sm:$0xff]  }
 0x2aa   : > { %v1464_v57 = vpop.f32.mrf.mxu0  ;;  %v1513_v58 = vpop.f32.mrf.mxu1  ;;  %v5374_v56 = vld [vmem:[%s6703_s4 + $0x28] sm:$0xff]  }
 0x2ac   : > { %v4962_v59 = vpop.f32.mrf.mxu0  ;;  %v4968_v60 = vpop.f32.mrf.mxu1 }
 0x2ae   : > { %v1564_v61 = vpop.f32.mrf.mxu0  ;;  %v1619_v62 = vpop.f32.mrf.mxu1 }
 0x2af   : > { %v1570_v3 = vadd.f32 %v1564_v61, %v1511_v63  ;;  %v5376_v63 = vld [vmem:[%s6703_s4 + $0x20] sm:$0xff]  }
 0x2b0   : > { %v4973_v0 = vpop.f32.mrf.mxu0  ;;  %v4979_v2 = vpop.f32.mrf.mxu1 }
 0x2b1   : > { %v1625_v9 = vadd.f32 %v1619_v62, %v1570_v3  ;;  %v5375_v62 = vld [vmem:[%s6703_s4] sm:$0xff]  }
 0x2b2   : > { %v1567_v4 = vpop.f32.mrf.mxu0  ;;  %v1622_v5 = vpop.f32.mrf.mxu1  ;;  %v2582_v0 = vld [vmem:[%s6027_s21 + $0x8] sm:$0x1] }
 0x2b4   : > { %v4974_v6 = vpop.f32.mrf.mxu0  ;;  %v4980_v8 = vpop.f32.mrf.mxu1 }
 0x2b5   : > { %v2583_v6 = vpack.c.bf16 %v2582_v0, %v2582_v0  ;;  %v5377_v8 = vld [vmem:[%s6703_s4 + $0x38] sm:$0xff]  }
 0x2b6   : > { %v1674_v10 = vpop.f32.mrf.mxu0 }
 0x2b7   : > { %v1680_v12 = vadd.f32 %v1674_v10, %v1625_v9 }
 0x2b8   : > { %v4985_v13 = vpop.f32.mrf.mxu0  ;;  %v1747_v14 = vpop.f32.mrf.mxu1 }
 0x2b9   : > { %v1686_v15 = vadd.f32 %v6087_v11, %v1680_v12 }
 0x2ba   : > { %v1677_v16 = vpop.f32.mrf.mxu0  ;;  %v4991_v17 = vpop.f32.mrf.mxu1 }
 0x2bb   : > { %vm1687_vm4 = vcmp.ge.f32.partialorder %v1686_v15, 0.0  ;;  %v1688_v18 = vmul.f32 0.1, %v1686_v15 }
 0x2bc   : > { %v4986_v19 = vpop.f32.mrf.mxu0  ;;  %v1750_v20 = vpop.f32.mrf.mxu1 }
 0x2bd   : > { %v1689_v21 = vsel %vm1687_vm4, %v1686_v15, %v1688_v18  ;;  %v5379_v19 = vld [vmem:[%s6703_s4 + $0x30] sm:$0xff]  }
 0x2be   : > { %1693 = vst.msk [vmem:[%s6027_s21 + $0x2] sm:$0x3] %vm1690_vm2, %v1689_v21  ;;  %v4992_v22 = vpop.f32.mrf.mxu1  ;;  %v1796_v7 = vpop.f32.mrf.mxu0 }
 0x2bf   : > { %v1797_v25 = vadd.f32 %v1796_v7, %v1747_v14  ;;  %v5378_v14 = vld [vmem:[%s6703_s4 + $0x48] sm:$0xff]   ;;  %v5380_v22 = vld [vmem:[%s6703_s4 + $0x40] sm:$0xff]  }
 0x2c0   : > { %v4997_v23 = vpop.f32.mrf.mxu0  ;;  %v1850_v24 = vpop.f32.mrf.mxu1 }
 0x2c1   : > { %v1856_v31 = vadd.f32 %v1850_v24, %v1797_v25  ;;  %v2828_v23 = vld [vmem:[%s6027_s21 + $0xc] sm:$0x1] }
 0x2c2   : > { %v1799_v26 = vpop.f32.mrf.mxu0  ;;  %v5003_v27 = vpop.f32.mrf.mxu1 }
 0x2c3   : > { %v5381_v27 = vld [vmem:[%s6703_s4 + $0x18] sm:$0xff]  }
 0x2c4   : > { %v4998_v28 = vpop.f32.mrf.mxu0  ;;  %v1853_v29 = vpop.f32.mrf.mxu1 }
 0x2c5   : > { %v2387_v32 = vld [vmem:[%s6027_s21 + $0x2] sm:$0x1]  ;;  %v2449_v33 = vld [vmem:[%s6027_s21 + $0x3] sm:$0x1] }
 0x2c6   : > { %v5004_v35 = vpop.f32.mrf.mxu1  ;;  %v1905_v36 = vpop.f32.mrf.mxu0  ;;  %v2388_v37 = vpack.c.bf16 %v2387_v32, %v2387_v32  ;;  %v2450_v38 = vpack.c.bf16 %v2449_v33, %v2449_v33  ;;  %v5382_v33 = vld [vmem:[%s6703_s4 + $0x8] sm:$0xff]  }
 0x2c7   : > { %v1911_v39 = vadd.f32 %v1905_v36, %v1856_v31  ;;  %v2829_v31 = vpack.c.bf16 %v2828_v23, %v2828_v23  ;;  %v5383_v36 = vld [vmem:[%s6703_s4 + $0x10] sm:$0xff]   ;;  %v5406_v23 = vld [vmem:[%s6704_s5 + $0x20] sm:$0xff]  }
 0x2c8   : > { %v5009_v40 = vpop.f32.mrf.mxu0  ;;  %v1960_v41 = vpop.f32.mrf.mxu1  ;;  %5068 = vmatmul.mubr.msk.bf16.vlgmr.msra.gmra.mxu1 %vm2288_vm3, %v2388_v37  ;;  %5076 = vmatmul.mubr.msk.bf16.vlgmr.msra.gmra.mxu0 %vm2288_vm3, %v2450_v38  ;;  %v2904_v37 = vld [vmem:[%s6027_s21 + $0x11] sm:$0x1] }
 0x2c9   : > { %v1966_v43 = vadd.f32 %v1960_v41, %v1911_v39  ;;  %5080 = vmatpush3.bf16.msra.mxu1 %v5369_v30  ;;  %5088 = vmatpush3.bf16.msra.mxu0 %v5370_v34  ;;  %v2898_v40 = vld [vmem:[%s6027_s21 + $0x10] sm:$0x1] }
 0x2ca   : > { %v1908_v47 = vpop.f32.mrf.mxu0  ;;  %v5015_v48 = vpop.f32.mrf.mxu1  ;;  %5081 = vmatprep.subr.bf16.mxu1 %v5539_v1  ;;  %5089 = vmatprep.subr.bf16.mxu0 %v5539_v1  ;;  %v2899_v45 = vpack.c.bf16 %v2898_v40, %v2898_v40 }
 0x2cb   : > { %v1972_v49 = vadd.f32 %v6087_v11, %v1966_v43  ;;  %5083 = vmatprep.mubr.msk.bf16.mxu1 %vm5540_vm1, %v5539_v1  ;;  %5091 = vmatprep.mubr.msk.bf16.mxu0 %vm5540_vm1, %v5539_v1  ;;  %v5387_v47 = vld [vmem:[%s6703_s4 + $0x20] sm:$0xff]   ;;  %v5388_v48 = vld [vmem:[%s6703_s4 + $0x30] sm:$0xff]  }
 0x2cc   : > { %v5010_v50 = vpop.f32.mrf.mxu0  ;;  %v1963_v51 = vpop.f32.mrf.mxu1 }
 0x2cd   : > { %vm1973_vm5 = vcmp.ge.f32.partialorder %v1972_v49, 0.0  ;;  %v1974_v54 = vmul.f32 0.1, %v1972_v49  ;;  %5082 = vmatpush3.bf16.msra.mxu1 %v5371_v42  ;;  %5090 = vmatpush3.bf16.msra.mxu0 %v5372_v44  ;;  %v2905_v42 = vpack.c.bf16 %v2904_v37, %v2904_v37  ;;  %v5385_v44 = vld [vmem:[%s6703_s4 + $0x28] sm:$0xff]  }
 0x2ce   : > { %v5016_v57 = vpop.f32.mrf.mxu1  ;;  %v2032_v58 = vpop.f32.mrf.mxu0  ;;  %5095 = vmatprep.subr.bf16.mxu1 %v5539_v1  ;;  %5103 = vmatprep.subr.bf16.mxu0 %v5539_v1  ;;  %v5389_v50 = vld [vmem:[%s6703_s4 + $0x48] sm:$0xff]  }
 0x2cf   : > { %v1975_v59 = vsel %vm1973_vm5, %v1972_v49, %v1974_v54  ;;  %v5390_v54 = vld [vmem:[%s6703_s4 + $0x40] sm:$0xff]  }
 0x2d0   : > { %1978 = vst.msk [vmem:[%s6027_s21 + $0xa] sm:$0x3] %vm1690_vm2, %v1975_v59  ;;  %v5021_v60 = vpop.f32.mrf.mxu0  ;;  %v2081_v61 = vpop.f32.mrf.mxu1  ;;  %5084 = vmatmul.mubr.msk.bf16.vlgmr.msra.gmra.mxu1 %vm2288_vm3, %v2512_v52  ;;  %5092 = vmatmul.mubr.msk.bf16.vlgmr.msra.gmra.mxu0 %vm2288_vm3, %v2589_v53 }
 0x2d1   : > { %5096 = vmatpush3.bf16.msra.mxu1 %v5373_v55  ;;  %5104 = vmatpush3.bf16.msra.mxu0 %v5374_v56  ;;  %v2082_v12 = vadd.f32 %v2081_v61, %v2032_v58  ;;  %v3144_v55 = vld [vmem:[%s6027_s21 + $0x14] sm:$0x1] }
 0x2d2   : > { %v2035_v2 = vpop.f32.mrf.mxu0  ;;  %v5027_v3 = vpop.f32.mrf.mxu1  ;;  %5097 = vmatprep.subr.bf16.mxu1 %v5539_v1  ;;  %5105 = vmatprep.subr.bf16.mxu0 %v5539_v1  ;;  %v3145_v56 = vpack.c.bf16 %v3144_v55, %v3144_v55 }
 0x2d3   : > { %5099 = vmatprep.mubr.msk.bf16.mxu1 %vm5540_vm1, %v5539_v1  ;;  %5107 = vmatprep.mubr.msk.bf16.mxu0 %vm5540_vm1, %v5539_v1  ;;  %v5391_v3 = vld [vmem:[%s6704_s5 + $0x18] sm:$0xff]  }
 0x2d4   : > { %v5022_v4 = vpop.f32.mrf.mxu0  ;;  %v2084_v5 = vpop.f32.mrf.mxu1 }
 0x2d5   : > { %5098 = vmatpush3.bf16.msra.mxu1 %v5375_v62  ;;  %5106 = vmatpush3.bf16.msra.mxu0 %v5376_v63  ;;  %v5392_v4 = vld [vmem:[%s6704_s5 + $0x10] sm:$0xff]   ;;  %v5393_v5 = vld [vmem:[%s6704_s5 + $0x8] sm:$0xff]  }
 0x2d6   : > { %v5028_v9 = vpop.f32.mrf.mxu1  ;;  %v2135_v10 = vpop.f32.mrf.mxu0  ;;  %5111 = vmatprep.subr.bf16.mxu1 %v5539_v1  ;;  %5119 = vmatprep.subr.bf16.mxu0 %v5539_v1 }
 0x2d7   : > { %v2704_v13 = vld [vmem:[%s6027_s21 + $0xa] sm:$0x1]  ;;  %v2141_v18 = vadd.f32 %v2135_v10, %v2082_v12  ;;  %v2766_v7 = vld [vmem:[%s6027_s21 + $0xb] sm:$0x1]  ;;  %v3214_v10 = vld [vmem:[%s6244_s1] sm:$0x1] }
 0x2d8   : > { %v5033_v15 = vpop.f32.mrf.mxu0  ;;  %v2190_v16 = vpop.f32.mrf.mxu1  ;;  %5100 = vmatmul.mubr.msk.bf16.vlgmr.msra.gmra.mxu1 %vm2288_vm3, %v2583_v6  ;;  %v2705_v17 = vpack.c.bf16 %v2704_v13, %v2704_v13  ;;  %v2767_v30 = vpack.c.bf16 %v2766_v7, %v2766_v7  ;;  %v3220_v6 = vld [vmem:[%s6244_s1 + $0x1] sm:$0x1]  ;;  %v5394_v9 = vld [vmem:[%s6704_s5] sm:$0xff]   ;;  %v3215_v12 = vpack.c.bf16 %v3214_v10, %v3214_v10 }
 0x2d9   : > { %5112 = vmatpush3.bf16.msra.mxu1 %v5377_v8  ;;  %5115 = vmatprep.mubr.msk.bf16.mxu1 %vm5540_vm1, %v5539_v1  ;;  %v2196_v26 = vadd.f32 %v2190_v16, %v2141_v18  ;;  %v3221_v8 = vpack.c.bf16 %v3220_v6, %v3220_v6  ;;  %v5395_v13 = vld [vmem:[%s6704_s5 + $0x28] sm:$0xff]   ;;  %v5397_v15 = vld [vmem:[%s6704_s5 + $0x20] sm:$0xff]   ;;  %v5398_v16 = vld [vmem:[%s6704_s5 + $0x30] sm:$0xff]  }
 0x2da   : > { %v2138_v20 = vpop.f32.mrf.mxu0  ;;  %v5039_v21 = vpop.f32.mrf.mxu1  ;;  %5108 = vmatmul.mubr.msk.bf16.vlgmr.msra.gmra.mxu0 %vm2288_vm3, %v2705_v17  ;;  %5113 = vmatprep.subr.bf16.mxu1 %v5539_v1  ;;  %v3398_v17 = vld [vmem:[%s6244_s1 + $0x3] sm:$0x1] }
 0x2db   : > { %5120 = vmatpush3.bf16.msra.mxu0 %v5378_v14  ;;  %5123 = vmatprep.mubr.msk.bf16.mxu0 %vm5540_vm1, %v5539_v1  ;;  %v5396_v14 = vld [vmem:[%s6704_s5 + $0x38] sm:$0xff]   ;;  %v3399_v18 = vpack.c.bf16 %v3398_v17, %v3398_v17  ;;  %v5402_v20 = vld [vmem:[%s6704_s5 + $0x10] sm:$0xff]   ;;  %v5404_v7 = vld [vmem:[%s6704_s5 + $0x28] sm:$0xff]  }
 0x2dc   : > { %v5034_v24 = vpop.f32.mrf.mxu0  ;;  %v2193_v25 = vpop.f32.mrf.mxu1  ;;  %5121 = vmatprep.subr.bf16.mxu0 %v5539_v1  ;;  %v3536_v21 = vld [vmem:[%s6244_s1 + $0x9] sm:$0x1] }
 0x2dd   : > { %5114 = vmatpush3.bf16.msra.mxu1 %v5379_v19  ;;  %v5400_v19 = vld [vmem:[%s6704_s5 + $0x18] sm:$0xff]  }
 0x2de   : > { %v5040_v28 = vpop.f32.mrf.mxu1  ;;  %v2245_v29 = vpop.f32.mrf.mxu0  ;;  %5127 = vmatprep.subr.bf16.mxu1 %v5539_v1 }
 0x2df   : > { %v2251_v32 = vadd.f32 %v2245_v29, %v2196_v26  ;;  %5122 = vmatpush3.bf16.msra.mxu0 %v5380_v22  ;;  %v3537_v22 = vpack.c.bf16 %v3536_v21, %v3536_v21 }
 0x2e0   : > { %v5045_v34 = vpop.f32.mrf.mxu0  ;;  %5116 = vmatmul.mubr.msk.bf16.vlgmr.msra.gmra.mxu1 %vm2288_vm3, %v2767_v30  ;;  %5135 = vmatprep.subr.bf16.mxu0 %v5539_v1  ;;  %v2326_v57 = vpop.f32.mrf.mxu1 }
 0x2e1   : > { %v2257_v35 = vadd.f32 %v6087_v11, %v2251_v32  ;;  %5128 = vmatpush3.bf16.msra.mxu1 %v5381_v27  ;;  %5131 = vmatprep.mubr.msk.bf16.mxu1 %vm5540_vm1, %v5539_v1  ;;  %v5384_v11 = vld [vmem:[%s6703_s4] sm:$0xff]   ;;  %s5541_s4 = smov [#allocation4]  }
 0x2e2   : > { %v2248_v38 = vpop.f32.mrf.mxu0  ;;  %5124 = vmatmul.mubr.msk.bf16.vlgmr.msra.gmra.mxu0 %vm2288_vm3, %v2829_v31  ;;  %5129 = vmatprep.subr.bf16.mxu1 %v5539_v1  ;;  %v5053_v58 = vpop.f32.mrf.mxu1  ;;  %s5425_s29 = sshll.u32 %s5541_s4, 4  ;;  %s5426_s29 = int_to_ptr.vmem [resolvable:$false] %s5425_s29 }
 0x2e3   : > { %vm2258_vm6 = vcmp.ge.f32.partialorder %v2257_v35, 0.0  ;;  %v2259_v39 = vmul.f32 0.1, %v2257_v35  ;;  %5136 = vmatpush3.bf16.msra.mxu0 %v5382_v33  ;;  %5139 = vmatprep.mubr.msk.bf16.mxu0 %vm5540_vm1, %v5539_v1  ;;  %p5428_p0 = scmp.lt.s32.totalorder %s6543_s30, %s5426_s29 }
 0x2e4   : > { %v5046_v41 = vpop.f32.mrf.mxu0  ;;  %5137 = vmatprep.subr.bf16.mxu0 %v5539_v1  ;;  %v2329_v59 = vpop.f32.mrf.mxu1 }
 0x2e5   : > { %v2260_v43 = vsel %vm2258_vm6, %v2257_v35, %v2259_v39  ;;  %5130 = vmatpush3.bf16.msra.mxu1 %v5383_v36  ;;  %v2573_v35 = vld [vmem:[%s6675_s7 + $0x3] sm:$0x1] }
 0x2e6   : > { %2263 = vst.msk [vmem:[%s6027_s21 + $0x12] sm:$0x3] %vm1690_vm2, %v2260_v43  ;;  %5143 = vmatprep.subr.bf16.mxu1 %v5539_v1  ;;  %v5054_v60 = vpop.f32.mrf.mxu1  ;;  %v2381_v61 = vpop.f32.mrf.mxu0 }
 0x2e7   : > { %5138 = vmatpush3.bf16.msra.mxu0 %v5384_v11  ;;  %v6238_v62 = vadd.f32 %v2381_v61, %v2326_v57 }
 0x2e8   : > { %5132 = vmatmul.mubr.msk.bf16.vlgmr.msra.gmra.mxu1 %vm2288_vm3, %v2905_v42  ;;  %5151 = vmatprep.subr.bf16.mxu0 %v5539_v1  ;;  %v5061_v63 = vpop.f32.mrf.mxu0 }
 0x2e9   : > { %5144 = vmatpush3.bf16.msra.mxu1 %v5385_v44  ;;  %5147 = vmatprep.mubr.msk.bf16.mxu1 %vm5540_vm1, %v5539_v1  ;;  %v2890_v63 = vld [vmem:[%s6675_s7 + $0x3] sm:$0x1] }
 0x2ea   : > { %5140 = vmatmul.mubr.msk.bf16.vlgmr.msra.gmra.mxu0 %vm2288_vm3, %v2899_v45  ;;  %5145 = vmatprep.subr.bf16.mxu1 %v5539_v1  ;;  %v2384_v0 = vpop.f32.mrf.mxu0 }
 0x2eb   : > { %5152 = vmatpush3.bf16.msra.mxu0 %v5386_v46  ;;  %5155 = vmatprep.mubr.msk.bf16.mxu0 %vm5540_vm1, %v5539_v1 }
 0x2ec   : > { %5153 = vmatprep.subr.bf16.mxu0 %v5539_v1  ;;  %v5062_v2 = vpop.f32.mrf.mxu0 }
 0x2ed   : > { %5146 = vmatpush3.bf16.msra.mxu1 %v5387_v47  ;;  %v3020_v49 = vld [vmem:[%s6027_s21 + $0x12] sm:$0x1]  ;;  %v3082_v51 = vld [vmem:[%s6027_s21 + $0x13] sm:$0x1]  ;;  %v5401_v2 = vld [vmem:[%s6704_s5 + $0x40] sm:$0xff]  }
 0x2ee   : > { %5159 = vmatprep.subr.bf16.mxu1 %v5539_v1  ;;  %v3021_v52 = vpack.c.bf16 %v3020_v49, %v3020_v49  ;;  %v3083_v53 = vpack.c.bf16 %v3082_v51, %v3082_v51 }
 0x2ef   : > { %5154 = vmatpush3.bf16.msra.mxu0 %v5388_v48 }
 0x2f0   : > { %5148 = vmatmul.mubr.msk.bf16.vlgmr.msra.gmra.mxu1 %vm2288_vm3, %v3021_v52  ;;  %5167 = vmatprep.subr.bf16.mxu0 %v5539_v1 }
 0x2f1   : > { %5160 = vmatpush3.bf16.msra.mxu1 %v5389_v50  ;;  %5163 = vmatprep.mubr.msk.bf16.mxu1 %vm5540_vm1, %v5539_v1 }
 0x2f2   : > { %5156 = vmatmul.mubr.msk.bf16.vlgmr.msra.gmra.mxu0 %vm2288_vm3, %v3083_v53  ;;  %5161 = vmatprep.subr.bf16.mxu1 %v5539_v1 }
 0x2f3   : > { %5171 = vmatprep.mubr.msk.bf16.mxu0 %vm5540_vm1, %v5539_v1  ;;  %5168 = vmatpush3.bf16.msra.mxu0 %v5391_v3  ;;  %v3460_v3 = vld [vmem:[%s6244_s1 + $0x4] sm:$0x1] }
 0x2f4   : > { %5169 = vmatprep.subr.bf16.mxu0 %v5539_v1  ;;  %v3461_v10 = vpack.c.bf16 %v3460_v3, %v3460_v3  ;;  %v5418_v3 = vld [vmem:[%s6704_s5 + $0x30] sm:$0xff]  }
 0x2f5   : > { %5162 = vmatpush3.bf16.msra.mxu1 %v5390_v54 }
 0x2f6   : > { %5175 = vmatprep.subr.bf16.mxu1 %v5539_v1 }
 0x2f7   : > { %5170 = vmatpush3.bf16.msra.mxu0 %v5392_v4 }
 0x2f8   : > { %5164 = vmatmul.mubr.msk.bf16.vlgmr.msra.gmra.mxu1 %vm2288_vm3, %v3145_v56  ;;  %5183 = vmatprep.subr.bf16.mxu0 %v5539_v1  ;;  %v5399_v56 = vld [vmem:[%s6704_s5 + $0x48] sm:$0xff]  }
 0x2f9   : > { %5179 = vmatprep.mubr.msk.bf16.mxu1 %vm5540_vm1, %v5539_v1  ;;  %5176 = vmatpush3.bf16.msra.mxu1 %v5393_v5 }
 0x2fa   : > { %5172 = vmatmul.mubr.msk.bf16.vlgmr.msra.gmra.mxu0 %vm2288_vm3, %v3221_v8  ;;  %5177 = vmatprep.subr.bf16.mxu1 %v5539_v1 }
 0x2fb   : > { %5187 = vmatprep.mubr.msk.bf16.mxu0 %vm5540_vm1, %v5539_v1  ;;  %5184 = vmatpush3.bf16.msra.mxu0 %v5395_v13  ;;  %v5403_v13 = vld [vmem:[%s6704_s5 + $0x8] sm:$0xff]  }
 0x2fc   : > { %5185 = vmatprep.subr.bf16.mxu0 %v5539_v1 }
 0x2fd   : > { %5178 = vmatpush3.bf16.msra.mxu1 %v5394_v9 }
 0x2fe   : > { %5191 = vmatprep.subr.bf16.mxu1 %v5539_v1 }
 0x2ff   : > { %5186 = vmatpush3.bf16.msra.mxu0 %v5397_v15 }
 0x300   : > { %5180 = vmatmul.mubr.msk.bf16.vlgmr.msra.gmra.mxu1 %vm2288_vm3, %v3215_v12  ;;  %5199 = vmatprep.subr.bf16.mxu0 %v5539_v1 }
 0x301   : > { %5192 = vmatpush3.bf16.msra.mxu1 %v5396_v14  ;;  %5195 = vmatprep.mubr.msk.bf16.mxu1 %vm5540_vm1, %v5539_v1 }
 0x302   : > { %5193 = vmatprep.subr.bf16.mxu1 %v5539_v1 }
 0x305   : > { %5194 = vmatpush3.bf16.msra.mxu1 %v5398_v16 }
 0x306   : > { %5207 = vmatprep.subr.bf16.mxu1 %v5539_v1 }
 0x308   : > { %5196 = vmatmul.mubr.msk.bf16.vlgmr.msra.gmra.mxu1 %vm2288_vm3, %v3399_v18 }
 0x309   : > { %5208 = vmatpush3.bf16.msra.mxu1 %v5400_v19  ;;  %5211 = vmatprep.mubr.msk.bf16.mxu1 %vm5540_vm1, %v5539_v1  ;;  %v5405_v19 = vld [vmem:[%s6704_s5] sm:$0xff]  }
 0x30a   : > { %5209 = vmatprep.subr.bf16.mxu1 %v5539_v1 }
 0x30d   : > { %5210 = vmatpush3.bf16.msra.mxu1 %v5402_v20  ;;  %v3530_v20 = vld [vmem:[%s6244_s1 + $0x8] sm:$0x1] }
 0x30e   : > { %5223 = vmatprep.subr.bf16.mxu1 %v5539_v1 }
 0x310   : > { %5212 = vmatmul.mubr.msk.bf16.vlgmr.msra.gmra.mxu1 %vm2288_vm3, %v3537_v22 }
 0x311   : > { %5227 = vmatprep.mubr.msk.bf16.mxu1 %vm5540_vm1, %v5539_v1  ;;  %5224 = vmatpush3.bf16.msra.mxu1 %v5404_v7 }
 0x312   : > { %5225 = vmatprep.subr.bf16.mxu1 %v5539_v1 }
 0x315   : > { %5226 = vmatpush3.bf16.msra.mxu1 %v5406_v23 }
 0x316   : > { %5239 = vmatprep.subr.bf16.mxu1 %v5539_v1 }
 0x388   : > { %v2442_v24 = vpop.f32.mrf.mxu1  ;;  %v2504_v25 = vpop.f32.mrf.mxu0 }
 0x389   : > { %v2448_v28 = vadd.f32 %v2442_v24, %v6238_v62  ;;  %v3531_v24 = vpack.c.bf16 %v3530_v20, %v3530_v20 }
 0x38a   : > { %v5069_v26 = vpop.f32.mrf.mxu1  ;;  %v5077_v27 = vpop.f32.mrf.mxu0 }
 0x38b   : > { %v2510_v33 = vadd.f32 %v2504_v25, %v2448_v28  ;;  %v5407_v25 = vld [vmem:[%s6704_s5 + $0x38] sm:$0xff]  }
 0x38c   : > { %v2445_v29 = vpop.f32.mrf.mxu1  ;;  %v2507_v30 = vpop.f32.mrf.mxu0 }
 0x38d   : > { %v5408_v30 = vld [vmem:[%s6704_s5 + $0x48] sm:$0xff]  }
 0x38e   : > { %v5070_v31 = vpop.f32.mrf.mxu1  ;;  %v5078_v32 = vpop.f32.mrf.mxu0 }
 0x390   : > { %v2566_v34 = vpop.f32.mrf.mxu1  ;;  %v2643_v36 = vpop.f32.mrf.mxu0 }
 0x391   : > { %v2572_v37 = vadd.f32 %v2566_v34, %v2510_v33 }
 0x392   : > { %v5085_v38 = vpop.f32.mrf.mxu1  ;;  %v5093_v39 = vpop.f32.mrf.mxu0 }
 0x393   : > { %v2574_v11 = vadd.f32 %v2573_v35, %v2572_v37  ;;  %v5409_v35 = vld [vmem:[%s6704_s5 + $0x30] sm:$0xff]   ;;  %v5410_v39 = vld [vmem:[%s6704_s5 + $0x40] sm:$0xff]  }
 0x394   : > { %v2569_v40 = vpop.f32.mrf.mxu1  ;;  %v2646_v41 = vpop.f32.mrf.mxu0 }
 0x395   : > { %vm2575_vm7 = vcmp.ge.f32.partialorder %v2574_v11, 0.0  ;;  %v2576_v42 = vmul.f32 0.1, %v2574_v11 }
 0x396   : > { %v5086_v43 = vpop.f32.mrf.mxu1  ;;  %v5094_v44 = vpop.f32.mrf.mxu0 }
 0x397   : > { %v2577_v45 = vsel %vm2575_vm7, %v2574_v11, %v2576_v42  ;;  %v3776_v11 = vld [vmem:[%s6244_s1 + $0xc] sm:$0x1] }
 0x398   : > { %2581 = vst.msk [vmem:[%s6244_s1 + $0x2] sm:$0x1] %vm2580_vm8, %v2577_v45  ;;  %v2698_v46 = vpop.f32.mrf.mxu1  ;;  %v5411_v44 = vld [vmem:[%s6704_s5 + $0x18] sm:$0xff]  }
 0x399   : > { %v2699_v49 = vadd.f32 %v2698_v46, %v2643_v36  ;;  %v3714_v36 = vld [vmem:[%s6244_s1 + $0xb] sm:$0x1] }
 0x39a   : > { %v5101_v47 = vpop.f32.mrf.mxu1  ;;  %v2759_v48 = vpop.f32.mrf.mxu0  ;;  %v3715_v42 = vpack.c.bf16 %v3714_v36, %v3714_v36 }
 0x39b   : > { %v2765_v54 = vadd.f32 %v2759_v48, %v2699_v49  ;;  %v3206_v47 = vld [vmem:[%s6675_s7 + $0x3] sm:$0x1]  ;;  %v3777_v48 = vpack.c.bf16 %v3776_v11, %v3776_v11 }
 0x39c   : > { %v2701_v50 = vpop.f32.mrf.mxu1  ;;  %v5109_v51 = vpop.f32.mrf.mxu0 }
 0x39d   : > { %v5412_v50 = vld [vmem:[%s6704_s5 + $0x8] sm:$0xff]  }
 0x39e   : > { %v5102_v52 = vpop.f32.mrf.mxu1  ;;  %v2762_v53 = vpop.f32.mrf.mxu0 }
 0x39f   : > { %v3336_v55 = vld [vmem:[%s6244_s1 + $0x2] sm:$0x1] }
 0x3a0   : > { %v5110_v57 = vpop.f32.mrf.mxu0  ;;  %v2821_v58 = vpop.f32.mrf.mxu1  ;;  %v3337_v59 = vpack.c.bf16 %v3336_v55, %v3336_v55  ;;  %v5413_v53 = vld [vmem:[%s6704_s5 + $0x10] sm:$0xff]  }
 0x3a1   : > { %v2827_v60 = vadd.f32 %v2821_v58, %v2765_v54  ;;  %v3852_v54 = vld [vmem:[%s6244_s1 + $0x11] sm:$0x1]  ;;  %v3846_v58 = vld [vmem:[%s6244_s1 + $0x10] sm:$0x1] }
 0x3a2   : > { %v5117_v61 = vpop.f32.mrf.mxu1  ;;  %v2883_v62 = vpop.f32.mrf.mxu0  ;;  %5188 = vmatmul.mubr.msk.bf16.vlgmr.msra.gmra.mxu0 %vm2288_vm3, %v3337_v59  ;;  %v5414_v57 = vld [vmem:[%s6704_s5] sm:$0xff]  }
 0x3a3   : > { %v2889_v0 = vadd.f32 %v2883_v62, %v2827_v60  ;;  %5200 = vmatpush3.bf16.msra.mxu0 %v5399_v56  ;;  %5203 = vmatprep.mubr.msk.bf16.mxu0 %vm5540_vm1, %v5539_v1  ;;  %v3853_v60 = vpack.c.bf16 %v3852_v54, %v3852_v54  ;;  %v5415_v62 = vld [vmem:[%s6704_s5 + $0x28] sm:$0xff]  }
 0x3a4   : > { %v2824_v4 = vpop.f32.mrf.mxu1  ;;  %v5125_v5 = vpop.f32.mrf.mxu0  ;;  %5201 = vmatprep.subr.bf16.mxu0 %v5539_v1 }
 0x3a5   : > { %v2891_v6 = vadd.f32 %v2890_v63, %v2889_v0  ;;  %v3847_v63 = vpack.c.bf16 %v3846_v58, %v3846_v58  ;;  %v5416_v0 = vld [vmem:[%s6704_s5 + $0x38] sm:$0xff]  }
 0x3a6   : > { %v5118_v8 = vpop.f32.mrf.mxu1  ;;  %v2886_v9 = vpop.f32.mrf.mxu0  ;;  %v4030_v4 = vld [vmem:[%s6244_s1 + $0x13] sm:$0x1] }
 0x3a7   : > { %vm2892_vm9 = vcmp.ge.f32.partialorder %v2891_v6, 0.0  ;;  %v2893_v12 = vmul.f32 0.1, %v2891_v6  ;;  %5202 = vmatpush3.bf16.msra.mxu0 %v5401_v2  ;;  %v5417_v2 = vld [vmem:[%s6704_s5 + $0x20] sm:$0xff]   ;;  %v4031_v9 = vpack.c.bf16 %v4030_v4, %v4030_v4 }
 0x3a8   : > { %v5126_v14 = vpop.f32.mrf.mxu0  ;;  %v2959_v15 = vpop.f32.mrf.mxu1  ;;  %5215 = vmatprep.subr.bf16.mxu0 %v5539_v1  ;;  %v4226_v4 = vld [vmem:[%s6705_s6 + $0x2] sm:$0x1] }
 0x3a9   : > { %v2894_v16 = vsel %vm2892_vm9, %v2891_v6, %v2893_v12  ;;  %v5419_v6 = vld [vmem:[%s6704_s5 + $0x48] sm:$0xff]   ;;  %v4092_v12 = vld [vmem:[%s6244_s1 + $0x14] sm:$0x1] }
 0x3aa   : > { %2897 = vst.msk [vmem:[%s6244_s1 + $0xa] sm:$0x1] %vm2580_vm8, %v2894_v16  ;;  %v5133_v17 = vpop.f32.mrf.mxu1  ;;  %v3014_v18 = vpop.f32.mrf.mxu0  ;;  %5204 = vmatmul.mubr.msk.bf16.vlgmr.msra.gmra.mxu0 %vm2288_vm3, %v3461_v10  ;;  %v5420_v10 = vld [vmem:[%s6704_s5 + $0x40] sm:$0xff]  }
 0x3ab   : > { %5216 = vmatpush3.bf16.msra.mxu0 %v5403_v13  ;;  %5219 = vmatprep.mubr.msk.bf16.mxu0 %vm5540_vm1, %v5539_v1  ;;  %v3015_v28 = vadd.f32 %v3014_v18, %v2959_v15  ;;  %v4093_v13 = vpack.c.bf16 %v4092_v12, %v4092_v12 }
 0x3ac   : > { %v2962_v21 = vpop.f32.mrf.mxu1  ;;  %v5141_v22 = vpop.f32.mrf.mxu0  ;;  %5217 = vmatprep.subr.bf16.mxu0 %v5539_v1 }
 0x3ae   : > { %v5134_v7 = vpop.f32.mrf.mxu1  ;;  %v3017_v23 = vpop.f32.mrf.mxu0 }
 0x3af   : > { %5218 = vmatpush3.bf16.msra.mxu0 %v5405_v19 }
 0x3b0   : > { %v5142_v26 = vpop.f32.mrf.mxu0  ;;  %v3075_v27 = vpop.f32.mrf.mxu1  ;;  %5231 = vmatprep.subr.bf16.mxu0 %v5539_v1 }
 0x3b1   : > { %v3652_v29 = vld [vmem:[%s6244_s1 + $0xa] sm:$0x1]  ;;  %v3081_v34 = vadd.f32 %v3075_v27, %v3015_v28  ;;  %v4162_v28 = vld [vmem:[%s6452_s3] sm:$0x1] }
 0x3b2   : > { %v5149_v31 = vpop.f32.mrf.mxu1  ;;  %v3137_v32 = vpop.f32.mrf.mxu0  ;;  %5220 = vmatmul.mubr.msk.bf16.vlgmr.msra.gmra.mxu0 %vm2288_vm3, %v3531_v24  ;;  %v3653_v33 = vpack.c.bf16 %v3652_v29, %v3652_v29  ;;  %v4163_v29 = vld [vmem:[%s6705_s6] sm:$0x1] }
 0x3b3   : > { %5232 = vmatpush3.bf16.msra.mxu0 %v5407_v25  ;;  %5235 = vmatprep.mubr.msk.bf16.mxu0 %vm5540_vm1, %v5539_v1  ;;  %v3143_v43 = vadd.f32 %v3137_v32, %v3081_v34  ;;  %v4164_v31 = vmul.f32 %v4163_v29, %v4162_v28  ;;  %v4211_v34 = vld [vmem:[%s6452_s3 + $0x10] sm:$0x1] }
 0x3b4   : > { %v3078_v37 = vpop.f32.mrf.mxu1  ;;  %v5157_v38 = vpop.f32.mrf.mxu0  ;;  %5228 = vmatmul.mubr.msk.bf16.vlgmr.msra.gmra.mxu1 %vm2288_vm3, %v3653_v33  ;;  %5233 = vmatprep.subr.bf16.mxu0 %v5539_v1 }
 0x3b5   : > { %5240 = vmatpush3.bf16.msra.mxu1 %v5408_v30  ;;  %5243 = vmatprep.mubr.msk.bf16.mxu1 %vm5540_vm1, %v5539_v1  ;;  %v4165_v33 = vsel %vm2580_vm8, %v4164_v31, 0.0  ;;  %v4176_v37 = vld [vmem:[%s6452_s3 + $0x2] sm:$0x1] }
 0x3b6   : > { %v5150_v40 = vpop.f32.mrf.mxu1  ;;  %v3140_v41 = vpop.f32.mrf.mxu0  ;;  %5241 = vmatprep.subr.bf16.mxu1 %v5539_v1  ;;  %4166 = vadd.xlane.f32.xlu0 %v4165_v33  ;;  %v4177_v38 = vld [vmem:[%s6705_s6 + $0x2] sm:$0x1] }
 0x3b7   : > { %5234 = vmatpush3.bf16.msra.mxu0 %v5409_v35  ;;  %v4187_v40 = vld [vmem:[%s6452_s3 + $0x8] sm:$0x1] }
 0x3b8   : > { %v5158_v45 = vpop.f32.mrf.mxu0  ;;  %v3199_v46 = vpop.f32.mrf.mxu1  ;;  %5247 = vmatprep.subr.bf16.mxu0 %v5539_v1  ;;  %v4188_v41 = vld [vmem:[%s6705_s6] sm:$0x1] }
 0x3b9   : > { %v3205_v49 = vadd.f32 %v3199_v46, %v3143_v43  ;;  %5242 = vmatpush3.bf16.msra.mxu1 %v5410_v39  ;;  %v4178_v39 = vmul.f32 %v4177_v38, %v4176_v37 }
 0x3ba   : > { %v5165_v51 = vpop.f32.mrf.mxu1  ;;  %5236 = vmatmul.mubr.msk.bf16.vlgmr.msra.gmra.mxu0 %vm2288_vm3, %v3715_v42  ;;  %5255 = vmatprep.subr.bf16.mxu1 %v5539_v1  ;;  %v3275_v14 = vpop.f32.mrf.mxu0  ;;  %v4189_v42 = vmul.f32 %v4188_v41, %v4187_v40 }
 0x3bb   : > { %v3207_v52 = vadd.f32 %v3206_v47, %v3205_v49  ;;  %5248 = vmatpush3.bf16.msra.mxu0 %v5411_v44  ;;  %5251 = vmatprep.mubr.msk.bf16.mxu0 %vm5540_vm1, %v5539_v1  ;;  %v4179_v11 = vsel %vm2580_vm8, %v4178_v39, 0.0  ;;  %v3522_v51 = vld [vmem:[%s6675_s7 + $0x4] sm:$0x1] }
 0x3bc   : > { %v3202_v55 = vpop.f32.mrf.mxu1  ;;  %5244 = vmatmul.mubr.msk.bf16.vlgmr.msra.gmra.mxu1 %vm2288_vm3, %v3777_v48  ;;  %5249 = vmatprep.subr.bf16.mxu0 %v5539_v1  ;;  %v5173_v15 = vpop.f32.mrf.mxu0  ;;  %v4190_v43 = vsel %vm2580_vm8, %v4189_v42, 0.0 }
 0x3bd   : > { %vm3208_vm10 = vcmp.ge.f32.partialorder %v3207_v52, 0.0  ;;  %v3209_v56 = vmul.f32 0.1, %v3207_v52  ;;  %5256 = vmatpush3.bf16.msra.mxu1 %v5412_v50  ;;  %5259 = vmatprep.mubr.msk.bf16.mxu1 %vm5540_vm1, %v5539_v1 }
 0x3be   : > { %v5166_v59 = vpop.f32.mrf.mxu1  ;;  %5257 = vmatprep.subr.bf16.mxu1 %v5539_v1  ;;  %v3278_v16 = vpop.f32.mrf.mxu0  ;;  %4191 = vadd.xlane.f32.xlu1 %v4190_v43 }
 0x3bf   : > { %v3210_v61 = vsel %vm3208_vm10, %v3207_v52, %v3209_v56  ;;  %5250 = vmatpush3.bf16.msra.mxu0 %v5413_v53 }
 0x3c0   : > { %3213 = vst.msk [vmem:[%s6244_s1 + $0x12] sm:$0x1] %vm2580_vm8, %v3210_v61  ;;  %5263 = vmatprep.subr.bf16.mxu0 %v5539_v1  ;;  %v5174_v17 = vpop.f32.mrf.mxu0  ;;  %v3330_v18 = vpop.f32.mrf.mxu1 }
 0x3c1   : > { %5258 = vmatpush3.bf16.msra.mxu1 %v5414_v57  ;;  %v3331_v19 = vadd.f32 %v3330_v18, %v3275_v14  ;;  %v3838_v18 = vld [vmem:[%s6675_s7 + $0x4] sm:$0x1] }
 0x3c2   : > { %5252 = vmatmul.mubr.msk.bf16.vlgmr.msra.gmra.mxu0 %vm2288_vm3, %v3853_v60  ;;  %5271 = vmatprep.subr.bf16.mxu1 %v5539_v1  ;;  %v5181_v20 = vpop.f32.mrf.mxu1 }
 0x3c3   : > { %5264 = vmatpush3.bf16.msra.mxu0 %v5415_v62  ;;  %5267 = vmatprep.mubr.msk.bf16.mxu0 %vm5540_vm1, %v5539_v1 }
 0x3c4   : > { %5260 = vmatmul.mubr.msk.bf16.vlgmr.msra.gmra.mxu1 %vm2288_vm3, %v3847_v63  ;;  %5265 = vmatprep.subr.bf16.mxu0 %v5539_v1  ;;  %v3333_v21 = vpop.f32.mrf.mxu1 }
 0x3c5   : > { %5272 = vmatpush3.bf16.msra.mxu1 %v5416_v0  ;;  %5275 = vmatprep.mubr.msk.bf16.mxu1 %vm5540_vm1, %v5539_v1 }
 0x3c6   : > { %5273 = vmatprep.subr.bf16.mxu1 %v5539_v1  ;;  %v5182_v22 = vpop.f32.mrf.mxu1 }
 0x3c7   : > { %5266 = vmatpush3.bf16.msra.mxu0 %v5417_v2  ;;  %v3968_v5 = vld [vmem:[%s6244_s1 + $0x12] sm:$0x1]  ;;  %v4170_v2 = vld [vmem:[%s6705_s6 + $0x1] sm:$0x1]  ;;  %s5427_s1 = scalar_lea.vmem %s5426_s29, 768 }
 0x3c8   : > { %5279 = vmatprep.subr.bf16.mxu0 %v5539_v1  ;;  %v3969_v8 = vpack.c.bf16 %v3968_v5, %v3968_v5  ;;  %v3453_v7 = vpop.f32.mrf.mxu1  ;;  %p5429_p1 = scmp.lt.s32.totalorder %s5427_s1, %s5421_s2 }
 0x3c9   : > { %5274 = vmatpush3.bf16.msra.mxu1 %v5418_v3  ;;  %v4225_v3 = vld [vmem:[%s6452_s3 + $0x12] sm:$0x1] }
 0x3ca   : > { %5268 = vmatmul.mubr.msk.bf16.vlgmr.msra.gmra.mxu0 %vm2288_vm3, %v3969_v8  ;;  %v5197_v23 = vpop.f32.mrf.mxu1  ;;  %v4227_v14 = vmul.f32 %v4226_v4, %v4225_v3  ;;  %p5430_p2 = por %p5429_p1, %p5428_p0 }
 0x3cb   : > { %5280 = vmatpush3.bf16.msra.mxu0 %v5419_v6  ;;  %5283 = vmatprep.mubr.msk.bf16.mxu0 %vm5540_vm1, %v5539_v1 }
 0x3cc   : > { %5276 = vmatmul.mubr.msk.bf16.vlgmr.msra.gmra.mxu1 %vm2288_vm3, %v4031_v9  ;;  %5281 = vmatprep.subr.bf16.mxu0 %v5539_v1  ;;  %v3456_v24 = vpop.f32.mrf.mxu1  ;;  %v4212_v1 = vld [vmem:[%s6705_s6] sm:$0x1]  ;;  %p5431_p3 = pnand %p5430_p2, %p5424_p13 }
 0x3cd   : > { %v4213_v35 = vmul.f32 %v4212_v1, %v4211_v34 }
 0x3ce   : > { %v5198_v25 = vpop.f32.mrf.mxu1 }
 0x3cf   : > { %5282 = vmatpush3.bf16.msra.mxu0 %v5420_v10  ;;  %v4214_v36 = vsel %vm2580_vm8, %v4213_v35, 0.0  ;;  %v4195_v35 = vld [vmem:[%s6705_s6 + $0x1] sm:$0x1] }
 0x3d0   : > { %v3591_v26 = vpop.f32.mrf.mxu1  ;;  %4215 = vadd.xlane.f32.xlu0 %v4214_v36 }
 0x3d2   : > { %5284 = vmatmul.mubr.msk.bf16.vlgmr.msra.gmra.mxu0 %vm2288_vm3, %v4093_v13  ;;  %v5213_v27 = vpop.f32.mrf.mxu1 }
 0x3d4   : > { %v3594_v30 = vpop.f32.mrf.mxu1  ;;  %4180 = vadd.xlane.f32.xlu0 %v4179_v11 }
 0x3d6   : > { %v5214_v32 = vpop.f32.mrf.mxu1 }
 0x462   : > { %v3391_v44 = vpop.f32.mrf.mxu0 }
 0x463   : > { %v3397_v46 = vadd.f32 %v3391_v44, %v3331_v19 }
 0x464   : > { %v5189_v45 = vpop.f32.mrf.mxu0 }
 0x465   : > { %v3459_v49 = vadd.f32 %v3453_v7, %v3397_v46  ;;  %v4228_v7 = vsel %vm2580_vm8, %v4227_v14, 0.0 }
 0x466   : > { %v3394_v47 = vpop.f32.mrf.mxu0 }
 0x468   : > { %v5190_v48 = vpop.f32.mrf.mxu0 }
 0x46a   : > { %v3515_v50 = vpop.f32.mrf.mxu0 }
 0x46b   : > { %v3521_v52 = vadd.f32 %v3515_v50, %v3459_v49 }
 0x46c   : > { %v5205_v53 = vpop.f32.mrf.mxu0 }
 0x46d   : > { %v3523_v54 = vadd.f32 %v3522_v51, %v3521_v52  ;;  %v4154_v51 = vld [vmem:[%s6675_s7 + $0x4] sm:$0x1] }
 0x46e   : > { %v3518_v55 = vpop.f32.mrf.mxu0 }
 0x46f   : > { %vm3524_vm1 = vcmp.ge.f32.partialorder %v3523_v54, 0.0  ;;  %v3525_v56 = vmul.f32 0.1, %v3523_v54 }
 0x470   : > { %v5206_v57 = vpop.f32.mrf.mxu0 }
 0x471   : > { %v3526_v58 = vsel %vm3524_vm1, %v3523_v54, %v3525_v56 }
 0x472   : > { %3529 = vst.msk [vmem:[%s6452_s3 + $0x1] sm:$0x1] %vm2580_vm8, %v3526_v58  ;;  %v3646_v59 = vpop.f32.mrf.mxu0 }
 0x473   : > { %v3647_v62 = vadd.f32 %v3646_v59, %v3591_v26  ;;  %v4219_v59 = vld [vmem:[%s6705_s6 + $0x1] sm:$0x1] }
 0x474   : > { %v5221_v60 = vpop.f32.mrf.mxu0  ;;  %v3707_v61 = vpop.f32.mrf.mxu1 }
 0x475   : > { %v3713_v8 = vadd.f32 %v3707_v61, %v3647_v62  ;;  %v4201_v60 = vld [vmem:[%s6452_s3 + $0xa] sm:$0x1] }
 0x476   : > { %v3649_v63 = vpop.f32.mrf.mxu0  ;;  %v5229_v0 = vpop.f32.mrf.mxu1  ;;  %v4202_v61 = vld [vmem:[%s6705_s6 + $0x2] sm:$0x1] }
 0x477   : > { %v4203_v0 = vmul.f32 %v4202_v61, %v4201_v60 }
 0x478   : > { %v5222_v5 = vpop.f32.mrf.mxu0  ;;  %v3710_v6 = vpop.f32.mrf.mxu1 }
 0x479   : > { %v4169_v9 = vld [vmem:[%s6452_s3 + $0x1] sm:$0x1]  ;;  %v4204_v3 = vsel %vm2580_vm8, %v4203_v0, 0.0 }
 0x47a   : > { %v5230_v10 = vpop.f32.mrf.mxu1  ;;  %v3769_v12 = vpop.f32.mrf.mxu0  ;;  %v4171_v13 = vmul.f32 %v4170_v2, %v4169_v9 }
 0x47b   : > { %v3775_v15 = vadd.f32 %v3769_v12, %v3713_v8 }
 0x47c   : > { %v5237_v16 = vpop.f32.mrf.mxu0  ;;  %v3831_v17 = vpop.f32.mrf.mxu1  ;;  %v4172_v19 = vsel %vm2580_vm8, %v4171_v13, 0.0 }
 0x47d   : > { %v3837_v20 = vadd.f32 %v3831_v17, %v3775_v15  ;;  %4173 = vadd.xlane.f32.xlu0 %v4172_v19 }
 0x47e   : > { %v3772_v21 = vpop.f32.mrf.mxu0  ;;  %v5245_v22 = vpop.f32.mrf.mxu1 }
 0x47f   : > { %v3839_v23 = vadd.f32 %v3838_v18, %v3837_v20 }
 0x480   : > { %v5238_v24 = vpop.f32.mrf.mxu0  ;;  %v3834_v25 = vpop.f32.mrf.mxu1 }
 0x481   : > { %vm3840_vm11 = vcmp.ge.f32.partialorder %v3839_v23, 0.0  ;;  %v3841_v26 = vmul.f32 0.1, %v3839_v23  ;;  %4229 = vadd.xlane.f32.xlu0 %v4228_v7 }
 0x482   : > { %v5246_v27 = vpop.f32.mrf.mxu1  ;;  %v3907_v28 = vpop.f32.mrf.mxu0 }
 0x483   : > { %v3842_v29 = vsel %vm3840_vm11, %v3839_v23, %v3841_v26 }
 0x484   : > { %3845 = vst.msk [vmem:[%s6452_s3 + $0x9] sm:$0x1] %vm2580_vm8, %v3842_v29  ;;  %v5253_v30 = vpop.f32.mrf.mxu0  ;;  %v3962_v31 = vpop.f32.mrf.mxu1 }
 0x485   : > { %v3963_v38 = vadd.f32 %v3962_v31, %v3907_v28 }
 0x486   : > { %v3910_v32 = vpop.f32.mrf.mxu0  ;;  %v5261_v33 = vpop.f32.mrf.mxu1 }
 0x488   : > { %v5254_v34 = vpop.f32.mrf.mxu0  ;;  %v3965_v1 = vpop.f32.mrf.mxu1 }
 0x48a   : > { %v5262_v36 = vpop.f32.mrf.mxu1  ;;  %v4023_v37 = vpop.f32.mrf.mxu0 }
 0x48b   : > { %v4194_v39 = vld [vmem:[%s6452_s3 + $0x9] sm:$0x1]  ;;  %v4029_v42 = vadd.f32 %v4023_v37, %v3963_v38 }
 0x48c   : > { %v5269_v11 = vpop.f32.mrf.mxu0  ;;  %v4085_v40 = vpop.f32.mrf.mxu1  ;;  %v4196_v41 = vmul.f32 %v4195_v35, %v4194_v39 }
 0x48d   : > { %v4091_v48 = vadd.f32 %v4085_v40, %v4029_v42 }
 0x48e   : > { %v4026_v43 = vpop.f32.mrf.mxu0  ;;  %v5277_v44 = vpop.f32.mrf.mxu1  ;;  %v4197_v45 = vsel %vm2580_vm8, %v4196_v41, 0.0 }
 0x48f   : > { %4198 = vadd.xlane.f32.xlu1 %v4197_v45 }
 0x490   : > { %v5270_v46 = vpop.f32.mrf.mxu0  ;;  %v4088_v47 = vpop.f32.mrf.mxu1 }
 0x492   : > { %v5278_v49 = vpop.f32.mrf.mxu1  ;;  %v4147_v50 = vpop.f32.mrf.mxu0 }
 0x493   : > { %v4153_v52 = vadd.f32 %v4147_v50, %v4091_v48 }
 0x494   : > { %v5285_v53 = vpop.f32.mrf.mxu0 }
 0x495   : > { %v4155_v54 = vadd.f32 %v4154_v51, %v4153_v52 }
 0x496   : > { %v4150_v55 = vpop.f32.mrf.mxu0 }
 0x497   : > { %vm4156_vm12 = vcmp.ge.f32.partialorder %v4155_v54, 0.0  ;;  %v4157_v56 = vmul.f32 0.1, %v4155_v54 }
 0x498   : > { %v5286_v57 = vpop.f32.mrf.mxu0 }
 0x499   : > { %v4158_v58 = vsel %vm4156_vm12, %v4155_v54, %v4157_v56 }
 0x49a   : > { %4161 = vst.msk [vmem:[%s6452_s3 + $0x11] sm:$0x1] %vm2580_vm8, %v4158_v58 }
 0x4a1   : > { %v4218_v62 = vld [vmem:[%s6452_s3 + $0x11] sm:$0x1] }
 0x4a2   : > { %v4220_v63 = vmul.f32 %v4219_v59, %v4218_v62 }
 0x4a4   : > { %v4221_v2 = vsel %vm2580_vm8, %v4220_v63, 0.0 }
 0x4a5   : > { %4222 = vadd.xlane.f32.xlu1 %v4221_v2 }
 0x4a9   : > { %4205 = vadd.xlane.f32.xlu1 %v4204_v3 }
 0x4aa   : > { %5434 = shalt.err (!%p5431_p3)
}
 0x4ab   : > { %s5435_s15 = scalar_lea.hbm %s6541_s0, 384  ;;  %s5439_s4 = scalar_lea.hbm %s6706_s11, 768 }
 0x4ac   : > { %p5436_p4 = scmp.ne.s32.totalorder %s6541_s0, %s5435_s15  ;;  %p5440_p9 = scmp.lt.s32.totalorder %s6541_s0, %s6706_s11 }
 0x4ad   : > { %p5441_p10 = scmp.lt.s32.totalorder %s5439_s4, %s5435_s15 }
 0x4ae   : > { %p5437_p7 = pnand %p5436_p4, %p5656_p5 }
 0x4af   : > { %p5442_p11 = por %p5441_p10, %p5440_p9 }
 0x4b0   : > { %p5438_p8 = pneg %p5437_p7 }
 0x4b2   : > { %p5443_p12 = pnand %p5442_p11, %p5438_p8 }
 0x4b4   : > { %5446 = shalt.err (!%p5443_p12)
}
 0x4b5   : > { %s5542_s2 = smov 128   ;;  %s5543_s29 = smov 8  }
 0x4b6   : > { %5294 = dma.vmem_to_hbm [thread:$0]  (%p5656_p5), %s6543_s30, 384, %s6541_s0, %s6545_s23, %s5542_s2, %s5542_s2, %s5543_s29  }
 0x4b7   : > { %s6575_s1 = scalar_lea.hbm %s6678_s10, %s6533_s16  ;;  %s4280_s15 = sshll.u32 %s6027_s21, 4  ;;  %s6578_s15 = int_to_ptr.vmem [resolvable:$true] %s4280_s15 }
 0x4b8   : > { %s6584_s4 = scalar_lea.hbm %s6680_s12, %s6533_s16  ;;  %s6707_s8 = sand.u32 1, %s5529_s26  }
 0x4b9   : > { %s4246_s9 = scalar_lea.sflag [#allocation3], %s6707_s8  ;;  %s5447_s11 = scalar_lea.vmem %s6578_s15, 384 }
 0x4ba   : > { %p5448_p13 = scmp.ne.s32.totalorder %s6578_s15, %s5447_s11  ;;  %s5544_s30 = smov [#allocation2]  }
 0x4bb   : > { %s5451_s0 = sshll.u32 %s5544_s30, 4  ;;  %s5452_s0 = int_to_ptr.vmem [resolvable:$false] %s5451_s0 }
 0x4bc   : > { %p5449_p0 = pnand %p5448_p13, %p5656_p5  ;;  %s5453_s21 = scalar_lea.vmem %s5452_s0, 768 }
 0x4bd   : > { %p5454_p2 = scmp.lt.s32.totalorder %s6578_s15, %s5452_s0  ;;  %p5455_p3 = scmp.lt.s32.totalorder %s5453_s21, %s5447_s11 }
 0x4be   : > { %p5450_p1 = pneg %p5449_p0 }
 0x4bf   : > { %p5456_p4 = por %p5455_p3, %p5454_p2 }
 0x4c1   : > { %p5457_p7 = pnand %p5456_p4, %p5450_p1 }
 0x4c3   : > { %5460 = shalt.err (!%p5457_p7)
}
 0x4c4   : > { %s5461_s16 = scalar_lea.hbm %s6575_s1, 384  ;;  %s5465_s6 = scalar_lea.hbm %s6678_s10, 768 }
 0x4c5   : > { %p5462_p8 = scmp.ne.s32.totalorder %s6575_s1, %s5461_s16  ;;  %p5466_p11 = scmp.lt.s32.totalorder %s6575_s1, %s6678_s10 }
 0x4c6   : > { %p5467_p12 = scmp.lt.s32.totalorder %s5465_s6, %s5461_s16 }
 0x4c7   : > { %p5463_p9 = pnand %p5462_p8, %p5656_p5 }
 0x4c8   : > { %p5468_p13 = por %p5467_p12, %p5466_p11 }
 0x4c9   : > { %p5464_p10 = pneg %p5463_p9 }
 0x4cb   : > { %p5469_p0 = pnand %p5468_p13, %p5464_p10 }
 0x4cd   : > { %5472 = shalt.err (!%p5469_p0)
}
 0x4ce   : > { %5293 = dma.vmem_to_hbm [thread:$0]  (%p5656_p5), %s6578_s15, 384, %s6575_s1, %s4246_s9, %s5542_s2, %s5542_s2, %s5543_s29  }
 0x4cf   : > { %s4312_s11 = sshll.u32 %s6452_s3, 4  ;;  %s5545_s0 = smov [#allocation6]   ;;  %s4313_s11 = int_to_ptr.vmem [resolvable:$true] %s4312_s11 }
 0x4d0   : > { %s5473_s30 = scalar_lea.vmem %s4313_s11, 384  ;;  %s5477_s21 = sshll.u32 %s5545_s0, 4  ;;  %s5478_s21 = int_to_ptr.vmem [resolvable:$false] %s5477_s21 }
 0x4d1   : > { %p5474_p1 = scmp.ne.s32.totalorder %s4313_s11, %s5473_s30  ;;  %s5479_s16 = scalar_lea.vmem %s5478_s21, 768 }
 0x4d2   : > { %p5480_p4 = scmp.lt.s32.totalorder %s4313_s11, %s5478_s21  ;;  %p5481_p7 = scmp.lt.s32.totalorder %s5479_s16, %s5473_s30 }
 0x4d3   : > { %p5475_p2 = pnand %p5474_p1, %p5656_p5 }
 0x4d4   : > { %p5482_p8 = por %p5481_p7, %p5480_p4 }
 0x4d5   : > { %p5476_p3 = pneg %p5475_p2 }
 0x4d7   : > { %p5483_p9 = pnand %p5482_p8, %p5476_p3 }
 0x4d9   : > { %5486 = shalt.err (!%p5483_p9)
}
 0x4da   : > { %s5487_s9 = scalar_lea.hbm %s6584_s4, 384  ;;  %s5491_s15 = scalar_lea.hbm %s6680_s12, 768 }
 0x4db   : > { %p5488_p10 = scmp.ne.s32.totalorder %s6584_s4, %s5487_s9  ;;  %p5492_p13 = scmp.lt.s32.totalorder %s6584_s4, %s6680_s12 }
 0x4dc   : > { %p5493_p0 = scmp.lt.s32.totalorder %s5491_s15, %s5487_s9 }
 0x4dd   : > { %p5489_p11 = pnand %p5488_p10, %p5656_p5 }
 0x4de   : > { %p5494_p1 = por %p5493_p0, %p5492_p13 }
 0x4df   : > { %p5490_p12 = pneg %p5489_p11 }
 0x4e1   : > { %p5495_p2 = pnand %p5494_p1, %p5490_p12 }
 0x4e3   : > { %5498 = shalt.err (!%p5495_p2)
}
 0x4e4   : > { %5295 = dma.vmem_to_hbm [thread:$0]  (%p5656_p5), %s4313_s11, 384, %s6584_s4, %s6545_s23, %s5542_s2, %s5542_s2, %s5543_s29   ;;  %v4167_v4 = vpop.xlane.xlu0 %4166  ;;  %vm4185_vm13 = vcmask 0   ;;  %v4192_v14 = vpop.xlane.xlu1 %4191 }
 0x4e5   : > { %v4183_v10 = vld [vmem:[%s6675_s7 + $0x5] sm:$0x1]  ;;  %s6708_s24 = smul.u32 24, %s5675_s22 }
 0x4e6   : > { %v4232_v19 = vld [vmem:[%s6675_s7 + $0x5] sm:$0x1] }
 0x4e7   : > { %s492_s0 = scalar_lea.vmem %s6681_s13, %s6708_s24  ;;  %v4208_v22 = vld [vmem:[%s6675_s7 + $0x5] sm:$0x1] }
 0x4e8   : > { %v4216_v5 = vpop.xlane.xlu0 %4215 }
 0x4ec   : > { %v4181_v6 = vpop.xlane.xlu0 %4180 }
 0x506   : > { %v4174_v8 = vpop.xlane.xlu0 %4173 }
 0x507   : > { %v4175_v9 = vadd.f32 %v4174_v8, %v4167_v4 }
 0x509   : > { %v4182_v12 = vadd.f32 %v4181_v6, %v4175_v9 }
 0x50a   : > { %v4230_v17 = vpop.xlane.xlu0 %4229 }
 0x50b   : > { %v4184_v13 = vadd.f32 %v4183_v10, %v4182_v12 }
 0x50d   : > { %4186 = vst.msk [vmem:[%s492_s0] sm:$0x1] %vm4185_vm13, %v4184_v13 }
 0x518   : > { %v4199_v15 = vpop.xlane.xlu1 %4198 }
 0x519   : > { %v4200_v20 = vadd.f32 %v4199_v15, %v4192_v14 }
 0x52e   : > { %v4223_v16 = vpop.xlane.xlu1 %4222 }
 0x52f   : > { %v4224_v18 = vadd.f32 %v4223_v16, %v4216_v5 }
 0x531   : > { %v4231_v21 = vadd.f32 %v4230_v17, %v4224_v18 }
 0x532   : > { %v4206_v7 = vpop.xlane.xlu1 %4205 }
 0x533   : > { %v4233_v23 = vadd.f32 %v4232_v19, %v4231_v21  ;;  %v4207_v24 = vadd.f32 %v4206_v7, %v4200_v20 }
 0x535   : > { %4234 = vst.msk [vmem:[%s492_s0 + $0x10] sm:$0x1] %vm4185_vm13, %v4233_v23  ;;  %v4209_v25 = vadd.f32 %v4208_v22, %v4207_v24 }
 0x537   : > { %4210 = vst.msk [vmem:[%s492_s0 + $0x8] sm:$0x1] %vm4185_vm13, %v4209_v25 }
 0x538 PF: > { %p5309_p5 = scmp.ge.s32.totalorder %s5537_s28, 2  ;;  %s4346_s4 = sand.u32 1, %s5525_s25  }
 0x539   : > { %s4347_s11 = scalar_lea.sflag [#allocation3], %s4346_s4 }
 0x53a   : > { %p5300_p3 = pnand %p5309_p5, %p5660_p6 }
 0x53c   : > { %p5301_p4 = pneg %p5300_p3 }
 0x53e   : > { %5516 = dma.done.wait (%p5301_p4), %s4347_s11, 384  }
 0x53f   : > { %5518 = vsyncadd (%p5301_p4), %s4347_s11, 4294966912  ;;  %s6709_s21 = sadd.s32 4294967294, %s5537_s28  }
 0x540   : > { %s4355_s16 = sand.u32 1, %s6709_s21  }
 0x541   : > { %s4356_s9 = scalar_lea.sflag [#allocation5], %s4355_s16 }
 0x542   : > { %5520 = dma.done.wait (%p5301_p4), %s4356_s9, 768  }
 0x543   : > { %5522 = vsyncadd (%p5301_p4), %s4356_s9, 4294966528  ;;  %p27_p7 = scmp.ge.s32.totalorder %s5641_s14, 4   ;;  %s6710_s25 = smov %s5529_s26 }
 0x544   : > { %s6711_s26 = smov %s5533_s27  ;;  %s6712_s27 = smov %s5654_s17 }
 0x545   : > { %s6713_s28 = smov %s5641_s14  ;;  %29 = sbr.rel (!%p27_p7) target bundleno = 16 (0x10), region = 183 }
 0x54a   :  { %4378 = vsyncpa [#allocation3], 1 }
 0x54b   :  { %4380 = vsyncpa [#allocation3 + $0x1], 1 }
 0x54c   :  { %4381 = vsyncpa [#allocation5], 1 }
 0x54d   :  { %4383 = vsyncpa [#allocation5 + $0x1], 1 }

</bundles_post_ra>
